<compile_context>
chip_gen: v7x
topology: tpu7x:2x2x1
jax: 0.10.0
libtpu: 0.0.40
codegen_flags: <defaults>
</compile_context>

<pallas_src>
import jax
import jax.numpy as jnp
import numpy as np
from jax.experimental import pallas as pl
from jax.experimental.pallas import tpu as pltpu


MXU_INPUT_DTYPE = jnp.bfloat16   # bf16 operands + f32 accumulation (MXU fast path)
LANES = 128                      # lane width of the packed output slab


def _dot(a, b):
    return jnp.dot(a.astype(MXU_INPUT_DTYPE), b.astype(MXU_INPUT_DTYPE),
                   preferred_element_type=jnp.float32)


def _stimnet_kernel(x_ref,
                    wih0_ref, b0_ref, whh0_ref,
                    wih1t_ref, wih1b_ref, b1_ref, whh1_ref,
                    wa1t_ref, wa1b_ref, ba1_ref, wa2_ref, ba2_ref,
                    wht_ref, whb_ref, bh_ref, wo_ref, bo_ref,
                    out_ref,
                    gs_ref, hf0_ref, hr0_ref, hf1_ref, hr1_ref):
    T, Bp, D = x_ref.shape
    H = whh0_ref.shape[0]
    G = 4 * H
    f32 = jnp.float32

    def stack_gates(xg):
        """xg: (T*Bp, 8H) = [fwd gates | rev gates].  Store (fwd at time t,
        rev at time T-1-t) stacked on the sublane axis so the fused recurrence
        loads exactly one (2Bp, 4H) slab per step."""
        gf = xg[:, :G].reshape(T, Bp, G)
        gr = xg[:, G:].reshape(T, Bp, G)
        gs_ref[:, :Bp, :] = gf
        for t in range(T):                      # static & tiny, off the critical path
            gs_ref[t, Bp:, :] = gr[T - 1 - t]

    def run_layer(whh, hf_out, hr_out):
        """Fused fwd+rev recurrence: ONE (2Bp,H) @ (H,8H) matmul per timestep."""
        whh_c = whh.astype(MXU_INPUT_DTYPE)     # hoisted cast (once per layer)

        def cell(g, c_prev, first):
            sg = jax.nn.sigmoid(g)              # one full-width EUP pass
            tg = jnp.tanh(g)                    # one full-width EUP pass
            ig = sg[:, 0:H] * tg[:, 2 * H:3 * H]          # i * g
            c = ig if first else sg[:, H:2 * H] * c_prev + ig
            h = sg[:, 3 * H:4 * H] * jnp.tanh(c)          # o * tanh(c)
            return h, c

        # t = 0: h = c = 0 -> skip h @ W_hh and the f*c term entirely.
        h, c = cell(gs_ref[0], None, True)
        hf_out[0] = h[:Bp]
        hr_out[T - 1] = h[Bp:]
        for s in range(1, T):                   # T small & static: fully unrolled
            res = jnp.dot(h.astype(MXU_INPUT_DTYPE), whh_c,
                          preferred_element_type=f32)      # (2Bp, 8H)
            rec = jnp.concatenate([res[:Bp, :G], res[Bp:, G:]], axis=0)
            h, c = cell(gs_ref[s] + rec, c, False)
            hf_out[s] = h[:Bp]                  # fwd hidden at time s
            hr_out[T - 1 - s] = h[Bp:]          # rev hidden at time T-1-s

    # ---- layer 0: hoisted input projection for both directions (+ bias) ----
    x_flat = x_ref[...].reshape(T * Bp, D)
    stack_gates(_dot(x_flat, wih0_ref[...]) + b0_ref[...])        # (T*Bp, 8H)
    run_layer(whh0_ref[...], hf0_ref, hr0_ref)
    # (inter-layer dropout p=0.2 is identity in eval mode)

    # ---- layer 1: input projection from split fwd/rev layer-0 outputs ------
    f0 = hf0_ref[...].reshape(T * Bp, H)
    r0 = hr0_ref[...].reshape(T * Bp, H)
    stack_gates(_dot(f0, wih1t_ref[...]) + _dot(r0, wih1b_ref[...]) + b1_ref[...])
    run_layer(whh1_ref[...], hf1_ref, hr1_ref)

    # ---- attention scores, fused over time (fwd/rev halves kept split) -----
    f1 = hf1_ref[...].reshape(T * Bp, H)
    r1 = hr1_ref[...].reshape(T * Bp, H)
    a = jnp.tanh(_dot(f1, wa1t_ref[...]) + _dot(r1, wa1b_ref[...]) + ba1_ref[...])
    # (H -> 1) layer as a lane reduction (XLU) instead of a 1-column MXU matmul;
    # scores are built directly in (Bp, T) layout -> lane-dense softmax/output.
    wa2_row = wa2_ref[...]                                        # (1, H)
    cols = [jnp.sum(a[t * Bp:(t + 1) * Bp, :] * wa2_row, axis=-1, keepdims=True)
            for t in range(T)]
    s_bt = jnp.concatenate(cols, axis=1) + ba2_ref[...]           # (Bp, T)
    m = jnp.max(s_bt, axis=-1, keepdims=True)
    e = jnp.exp(s_bt - m)
    denom = jnp.sum(e, axis=-1, keepdims=True)
    attn_bt = e * pl.reciprocal(denom, approx=False)              # exact softmax

    # ---- context: attention-weighted sum over time (fwd/rev split) ---------
    ctx_f = jnp.zeros((Bp, H), f32)
    ctx_r = jnp.zeros((Bp, H), f32)
    for t in range(T):
        w_t = attn_bt[:, t:t + 1]                                 # (Bp, 1)
        ctx_f = ctx_f + hf1_ref[t] * w_t
        ctx_r = ctx_r + hr1_ref[t] * w_t

    # ---- fused heads: one hidden matmul pair + one block-diagonal output ---
    h3 = jnp.maximum(_dot(ctx_f, wht_ref[...]) + _dot(ctx_r, whb_ref[...])
                     + bh_ref[...], 0.0)                          # (Bp, 3H)
    pre = _dot(h3, wo_ref[...]) + bo_ref[...]                     # (Bp, 12)
    col = jax.lax.broadcasted_iota(jnp.int32, pre.shape, 1)
    heads = jnp.where(col == 0, jax.nn.sigmoid(pre), pre)         # sigmoid on stim only

    # ---- single lane-dense output slab: [heads | pad | attn(Bp,T) | pad] ---
    pad_mid = jnp.zeros((Bp, 16 - 12), f32)
    pad_end = jnp.zeros((Bp, LANES - 16 - T), f32)
    out_ref[...] = jnp.concatenate([heads, pad_mid, attn_bt, pad_end], axis=1)


def _pack_params(p, H):
    """Fuse / split weights outside the kernel (cheap, once per forward)."""
    w1f, w1r = p["wih1f"], p["wih1r"]                             # (2H, 4H) each
    z1 = jnp.zeros((H, 1), jnp.float32)
    z5 = jnp.zeros((H, 5), jnp.float32)
    z6 = jnp.zeros((H, 6), jnp.float32)
    wo = jnp.concatenate([
        jnp.concatenate([p["ws2"].T, z5, z6], axis=1),
        jnp.concatenate([z1, p["wt2"], z6], axis=1),
        jnp.concatenate([z1, z5, p["wr2"]], axis=1),
    ], axis=0)                                                    # (3H, 12) block-diagonal
    return dict(
        wih0=jnp.concatenate([p["wih0f"], p["wih0r"]], axis=1),   # (D, 8H)
        b0=jnp.concatenate([p["b0f"], p["b0r"]], axis=1),         # (1, 8H)
        whh0=jnp.concatenate([p["whh0f"], p["whh0r"]], axis=1),   # (H, 8H) fused fwd|rev
        wih1t=jnp.concatenate([w1f[:H], w1r[:H]], axis=1),        # (H, 8H)
        wih1b=jnp.concatenate([w1f[H:], w1r[H:]], axis=1),        # (H, 8H)
        b1=jnp.concatenate([p["b1f"], p["b1r"]], axis=1),         # (1, 8H)
        whh1=jnp.concatenate([p["whh1f"], p["whh1r"]], axis=1),   # (H, 8H) fused fwd|rev
        wa1t=p["wa1"][:H], wa1b=p["wa1"][H:],                     # (H, H)
        ba1=p["ba1"], wa2=p["wa2"], ba2=p["ba2"],                 # wa2 kept as row (1, H)
        wht=jnp.concatenate([p["ws1"][:H], p["wt1"][:H], p["wr1"][:H]], axis=1),  # (H, 3H)
        whb=jnp.concatenate([p["ws1"][H:], p["wt1"][H:], p["wr1"][H:]], axis=1),  # (H, 3H)
        bh=jnp.concatenate([p["bs1"], p["bt1"], p["br1"]], axis=1),               # (1, 3H)
        wo=wo,
        bo=jnp.concatenate([p["bs2"], p["bt2"], p["br2"]], axis=1),               # (1, 12)
    )


_ARG_ORDER = ["wih0", "b0", "whh0",
              "wih1t", "wih1b", "b1", "whh1",
              "wa1t", "wa1b", "ba1", "wa2", "ba2",
              "wht", "whb", "bh", "wo", "bo"]


def stimulation_net_forward(x, params):
    """x: (B, T, D) float32, batch_first like the PyTorch module."""
    B, T, D = x.shape
    H = params["whh0f"].shape[0]
    G = 4 * H
    Bp = max(8, ((B + 7) // 8) * 8)          # fill the f32 sublane dimension
    assert 16 + T <= LANES, "packed output slab assumes T <= 112"

    # pad batch, go time-major (T, Bp, D)
    x_p = jnp.pad(x, ((0, Bp - B), (0, 0), (0, 0)))
    x_tm = jnp.transpose(x_p, (1, 0, 2))

    packed = _pack_params(params, H)
    args = [x_tm] + [packed[k] for k in _ARG_ORDER]
    vmem = pl.BlockSpec(memory_space=pltpu.MemorySpace.VMEM)

    # TODO(synk): for serving batch sizes add a batch-block grid axis with
    # dimension_semantics=("parallel",) so v7x's second TensorCore is used;
    # at B=2 a single program is the right design.
    out = pl.pallas_call(
        _stimnet_kernel,
        out_shape=jax.ShapeDtypeStruct((Bp, LANES), jnp.float32),
        in_specs=[vmem] * len(args),
        out_specs=vmem,
        scratch_shapes=[
            pltpu.VMEM((T, 2 * Bp, G), jnp.float32),   # stacked fwd|rev gate pre-projections
            pltpu.VMEM((T, Bp, H), jnp.float32),       # layer-0 fwd hidden states
            pltpu.VMEM((T, Bp, H), jnp.float32),       # layer-0 rev hidden states
            pltpu.VMEM((T, Bp, H), jnp.float32),       # layer-1 fwd hidden states
            pltpu.VMEM((T, Bp, H), jnp.float32),       # layer-1 rev hidden states
        ],
    )(*args)

    stim = out[:B, 0:1]
    type_logits = out[:B, 1:6]
    resp = out[:B, 6:12]
    attn = out[:B, 16:16 + T][..., None]     # (B, T, 1)
    return stim, type_logits, resp, attn


def init_params(key, input_dim, hidden_dim):
    H = hidden_dim
    keys = iter(jax.random.split(key, 64))

    def u(shape, fan):
        bound = 1.0 / np.sqrt(fan)
        return jax.random.uniform(next(keys), shape, jnp.float32, -bound, bound)

    p = {}
    # LSTM: layer 0 takes input_dim, layer 1 takes 2H (bidirectional concat).
    # Weights stored transposed: W_ih^T (in, 4H), W_hh^T (H, 4H); bias = b_ih + b_hh.
    for name, in_dim in [("0f", input_dim), ("0r", input_dim),
                         ("1f", 2 * H), ("1r", 2 * H)]:
        p["wih" + name] = u((in_dim, 4 * H), H)
        p["whh" + name] = u((H, 4 * H), H)
        p["b" + name] = u((1, 4 * H), H) + u((1, 4 * H), H)
    # attention
    p["wa1"] = u((2 * H, H), 2 * H); p["ba1"] = u((1, H), 2 * H)
    p["wa2"] = u((1, H), H);         p["ba2"] = u((1, 1), H)   # (H->1) stored as row
    # stimulation head
    p["ws1"] = u((2 * H, H), 2 * H); p["bs1"] = u((1, H), 2 * H)
    p["ws2"] = u((1, H), H);         p["bs2"] = u((1, 1), H)   # (H->1) stored as row
    # type head
    p["wt1"] = u((2 * H, H), 2 * H); p["bt1"] = u((1, H), 2 * H)
    p["wt2"] = u((H, 5), H);         p["bt2"] = u((1, 5), H)
    # response head
    p["wr1"] = u((2 * H, H), 2 * H); p["br1"] = u((1, H), 2 * H)
    p["wr2"] = u((H, 6), H);         p["br2"] = u((1, 6), H)
    return p


def reference_forward(x, params):
    """Pure-JAX reference matching PyTorch eval-mode semantics (f32)."""
    B, T, D = x.shape
    H = params["whh0f"].shape[0]
    hi = jax.lax.Precision.HIGHEST

    def cell(x_t, h, c, wih, whh, b):
        g = jnp.dot(x_t, wih, precision=hi) + jnp.dot(h, whh, precision=hi) + b
        i = jax.nn.sigmoid(g[:, :H]); f = jax.nn.sigmoid(g[:, H:2 * H])
        gg = jnp.tanh(g[:, 2 * H:3 * H]); o = jax.nn.sigmoid(g[:, 3 * H:])
        c = f * c + i * gg
        return o * jnp.tanh(c), c

    def bidir(xs, wf, whf, bf, wr, whr, br):
        h = jnp.zeros((B, H)); c = jnp.zeros((B, H)); fwd = []
        for t in range(T):
            h, c = cell(xs[t], h, c, wf, whf, bf); fwd.append(h)
        h = jnp.zeros((B, H)); c = jnp.zeros((B, H)); rev = [None] * T
        for t in range(T - 1, -1, -1):
            h, c = cell(xs[t], h, c, wr, whr, br); rev[t] = h
        return [jnp.concatenate([fwd[t], rev[t]], -1) for t in range(T)]

    xs = [x[:, t, :] for t in range(T)]
    o0 = bidir(xs, params["wih0f"], params["whh0f"], params["b0f"],
               params["wih0r"], params["whh0r"], params["b0r"])
    o1 = bidir(o0, params["wih1f"], params["whh1f"], params["b1f"],
               params["wih1r"], params["whh1r"], params["b1r"])
    lstm_out = jnp.stack(o1, axis=1)                                   # (B, T, 2H)

    a = jnp.tanh(jnp.dot(lstm_out, params["wa1"], precision=hi) + params["ba1"])
    s = jnp.sum(a * params["wa2"], axis=-1, keepdims=True) + params["ba2"]
    attn = jax.nn.softmax(s, axis=1)                                   # (B, T, 1)
    context = jnp.sum(lstm_out * attn, axis=1)                         # (B, 2H)

    def hidden(ctx, w1, b1):
        return jnp.maximum(jnp.dot(ctx, w1, precision=hi) + b1, 0.0)

    hs = hidden(context, params["ws1"], params["bs1"])
    stim = jax.nn.sigmoid(jnp.sum(hs * params["ws2"], axis=1, keepdims=True)
                          + params["bs2"])
    ht = hidden(context, params["wt1"], params["bt1"])
    tlog = jnp.dot(ht, params["wt2"], precision=hi) + params["bt2"]
    hr = hidden(context, params["wr1"], params["br1"])
    resp = jnp.dot(hr, params["wr2"], precision=hi) + params["br2"]
    return stim, tlog, resp, attn


if __name__ == "__main__":
    # small shapes consistent with the module: batch=2, seq=8, input_dim=16, hidden=32
    B, T, D, H = 2, 8, 16, 32
    key = jax.random.PRNGKey(0)
    kx, kp = jax.random.split(key)
    x = jax.random.normal(kx, (B, T, D), dtype=jnp.float32)
    params = init_params(kp, D, H)

    outs = stimulation_net_forward(x, params)
    outs = jax.block_until_ready(outs)
    stim, type_logits, resp_feat, attn_w = outs

    assert stim.shape == (B, 1)
    assert type_logits.shape == (B, 5)
    assert resp_feat.shape == (B, 6)
    assert attn_w.shape == (B, T, 1)

    # Tolerance accounts for bf16 MXU operands (f32 accumulation / f32 state);
    # observed error is ~1e-3 at these shapes.
    ref = reference_forward(x, params)
    for got, want in zip(outs, ref):
        np.testing.assert_allclose(np.asarray(got), np.asarray(want),
                                   rtol=2e-2, atol=2e-2)

    print("KERNEL_OK")
</pallas_src>

<mosaic_0001>
module attributes {stable_mosaic.version = 11 : i64} {
  func.func @_stimnet_kernel(%arg0: memref<8x8x16xf32, #tpu.memory_space<vmem>>, %arg1: memref<16x256xf32, #tpu.memory_space<vmem>>, %arg2: memref<1x256xf32, #tpu.memory_space<vmem>>, %arg3: memref<32x256xf32, #tpu.memory_space<vmem>>, %arg4: memref<32x256xf32, #tpu.memory_space<vmem>>, %arg5: memref<32x256xf32, #tpu.memory_space<vmem>>, %arg6: memref<1x256xf32, #tpu.memory_space<vmem>>, %arg7: memref<32x256xf32, #tpu.memory_space<vmem>>, %arg8: memref<32x32xf32, #tpu.memory_space<vmem>>, %arg9: memref<32x32xf32, #tpu.memory_space<vmem>>, %arg10: memref<1x32xf32, #tpu.memory_space<vmem>>, %arg11: memref<1x32xf32, #tpu.memory_space<vmem>>, %arg12: memref<1x1xf32, #tpu.memory_space<vmem>>, %arg13: memref<32x96xf32, #tpu.memory_space<vmem>>, %arg14: memref<32x96xf32, #tpu.memory_space<vmem>>, %arg15: memref<1x96xf32, #tpu.memory_space<vmem>>, %arg16: memref<96x12xf32, #tpu.memory_space<vmem>>, %arg17: memref<1x12xf32, #tpu.memory_space<vmem>>, %arg18: memref<8x128xf32, #tpu.memory_space<vmem>>, %arg19: memref<8x16x128xf32, #tpu.memory_space<vmem>>, %arg20: memref<8x8x32xf32, #tpu.memory_space<vmem>>, %arg21: memref<8x8x32xf32, #tpu.memory_space<vmem>>, %arg22: memref<8x8x32xf32, #tpu.memory_space<vmem>>, %arg23: memref<8x8x32xf32, #tpu.memory_space<vmem>>) attributes {dimension_semantics = [], scalar_prefetch = 0 : i64, scratch_operands = 5 : i64, tpu.core_type = #tpu.core_type<tc>} {
    %c0 = arith.constant 0 : index
    %c0_0 = arith.constant 0 : index
    %c0_1 = arith.constant 0 : index
    %0 = vector.load %arg0[%c0, %c0_0, %c0_1] : memref<8x8x16xf32, #tpu.memory_space<vmem>>, vector<8x8x16xf32>
    %1 = vector.shape_cast %0 : vector<8x8x16xf32> to vector<64x16xf32>
    %c0_2 = arith.constant 0 : index
    %c0_3 = arith.constant 0 : index
    %2 = vector.load %arg1[%c0_2, %c0_3] : memref<16x256xf32, #tpu.memory_space<vmem>>, vector<16x256xf32>
    %3 = arith.truncf %1 : vector<64x16xf32> to vector<64x16xbf16>
    %4 = arith.truncf %2 : vector<16x256xf32> to vector<16x256xbf16>
    %cst = arith.constant dense<0.000000e+00> : vector<64x256xf32>
    %5 = tpu.matmul %3, %4, %cst {dimension_numbers = #tpu.dot_dimension_numbers<[1], [0], [0], [1], [0, 0, 1, 1], [], []>} : vector<64x16xbf16>, vector<16x256xbf16>, vector<64x256xf32> -> vector<64x256xf32>
    %c0_4 = arith.constant 0 : index
    %c0_5 = arith.constant 0 : index
    %6 = vector.load %arg2[%c0_4, %c0_5] : memref<1x256xf32, #tpu.memory_space<vmem>>, vector<1x256xf32>
    %7 = vector.broadcast %6 : vector<1x256xf32> to vector<64x256xf32>
    %8 = arith.addf %5, %7 : vector<64x256xf32>
    %9 = vector.extract_strided_slice %8 {offsets = [0, 0], sizes = [64, 128], strides = [1, 1]} : vector<64x256xf32> to vector<64x128xf32>
    %10 = vector.shape_cast %9 : vector<64x128xf32> to vector<8x8x128xf32>
    %11 = vector.extract_strided_slice %8 {offsets = [0, 128], sizes = [64, 128], strides = [1, 1]} : vector<64x256xf32> to vector<64x128xf32>
    %12 = vector.shape_cast %11 : vector<64x128xf32> to vector<8x8x128xf32>
    %c0_6 = arith.constant 0 : index
    %c0_7 = arith.constant 0 : index
    %c0_8 = arith.constant 0 : index
    %13 = vector.load %arg19[%c0_6, %c0_7, %c0_8] : memref<8x16x128xf32, #tpu.memory_space<vmem>>, vector<8x8x128xf32>
    tpu.vector_store %arg19[%c0_6, %c0_7, %c0_8], %10 {strides = array<i32>} : memref<8x16x128xf32, #tpu.memory_space<vmem>>, vector<8x8x128xf32>,
    %14 = vector.extract_strided_slice %12 {offsets = [7, 0, 0], sizes = [1, 8, 128], strides = [1, 1, 1]} : vector<8x8x128xf32> to vector<1x8x128xf32>
    %15 = vector.shape_cast %14 : vector<1x8x128xf32> to vector<8x128xf32>
    %c0_9 = arith.constant 0 : index
    %c8 = arith.constant 8 : index
    %c0_10 = arith.constant 0 : index
    %16 = vector.load %arg19[%c0_9, %c8, %c0_10] : memref<8x16x128xf32, #tpu.memory_space<vmem>>, vector<1x8x128xf32>
    %17 = vector.shape_cast %16 : vector<1x8x128xf32> to vector<8x128xf32>
    %18 = vector.shape_cast %15 : vector<8x128xf32> to vector<1x8x128xf32>
    tpu.vector_store %arg19[%c0_9, %c8, %c0_10], %18 {strides = array<i32>} : memref<8x16x128xf32, #tpu.memory_space<vmem>>, vector<1x8x128xf32>,
    %19 = vector.extract_strided_slice %12 {offsets = [6, 0, 0], sizes = [1, 8, 128], strides = [1, 1, 1]} : vector<8x8x128xf32> to vector<1x8x128xf32>
    %20 = vector.shape_cast %19 : vector<1x8x128xf32> to vector<8x128xf32>
    %c1 = arith.constant 1 : index
    %c8_11 = arith.constant 8 : index
    %c0_12 = arith.constant 0 : index
    %21 = vector.load %arg19[%c1, %c8_11, %c0_12] : memref<8x16x128xf32, #tpu.memory_space<vmem>>, vector<1x8x128xf32>
    %22 = vector.shape_cast %21 : vector<1x8x128xf32> to vector<8x128xf32>
    %23 = vector.shape_cast %20 : vector<8x128xf32> to vector<1x8x128xf32>
    tpu.vector_store %arg19[%c1, %c8_11, %c0_12], %23 {strides = array<i32>} : memref<8x16x128xf32, #tpu.memory_space<vmem>>, vector<1x8x128xf32>,
    %24 = vector.extract_strided_slice %12 {offsets = [5, 0, 0], sizes = [1, 8, 128], strides = [1, 1, 1]} : vector<8x8x128xf32> to vector<1x8x128xf32>
    %25 = vector.shape_cast %24 : vector<1x8x128xf32> to vector<8x128xf32>
    %c2 = arith.constant 2 : index
    %c8_13 = arith.constant 8 : index
    %c0_14 = arith.constant 0 : index
    %26 = vector.load %arg19[%c2, %c8_13, %c0_14] : memref<8x16x128xf32, #tpu.memory_space<vmem>>, vector<1x8x128xf32>
    %27 = vector.shape_cast %26 : vector<1x8x128xf32> to vector<8x128xf32>
    %28 = vector.shape_cast %25 : vector<8x128xf32> to vector<1x8x128xf32>
    tpu.vector_store %arg19[%c2, %c8_13, %c0_14], %28 {strides = array<i32>} : memref<8x16x128xf32, #tpu.memory_space<vmem>>, vector<1x8x128xf32>,
    %29 = vector.extract_strided_slice %12 {offsets = [4, 0, 0], sizes = [1, 8, 128], strides = [1, 1, 1]} : vector<8x8x128xf32> to vector<1x8x128xf32>
    %30 = vector.shape_cast %29 : vector<1x8x128xf32> to vector<8x128xf32>
    %c3 = arith.constant 3 : index
    %c8_15 = arith.constant 8 : index
    %c0_16 = arith.constant 0 : index
    %31 = vector.load %arg19[%c3, %c8_15, %c0_16] : memref<8x16x128xf32, #tpu.memory_space<vmem>>, vector<1x8x128xf32>
    %32 = vector.shape_cast %31 : vector<1x8x128xf32> to vector<8x128xf32>
    %33 = vector.shape_cast %30 : vector<8x128xf32> to vector<1x8x128xf32>
    tpu.vector_store %arg19[%c3, %c8_15, %c0_16], %33 {strides = array<i32>} : memref<8x16x128xf32, #tpu.memory_space<vmem>>, vector<1x8x128xf32>,
    %34 = vector.extract_strided_slice %12 {offsets = [3, 0, 0], sizes = [1, 8, 128], strides = [1, 1, 1]} : vector<8x8x128xf32> to vector<1x8x128xf32>
    %35 = vector.shape_cast %34 : vector<1x8x128xf32> to vector<8x128xf32>
    %c4 = arith.constant 4 : index
    %c8_17 = arith.constant 8 : index
    %c0_18 = arith.constant 0 : index
    %36 = vector.load %arg19[%c4, %c8_17, %c0_18] : memref<8x16x128xf32, #tpu.memory_space<vmem>>, vector<1x8x128xf32>
    %37 = vector.shape_cast %36 : vector<1x8x128xf32> to vector<8x128xf32>
    %38 = vector.shape_cast %35 : vector<8x128xf32> to vector<1x8x128xf32>
    tpu.vector_store %arg19[%c4, %c8_17, %c0_18], %38 {strides = array<i32>} : memref<8x16x128xf32, #tpu.memory_space<vmem>>, vector<1x8x128xf32>,
    %39 = vector.extract_strided_slice %12 {offsets = [2, 0, 0], sizes = [1, 8, 128], strides = [1, 1, 1]} : vector<8x8x128xf32> to vector<1x8x128xf32>
    %40 = vector.shape_cast %39 : vector<1x8x128xf32> to vector<8x128xf32>
    %c5 = arith.constant 5 : index
    %c8_19 = arith.constant 8 : index
    %c0_20 = arith.constant 0 : index
    %41 = vector.load %arg19[%c5, %c8_19, %c0_20] : memref<8x16x128xf32, #tpu.memory_space<vmem>>, vector<1x8x128xf32>
    %42 = vector.shape_cast %41 : vector<1x8x128xf32> to vector<8x128xf32>
    %43 = vector.shape_cast %40 : vector<8x128xf32> to vector<1x8x128xf32>
    tpu.vector_store %arg19[%c5, %c8_19, %c0_20], %43 {strides = array<i32>} : memref<8x16x128xf32, #tpu.memory_space<vmem>>, vector<1x8x128xf32>,
    %44 = vector.extract_strided_slice %12 {offsets = [1, 0, 0], sizes = [1, 8, 128], strides = [1, 1, 1]} : vector<8x8x128xf32> to vector<1x8x128xf32>
    %45 = vector.shape_cast %44 : vector<1x8x128xf32> to vector<8x128xf32>
    %c6 = arith.constant 6 : index
    %c8_21 = arith.constant 8 : index
    %c0_22 = arith.constant 0 : index
    %46 = vector.load %arg19[%c6, %c8_21, %c0_22] : memref<8x16x128xf32, #tpu.memory_space<vmem>>, vector<1x8x128xf32>
    %47 = vector.shape_cast %46 : vector<1x8x128xf32> to vector<8x128xf32>
    %48 = vector.shape_cast %45 : vector<8x128xf32> to vector<1x8x128xf32>
    tpu.vector_store %arg19[%c6, %c8_21, %c0_22], %48 {strides = array<i32>} : memref<8x16x128xf32, #tpu.memory_space<vmem>>, vector<1x8x128xf32>,
    %49 = vector.extract_strided_slice %12 {offsets = [0, 0, 0], sizes = [1, 8, 128], strides = [1, 1, 1]} : vector<8x8x128xf32> to vector<1x8x128xf32>
    %50 = vector.shape_cast %49 : vector<1x8x128xf32> to vector<8x128xf32>
    %c7 = arith.constant 7 : index
    %c8_23 = arith.constant 8 : index
    %c0_24 = arith.constant 0 : index
    %51 = vector.load %arg19[%c7, %c8_23, %c0_24] : memref<8x16x128xf32, #tpu.memory_space<vmem>>, vector<1x8x128xf32>
    %52 = vector.shape_cast %51 : vector<1x8x128xf32> to vector<8x128xf32>
    %53 = vector.shape_cast %50 : vector<8x128xf32> to vector<1x8x128xf32>
    tpu.vector_store %arg19[%c7, %c8_23, %c0_24], %53 {strides = array<i32>} : memref<8x16x128xf32, #tpu.memory_space<vmem>>, vector<1x8x128xf32>,
    %c0_25 = arith.constant 0 : index
    %c0_26 = arith.constant 0 : index
    %54 = vector.load %arg3[%c0_25, %c0_26] : memref<32x256xf32, #tpu.memory_space<vmem>>, vector<32x256xf32>
    %55 = arith.truncf %54 : vector<32x256xf32> to vector<32x256xbf16>
    %c0_27 = arith.constant 0 : index
    %c0_28 = arith.constant 0 : index
    %c0_29 = arith.constant 0 : index
    %56 = vector.load %arg19[%c0_27, %c0_28, %c0_29] : memref<8x16x128xf32, #tpu.memory_space<vmem>>, vector<1x16x128xf32>
    %57 = vector.shape_cast %56 : vector<1x16x128xf32> to vector<16x128xf32>
    %58 = arith.negf %57 : vector<16x128xf32>
    %59 = math.exp %58 : vector<16x128xf32>
    %cst_30 = arith.constant 1.000000e+00 : f32
    %60 = vector.broadcast %cst_30 : f32 to vector<16x128xf32>
    %61 = arith.addf %60, %59 : vector<16x128xf32>
    %62 = arith.divf %60, %61 : vector<16x128xf32>
    %63 = math.tanh %57 : vector<16x128xf32>
    %64 = vector.extract_strided_slice %62 {offsets = [0, 0], sizes = [16, 32], strides = [1, 1]} : vector<16x128xf32> to vector<16x32xf32>
    %65 = vector.extract_strided_slice %63 {offsets = [0, 64], sizes = [16, 32], strides = [1, 1]} : vector<16x128xf32> to vector<16x32xf32>
    %66 = arith.mulf %64, %65 : vector<16x32xf32>
    %67 = vector.extract_strided_slice %62 {offsets = [0, 96], sizes = [16, 32], strides = [1, 1]} : vector<16x128xf32> to vector<16x32xf32>
    %68 = math.tanh %66 : vector<16x32xf32>
    %69 = arith.mulf %67, %68 : vector<16x32xf32>
    %70 = vector.extract_strided_slice %69 {offsets = [0, 0], sizes = [8, 32], strides = [1, 1]} : vector<16x32xf32> to vector<8x32xf32>
    %c0_31 = arith.constant 0 : index
    %c0_32 = arith.constant 0 : index
    %c0_33 = arith.constant 0 : index
    %71 = vector.load %arg20[%c0_31, %c0_32, %c0_33] : memref<8x8x32xf32, #tpu.memory_space<vmem>>, vector<1x8x32xf32>
    %72 = vector.shape_cast %71 : vector<1x8x32xf32> to vector<8x32xf32>
    %73 = vector.shape_cast %70 : vector<8x32xf32> to vector<1x8x32xf32>
    tpu.vector_store %arg20[%c0_31, %c0_32, %c0_33], %73 {strides = array<i32>} : memref<8x8x32xf32, #tpu.memory_space<vmem>>, vector<1x8x32xf32>,
    %74 = vector.extract_strided_slice %69 {offsets = [8, 0], sizes = [8, 32], strides = [1, 1]} : vector<16x32xf32> to vector<8x32xf32>
    %c7_34 = arith.constant 7 : index
    %c0_35 = arith.constant 0 : index
    %c0_36 = arith.constant 0 : index
    %75 = vector.load %arg21[%c7_34, %c0_35, %c0_36] : memref<8x8x32xf32, #tpu.memory_space<vmem>>, vector<1x8x32xf32>
    %76 = vector.shape_cast %75 : vector<1x8x32xf32> to vector<8x32xf32>
    %77 = vector.shape_cast %74 : vector<8x32xf32> to vector<1x8x32xf32>
    tpu.vector_store %arg21[%c7_34, %c0_35, %c0_36], %77 {strides = array<i32>} : memref<8x8x32xf32, #tpu.memory_space<vmem>>, vector<1x8x32xf32>,
    %78 = arith.truncf %69 : vector<16x32xf32> to vector<16x32xbf16>
    %cst_37 = arith.constant dense<0.000000e+00> : vector<16x256xf32>
    %79 = tpu.matmul %78, %55, %cst_37 {dimension_numbers = #tpu.dot_dimension_numbers<[1], [0], [0], [1], [0, 0, 1, 1], [], []>} : vector<16x32xbf16>, vector<32x256xbf16>, vector<16x256xf32> -> vector<16x256xf32>
    %80 = vector.extract_strided_slice %79 {offsets = [0, 0], sizes = [8, 128], strides = [1, 1]} : vector<16x256xf32> to vector<8x128xf32>
    %81 = vector.extract_strided_slice %79 {offsets = [8, 128], sizes = [8, 128], strides = [1, 1]} : vector<16x256xf32> to vector<8x128xf32>
    %82 = tpu.concatenate %80, %81 in 0 : vector<8x128xf32>, vector<8x128xf32> -> vector<16x128xf32>
    %c1_38 = arith.constant 1 : index
    %c0_39 = arith.constant 0 : index
    %c0_40 = arith.constant 0 : index
    %83 = vector.load %arg19[%c1_38, %c0_39, %c0_40] : memref<8x16x128xf32, #tpu.memory_space<vmem>>, vector<1x16x128xf32>
    %84 = vector.shape_cast %83 : vector<1x16x128xf32> to vector<16x128xf32>
    %85 = arith.addf %84, %82 : vector<16x128xf32>
    %86 = arith.negf %85 : vector<16x128xf32>
    %87 = math.exp %86 : vector<16x128xf32>
    %cst_41 = arith.constant 1.000000e+00 : f32
    %88 = vector.broadcast %cst_41 : f32 to vector<16x128xf32>
    %89 = arith.addf %88, %87 : vector<16x128xf32>
    %90 = arith.divf %88, %89 : vector<16x128xf32>
    %91 = math.tanh %85 : vector<16x128xf32>
    %92 = vector.extract_strided_slice %90 {offsets = [0, 0], sizes = [16, 32], strides = [1, 1]} : vector<16x128xf32> to vector<16x32xf32>
    %93 = vector.extract_strided_slice %91 {offsets = [0, 64], sizes = [16, 32], strides = [1, 1]} : vector<16x128xf32> to vector<16x32xf32>
    %94 = arith.mulf %92, %93 : vector<16x32xf32>
    %95 = vector.extract_strided_slice %90 {offsets = [0, 32], sizes = [16, 32], strides = [1, 1]} : vector<16x128xf32> to vector<16x32xf32>
    %96 = arith.mulf %95, %66 : vector<16x32xf32>
    %97 = arith.addf %96, %94 : vector<16x32xf32>
    %98 = vector.extract_strided_slice %90 {offsets = [0, 96], sizes = [16, 32], strides = [1, 1]} : vector<16x128xf32> to vector<16x32xf32>
    %99 = math.tanh %97 : vector<16x32xf32>
    %100 = arith.mulf %98, %99 : vector<16x32xf32>
    %101 = vector.extract_strided_slice %100 {offsets = [0, 0], sizes = [8, 32], strides = [1, 1]} : vector<16x32xf32> to vector<8x32xf32>
    %c1_42 = arith.constant 1 : index
    %c0_43 = arith.constant 0 : index
    %c0_44 = arith.constant 0 : index
    %102 = vector.load %arg20[%c1_42, %c0_43, %c0_44] : memref<8x8x32xf32, #tpu.memory_space<vmem>>, vector<1x8x32xf32>
    %103 = vector.shape_cast %102 : vector<1x8x32xf32> to vector<8x32xf32>
    %104 = vector.shape_cast %101 : vector<8x32xf32> to vector<1x8x32xf32>
    tpu.vector_store %arg20[%c1_42, %c0_43, %c0_44], %104 {strides = array<i32>} : memref<8x8x32xf32, #tpu.memory_space<vmem>>, vector<1x8x32xf32>,
    %105 = vector.extract_strided_slice %100 {offsets = [8, 0], sizes = [8, 32], strides = [1, 1]} : vector<16x32xf32> to vector<8x32xf32>
    %c6_45 = arith.constant 6 : index
    %c0_46 = arith.constant 0 : index
    %c0_47 = arith.constant 0 : index
    %106 = vector.load %arg21[%c6_45, %c0_46, %c0_47] : memref<8x8x32xf32, #tpu.memory_space<vmem>>, vector<1x8x32xf32>
    %107 = vector.shape_cast %106 : vector<1x8x32xf32> to vector<8x32xf32>
    %108 = vector.shape_cast %105 : vector<8x32xf32> to vector<1x8x32xf32>
    tpu.vector_store %arg21[%c6_45, %c0_46, %c0_47], %108 {strides = array<i32>} : memref<8x8x32xf32, #tpu.memory_space<vmem>>, vector<1x8x32xf32>,
    %109 = arith.truncf %100 : vector<16x32xf32> to vector<16x32xbf16>
    %cst_48 = arith.constant dense<0.000000e+00> : vector<16x256xf32>
    %110 = tpu.matmul %109, %55, %cst_48 {dimension_numbers = #tpu.dot_dimension_numbers<[1], [0], [0], [1], [0, 0, 1, 1], [], []>} : vector<16x32xbf16>, vector<32x256xbf16>, vector<16x256xf32> -> vector<16x256xf32>
    %111 = vector.extract_strided_slice %110 {offsets = [0, 0], sizes = [8, 128], strides = [1, 1]} : vector<16x256xf32> to vector<8x128xf32>
    %112 = vector.extract_strided_slice %110 {offsets = [8, 128], sizes = [8, 128], strides = [1, 1]} : vector<16x256xf32> to vector<8x128xf32>
    %113 = tpu.concatenate %111, %112 in 0 : vector<8x128xf32>, vector<8x128xf32> -> vector<16x128xf32>
    %c2_49 = arith.constant 2 : index
    %c0_50 = arith.constant 0 : index
    %c0_51 = arith.constant 0 : index
    %114 = vector.load %arg19[%c2_49, %c0_50, %c0_51] : memref<8x16x128xf32, #tpu.memory_space<vmem>>, vector<1x16x128xf32>
    %115 = vector.shape_cast %114 : vector<1x16x128xf32> to vector<16x128xf32>
    %116 = arith.addf %115, %113 : vector<16x128xf32>
    %117 = arith.negf %116 : vector<16x128xf32>
    %118 = math.exp %117 : vector<16x128xf32>
    %cst_52 = arith.constant 1.000000e+00 : f32
    %119 = vector.broadcast %cst_52 : f32 to vector<16x128xf32>
    %120 = arith.addf %119, %118 : vector<16x128xf32>
    %121 = arith.divf %119, %120 : vector<16x128xf32>
    %122 = math.tanh %116 : vector<16x128xf32>
    %123 = vector.extract_strided_slice %121 {offsets = [0, 0], sizes = [16, 32], strides = [1, 1]} : vector<16x128xf32> to vector<16x32xf32>
    %124 = vector.extract_strided_slice %122 {offsets = [0, 64], sizes = [16, 32], strides = [1, 1]} : vector<16x128xf32> to vector<16x32xf32>
    %125 = arith.mulf %123, %124 : vector<16x32xf32>
    %126 = vector.extract_strided_slice %121 {offsets = [0, 32], sizes = [16, 32], strides = [1, 1]} : vector<16x128xf32> to vector<16x32xf32>
    %127 = arith.mulf %126, %97 : vector<16x32xf32>
    %128 = arith.addf %127, %125 : vector<16x32xf32>
    %129 = vector.extract_strided_slice %121 {offsets = [0, 96], sizes = [16, 32], strides = [1, 1]} : vector<16x128xf32> to vector<16x32xf32>
    %130 = math.tanh %128 : vector<16x32xf32>
    %131 = arith.mulf %129, %130 : vector<16x32xf32>
    %132 = vector.extract_strided_slice %131 {offsets = [0, 0], sizes = [8, 32], strides = [1, 1]} : vector<16x32xf32> to vector<8x32xf32>
    %c2_53 = arith.constant 2 : index
    %c0_54 = arith.constant 0 : index
    %c0_55 = arith.constant 0 : index
    %133 = vector.load %arg20[%c2_53, %c0_54, %c0_55] : memref<8x8x32xf32, #tpu.memory_space<vmem>>, vector<1x8x32xf32>
    %134 = vector.shape_cast %133 : vector<1x8x32xf32> to vector<8x32xf32>
    %135 = vector.shape_cast %132 : vector<8x32xf32> to vector<1x8x32xf32>
    tpu.vector_store %arg20[%c2_53, %c0_54, %c0_55], %135 {strides = array<i32>} : memref<8x8x32xf32, #tpu.memory_space<vmem>>, vector<1x8x32xf32>,
    %136 = vector.extract_strided_slice %131 {offsets = [8, 0], sizes = [8, 32], strides = [1, 1]} : vector<16x32xf32> to vector<8x32xf32>
    %c5_56 = arith.constant 5 : index
    %c0_57 = arith.constant 0 : index
    %c0_58 = arith.constant 0 : index
    %137 = vector.load %arg21[%c5_56, %c0_57, %c0_58] : memref<8x8x32xf32, #tpu.memory_space<vmem>>, vector<1x8x32xf32>
    %138 = vector.shape_cast %137 : vector<1x8x32xf32> to vector<8x32xf32>
    %139 = vector.shape_cast %136 : vector<8x32xf32> to vector<1x8x32xf32>
    tpu.vector_store %arg21[%c5_56, %c0_57, %c0_58], %139 {strides = array<i32>} : memref<8x8x32xf32, #tpu.memory_space<vmem>>, vector<1x8x32xf32>,
    %140 = arith.truncf %131 : vector<16x32xf32> to vector<16x32xbf16>
    %cst_59 = arith.constant dense<0.000000e+00> : vector<16x256xf32>
    %141 = tpu.matmul %140, %55, %cst_59 {dimension_numbers = #tpu.dot_dimension_numbers<[1], [0], [0], [1], [0, 0, 1, 1], [], []>} : vector<16x32xbf16>, vector<32x256xbf16>, vector<16x256xf32> -> vector<16x256xf32>
    %142 = vector.extract_strided_slice %141 {offsets = [0, 0], sizes = [8, 128], strides = [1, 1]} : vector<16x256xf32> to vector<8x128xf32>
    %143 = vector.extract_strided_slice %141 {offsets = [8, 128], sizes = [8, 128], strides = [1, 1]} : vector<16x256xf32> to vector<8x128xf32>
    %144 = tpu.concatenate %142, %143 in 0 : vector<8x128xf32>, vector<8x128xf32> -> vector<16x128xf32>
    %c3_60 = arith.constant 3 : index
    %c0_61 = arith.constant 0 : index
    %c0_62 = arith.constant 0 : index
    %145 = vector.load %arg19[%c3_60, %c0_61, %c0_62] : memref<8x16x128xf32, #tpu.memory_space<vmem>>, vector<1x16x128xf32>
    %146 = vector.shape_cast %145 : vector<1x16x128xf32> to vector<16x128xf32>
    %147 = arith.addf %146, %144 : vector<16x128xf32>
    %148 = arith.negf %147 : vector<16x128xf32>
    %149 = math.exp %148 : vector<16x128xf32>
    %cst_63 = arith.constant 1.000000e+00 : f32
    %150 = vector.broadcast %cst_63 : f32 to vector<16x128xf32>
    %151 = arith.addf %150, %149 : vector<16x128xf32>
    %152 = arith.divf %150, %151 : vector<16x128xf32>
    %153 = math.tanh %147 : vector<16x128xf32>
    %154 = vector.extract_strided_slice %152 {offsets = [0, 0], sizes = [16, 32], strides = [1, 1]} : vector<16x128xf32> to vector<16x32xf32>
    %155 = vector.extract_strided_slice %153 {offsets = [0, 64], sizes = [16, 32], strides = [1, 1]} : vector<16x128xf32> to vector<16x32xf32>
    %156 = arith.mulf %154, %155 : vector<16x32xf32>
    %157 = vector.extract_strided_slice %152 {offsets = [0, 32], sizes = [16, 32], strides = [1, 1]} : vector<16x128xf32> to vector<16x32xf32>
    %158 = arith.mulf %157, %128 : vector<16x32xf32>
    %159 = arith.addf %158, %156 : vector<16x32xf32>
    %160 = vector.extract_strided_slice %152 {offsets = [0, 96], sizes = [16, 32], strides = [1, 1]} : vector<16x128xf32> to vector<16x32xf32>
    %161 = math.tanh %159 : vector<16x32xf32>
    %162 = arith.mulf %160, %161 : vector<16x32xf32>
    %163 = vector.extract_strided_slice %162 {offsets = [0, 0], sizes = [8, 32], strides = [1, 1]} : vector<16x32xf32> to vector<8x32xf32>
    %c3_64 = arith.constant 3 : index
    %c0_65 = arith.constant 0 : index
    %c0_66 = arith.constant 0 : index
    %164 = vector.load %arg20[%c3_64, %c0_65, %c0_66] : memref<8x8x32xf32, #tpu.memory_space<vmem>>, vector<1x8x32xf32>
    %165 = vector.shape_cast %164 : vector<1x8x32xf32> to vector<8x32xf32>
    %166 = vector.shape_cast %163 : vector<8x32xf32> to vector<1x8x32xf32>
    tpu.vector_store %arg20[%c3_64, %c0_65, %c0_66], %166 {strides = array<i32>} : memref<8x8x32xf32, #tpu.memory_space<vmem>>, vector<1x8x32xf32>,
    %167 = vector.extract_strided_slice %162 {offsets = [8, 0], sizes = [8, 32], strides = [1, 1]} : vector<16x32xf32> to vector<8x32xf32>
    %c4_67 = arith.constant 4 : index
    %c0_68 = arith.constant 0 : index
    %c0_69 = arith.constant 0 : index
    %168 = vector.load %arg21[%c4_67, %c0_68, %c0_69] : memref<8x8x32xf32, #tpu.memory_space<vmem>>, vector<1x8x32xf32>
    %169 = vector.shape_cast %168 : vector<1x8x32xf32> to vector<8x32xf32>
    %170 = vector.shape_cast %167 : vector<8x32xf32> to vector<1x8x32xf32>
    tpu.vector_store %arg21[%c4_67, %c0_68, %c0_69], %170 {strides = array<i32>} : memref<8x8x32xf32, #tpu.memory_space<vmem>>, vector<1x8x32xf32>,
    %171 = arith.truncf %162 : vector<16x32xf32> to vector<16x32xbf16>
    %cst_70 = arith.constant dense<0.000000e+00> : vector<16x256xf32>
    %172 = tpu.matmul %171, %55, %cst_70 {dimension_numbers = #tpu.dot_dimension_numbers<[1], [0], [0], [1], [0, 0, 1, 1], [], []>} : vector<16x32xbf16>, vector<32x256xbf16>, vector<16x256xf32> -> vector<16x256xf32>
    %173 = vector.extract_strided_slice %172 {offsets = [0, 0], sizes = [8, 128], strides = [1, 1]} : vector<16x256xf32> to vector<8x128xf32>
    %174 = vector.extract_strided_slice %172 {offsets = [8, 128], sizes = [8, 128], strides = [1, 1]} : vector<16x256xf32> to vector<8x128xf32>
    %175 = tpu.concatenate %173, %174 in 0 : vector<8x128xf32>, vector<8x128xf32> -> vector<16x128xf32>
    %c4_71 = arith.constant 4 : index
    %c0_72 = arith.constant 0 : index
    %c0_73 = arith.constant 0 : index
    %176 = vector.load %arg19[%c4_71, %c0_72, %c0_73] : memref<8x16x128xf32, #tpu.memory_space<vmem>>, vector<1x16x128xf32>
    %177 = vector.shape_cast %176 : vector<1x16x128xf32> to vector<16x128xf32>
    %178 = arith.addf %177, %175 : vector<16x128xf32>
    %179 = arith.negf %178 : vector<16x128xf32>
    %180 = math.exp %179 : vector<16x128xf32>
    %cst_74 = arith.constant 1.000000e+00 : f32
    %181 = vector.broadcast %cst_74 : f32 to vector<16x128xf32>
    %182 = arith.addf %181, %180 : vector<16x128xf32>
    %183 = arith.divf %181, %182 : vector<16x128xf32>
    %184 = math.tanh %178 : vector<16x128xf32>
    %185 = vector.extract_strided_slice %183 {offsets = [0, 0], sizes = [16, 32], strides = [1, 1]} : vector<16x128xf32> to vector<16x32xf32>
    %186 = vector.extract_strided_slice %184 {offsets = [0, 64], sizes = [16, 32], strides = [1, 1]} : vector<16x128xf32> to vector<16x32xf32>
    %187 = arith.mulf %185, %186 : vector<16x32xf32>
    %188 = vector.extract_strided_slice %183 {offsets = [0, 32], sizes = [16, 32], strides = [1, 1]} : vector<16x128xf32> to vector<16x32xf32>
    %189 = arith.mulf %188, %159 : vector<16x32xf32>
    %190 = arith.addf %189, %187 : vector<16x32xf32>
    %191 = vector.extract_strided_slice %183 {offsets = [0, 96], sizes = [16, 32], strides = [1, 1]} : vector<16x128xf32> to vector<16x32xf32>
    %192 = math.tanh %190 : vector<16x32xf32>
    %193 = arith.mulf %191, %192 : vector<16x32xf32>
    %194 = vector.extract_strided_slice %193 {offsets = [0, 0], sizes = [8, 32], strides = [1, 1]} : vector<16x32xf32> to vector<8x32xf32>
    %c4_75 = arith.constant 4 : index
    %c0_76 = arith.constant 0 : index
    %c0_77 = arith.constant 0 : index
    %195 = vector.load %arg20[%c4_75, %c0_76, %c0_77] : memref<8x8x32xf32, #tpu.memory_space<vmem>>, vector<1x8x32xf32>
    %196 = vector.shape_cast %195 : vector<1x8x32xf32> to vector<8x32xf32>
    %197 = vector.shape_cast %194 : vector<8x32xf32> to vector<1x8x32xf32>
    tpu.vector_store %arg20[%c4_75, %c0_76, %c0_77], %197 {strides = array<i32>} : memref<8x8x32xf32, #tpu.memory_space<vmem>>, vector<1x8x32xf32>,
    %198 = vector.extract_strided_slice %193 {offsets = [8, 0], sizes = [8, 32], strides = [1, 1]} : vector<16x32xf32> to vector<8x32xf32>
    %c3_78 = arith.constant 3 : index
    %c0_79 = arith.constant 0 : index
    %c0_80 = arith.constant 0 : index
    %199 = vector.load %arg21[%c3_78, %c0_79, %c0_80] : memref<8x8x32xf32, #tpu.memory_space<vmem>>, vector<1x8x32xf32>
    %200 = vector.shape_cast %199 : vector<1x8x32xf32> to vector<8x32xf32>
    %201 = vector.shape_cast %198 : vector<8x32xf32> to vector<1x8x32xf32>
    tpu.vector_store %arg21[%c3_78, %c0_79, %c0_80], %201 {strides = array<i32>} : memref<8x8x32xf32, #tpu.memory_space<vmem>>, vector<1x8x32xf32>,
    %202 = arith.truncf %193 : vector<16x32xf32> to vector<16x32xbf16>
    %cst_81 = arith.constant dense<0.000000e+00> : vector<16x256xf32>
    %203 = tpu.matmul %202, %55, %cst_81 {dimension_numbers = #tpu.dot_dimension_numbers<[1], [0], [0], [1], [0, 0, 1, 1], [], []>} : vector<16x32xbf16>, vector<32x256xbf16>, vector<16x256xf32> -> vector<16x256xf32>
    %204 = vector.extract_strided_slice %203 {offsets = [0, 0], sizes = [8, 128], strides = [1, 1]} : vector<16x256xf32> to vector<8x128xf32>
    %205 = vector.extract_strided_slice %203 {offsets = [8, 128], sizes = [8, 128], strides = [1, 1]} : vector<16x256xf32> to vector<8x128xf32>
    %206 = tpu.concatenate %204, %205 in 0 : vector<8x128xf32>, vector<8x128xf32> -> vector<16x128xf32>
    %c5_82 = arith.constant 5 : index
    %c0_83 = arith.constant 0 : index
    %c0_84 = arith.constant 0 : index
    %207 = vector.load %arg19[%c5_82, %c0_83, %c0_84] : memref<8x16x128xf32, #tpu.memory_space<vmem>>, vector<1x16x128xf32>
    %208 = vector.shape_cast %207 : vector<1x16x128xf32> to vector<16x128xf32>
    %209 = arith.addf %208, %206 : vector<16x128xf32>
    %210 = arith.negf %209 : vector<16x128xf32>
    %211 = math.exp %210 : vector<16x128xf32>
    %cst_85 = arith.constant 1.000000e+00 : f32
    %212 = vector.broadcast %cst_85 : f32 to vector<16x128xf32>
    %213 = arith.addf %212, %211 : vector<16x128xf32>
    %214 = arith.divf %212, %213 : vector<16x128xf32>
    %215 = math.tanh %209 : vector<16x128xf32>
    %216 = vector.extract_strided_slice %214 {offsets = [0, 0], sizes = [16, 32], strides = [1, 1]} : vector<16x128xf32> to vector<16x32xf32>
    %217 = vector.extract_strided_slice %215 {offsets = [0, 64], sizes = [16, 32], strides = [1, 1]} : vector<16x128xf32> to vector<16x32xf32>
    %218 = arith.mulf %216, %217 : vector<16x32xf32>
    %219 = vector.extract_strided_slice %214 {offsets = [0, 32], sizes = [16, 32], strides = [1, 1]} : vector<16x128xf32> to vector<16x32xf32>
    %220 = arith.mulf %219, %190 : vector<16x32xf32>
    %221 = arith.addf %220, %218 : vector<16x32xf32>
    %222 = vector.extract_strided_slice %214 {offsets = [0, 96], sizes = [16, 32], strides = [1, 1]} : vector<16x128xf32> to vector<16x32xf32>
    %223 = math.tanh %221 : vector<16x32xf32>
    %224 = arith.mulf %222, %223 : vector<16x32xf32>
    %225 = vector.extract_strided_slice %224 {offsets = [0, 0], sizes = [8, 32], strides = [1, 1]} : vector<16x32xf32> to vector<8x32xf32>
    %c5_86 = arith.constant 5 : index
    %c0_87 = arith.constant 0 : index
    %c0_88 = arith.constant 0 : index
    %226 = vector.load %arg20[%c5_86, %c0_87, %c0_88] : memref<8x8x32xf32, #tpu.memory_space<vmem>>, vector<1x8x32xf32>
    %227 = vector.shape_cast %226 : vector<1x8x32xf32> to vector<8x32xf32>
    %228 = vector.shape_cast %225 : vector<8x32xf32> to vector<1x8x32xf32>
    tpu.vector_store %arg20[%c5_86, %c0_87, %c0_88], %228 {strides = array<i32>} : memref<8x8x32xf32, #tpu.memory_space<vmem>>, vector<1x8x32xf32>,
    %229 = vector.extract_strided_slice %224 {offsets = [8, 0], sizes = [8, 32], strides = [1, 1]} : vector<16x32xf32> to vector<8x32xf32>
    %c2_89 = arith.constant 2 : index
    %c0_90 = arith.constant 0 : index
    %c0_91 = arith.constant 0 : index
    %230 = vector.load %arg21[%c2_89, %c0_90, %c0_91] : memref<8x8x32xf32, #tpu.memory_space<vmem>>, vector<1x8x32xf32>
    %231 = vector.shape_cast %230 : vector<1x8x32xf32> to vector<8x32xf32>
    %232 = vector.shape_cast %229 : vector<8x32xf32> to vector<1x8x32xf32>
    tpu.vector_store %arg21[%c2_89, %c0_90, %c0_91], %232 {strides = array<i32>} : memref<8x8x32xf32, #tpu.memory_space<vmem>>, vector<1x8x32xf32>,
    %233 = arith.truncf %224 : vector<16x32xf32> to vector<16x32xbf16>
    %cst_92 = arith.constant dense<0.000000e+00> : vector<16x256xf32>
    %234 = tpu.matmul %233, %55, %cst_92 {dimension_numbers = #tpu.dot_dimension_numbers<[1], [0], [0], [1], [0, 0, 1, 1], [], []>} : vector<16x32xbf16>, vector<32x256xbf16>, vector<16x256xf32> -> vector<16x256xf32>
    %235 = vector.extract_strided_slice %234 {offsets = [0, 0], sizes = [8, 128], strides = [1, 1]} : vector<16x256xf32> to vector<8x128xf32>
    %236 = vector.extract_strided_slice %234 {offsets = [8, 128], sizes = [8, 128], strides = [1, 1]} : vector<16x256xf32> to vector<8x128xf32>
    %237 = tpu.concatenate %235, %236 in 0 : vector<8x128xf32>, vector<8x128xf32> -> vector<16x128xf32>
    %c6_93 = arith.constant 6 : index
    %c0_94 = arith.constant 0 : index
    %c0_95 = arith.constant 0 : index
    %238 = vector.load %arg19[%c6_93, %c0_94, %c0_95] : memref<8x16x128xf32, #tpu.memory_space<vmem>>, vector<1x16x128xf32>
    %239 = vector.shape_cast %238 : vector<1x16x128xf32> to vector<16x128xf32>
    %240 = arith.addf %239, %237 : vector<16x128xf32>
    %241 = arith.negf %240 : vector<16x128xf32>
    %242 = math.exp %241 : vector<16x128xf32>
    %cst_96 = arith.constant 1.000000e+00 : f32
    %243 = vector.broadcast %cst_96 : f32 to vector<16x128xf32>
    %244 = arith.addf %243, %242 : vector<16x128xf32>
    %245 = arith.divf %243, %244 : vector<16x128xf32>
    %246 = math.tanh %240 : vector<16x128xf32>
    %247 = vector.extract_strided_slice %245 {offsets = [0, 0], sizes = [16, 32], strides = [1, 1]} : vector<16x128xf32> to vector<16x32xf32>
    %248 = vector.extract_strided_slice %246 {offsets = [0, 64], sizes = [16, 32], strides = [1, 1]} : vector<16x128xf32> to vector<16x32xf32>
    %249 = arith.mulf %247, %248 : vector<16x32xf32>
    %250 = vector.extract_strided_slice %245 {offsets = [0, 32], sizes = [16, 32], strides = [1, 1]} : vector<16x128xf32> to vector<16x32xf32>
    %251 = arith.mulf %250, %221 : vector<16x32xf32>
    %252 = arith.addf %251, %249 : vector<16x32xf32>
    %253 = vector.extract_strided_slice %245 {offsets = [0, 96], sizes = [16, 32], strides = [1, 1]} : vector<16x128xf32> to vector<16x32xf32>
    %254 = math.tanh %252 : vector<16x32xf32>
    %255 = arith.mulf %253, %254 : vector<16x32xf32>
    %256 = vector.extract_strided_slice %255 {offsets = [0, 0], sizes = [8, 32], strides = [1, 1]} : vector<16x32xf32> to vector<8x32xf32>
    %c6_97 = arith.constant 6 : index
    %c0_98 = arith.constant 0 : index
    %c0_99 = arith.constant 0 : index
    %257 = vector.load %arg20[%c6_97, %c0_98, %c0_99] : memref<8x8x32xf32, #tpu.memory_space<vmem>>, vector<1x8x32xf32>
    %258 = vector.shape_cast %257 : vector<1x8x32xf32> to vector<8x32xf32>
    %259 = vector.shape_cast %256 : vector<8x32xf32> to vector<1x8x32xf32>
    tpu.vector_store %arg20[%c6_97, %c0_98, %c0_99], %259 {strides = array<i32>} : memref<8x8x32xf32, #tpu.memory_space<vmem>>, vector<1x8x32xf32>,
    %260 = vector.extract_strided_slice %255 {offsets = [8, 0], sizes = [8, 32], strides = [1, 1]} : vector<16x32xf32> to vector<8x32xf32>
    %c1_100 = arith.constant 1 : index
    %c0_101 = arith.constant 0 : index
    %c0_102 = arith.constant 0 : index
    %261 = vector.load %arg21[%c1_100, %c0_101, %c0_102] : memref<8x8x32xf32, #tpu.memory_space<vmem>>, vector<1x8x32xf32>
    %262 = vector.shape_cast %261 : vector<1x8x32xf32> to vector<8x32xf32>
    %263 = vector.shape_cast %260 : vector<8x32xf32> to vector<1x8x32xf32>
    tpu.vector_store %arg21[%c1_100, %c0_101, %c0_102], %263 {strides = array<i32>} : memref<8x8x32xf32, #tpu.memory_space<vmem>>, vector<1x8x32xf32>,
    %264 = arith.truncf %255 : vector<16x32xf32> to vector<16x32xbf16>
    %cst_103 = arith.constant dense<0.000000e+00> : vector<16x256xf32>
    %265 = tpu.matmul %264, %55, %cst_103 {dimension_numbers = #tpu.dot_dimension_numbers<[1], [0], [0], [1], [0, 0, 1, 1], [], []>} : vector<16x32xbf16>, vector<32x256xbf16>, vector<16x256xf32> -> vector<16x256xf32>
    %266 = vector.extract_strided_slice %265 {offsets = [0, 0], sizes = [8, 128], strides = [1, 1]} : vector<16x256xf32> to vector<8x128xf32>
    %267 = vector.extract_strided_slice %265 {offsets = [8, 128], sizes = [8, 128], strides = [1, 1]} : vector<16x256xf32> to vector<8x128xf32>
    %268 = tpu.concatenate %266, %267 in 0 : vector<8x128xf32>, vector<8x128xf32> -> vector<16x128xf32>
    %c7_104 = arith.constant 7 : index
    %c0_105 = arith.constant 0 : index
    %c0_106 = arith.constant 0 : index
    %269 = vector.load %arg19[%c7_104, %c0_105, %c0_106] : memref<8x16x128xf32, #tpu.memory_space<vmem>>, vector<1x16x128xf32>
    %270 = vector.shape_cast %269 : vector<1x16x128xf32> to vector<16x128xf32>
    %271 = arith.addf %270, %268 : vector<16x128xf32>
    %272 = arith.negf %271 : vector<16x128xf32>
    %273 = math.exp %272 : vector<16x128xf32>
    %cst_107 = arith.constant 1.000000e+00 : f32
    %274 = vector.broadcast %cst_107 : f32 to vector<16x128xf32>
    %275 = arith.addf %274, %273 : vector<16x128xf32>
    %276 = arith.divf %274, %275 : vector<16x128xf32>
    %277 = math.tanh %271 : vector<16x128xf32>
    %278 = vector.extract_strided_slice %276 {offsets = [0, 0], sizes = [16, 32], strides = [1, 1]} : vector<16x128xf32> to vector<16x32xf32>
    %279 = vector.extract_strided_slice %277 {offsets = [0, 64], sizes = [16, 32], strides = [1, 1]} : vector<16x128xf32> to vector<16x32xf32>
    %280 = arith.mulf %278, %279 : vector<16x32xf32>
    %281 = vector.extract_strided_slice %276 {offsets = [0, 32], sizes = [16, 32], strides = [1, 1]} : vector<16x128xf32> to vector<16x32xf32>
    %282 = arith.mulf %281, %252 : vector<16x32xf32>
    %283 = arith.addf %282, %280 : vector<16x32xf32>
    %284 = vector.extract_strided_slice %276 {offsets = [0, 96], sizes = [16, 32], strides = [1, 1]} : vector<16x128xf32> to vector<16x32xf32>
    %285 = math.tanh %283 : vector<16x32xf32>
    %286 = arith.mulf %284, %285 : vector<16x32xf32>
    %287 = vector.extract_strided_slice %286 {offsets = [0, 0], sizes = [8, 32], strides = [1, 1]} : vector<16x32xf32> to vector<8x32xf32>
    %c7_108 = arith.constant 7 : index
    %c0_109 = arith.constant 0 : index
    %c0_110 = arith.constant 0 : index
    %288 = vector.load %arg20[%c7_108, %c0_109, %c0_110] : memref<8x8x32xf32, #tpu.memory_space<vmem>>, vector<1x8x32xf32>
    %289 = vector.shape_cast %288 : vector<1x8x32xf32> to vector<8x32xf32>
    %290 = vector.shape_cast %287 : vector<8x32xf32> to vector<1x8x32xf32>
    tpu.vector_store %arg20[%c7_108, %c0_109, %c0_110], %290 {strides = array<i32>} : memref<8x8x32xf32, #tpu.memory_space<vmem>>, vector<1x8x32xf32>,
    %291 = vector.extract_strided_slice %286 {offsets = [8, 0], sizes = [8, 32], strides = [1, 1]} : vector<16x32xf32> to vector<8x32xf32>
    %c0_111 = arith.constant 0 : index
    %c0_112 = arith.constant 0 : index
    %c0_113 = arith.constant 0 : index
    %292 = vector.load %arg21[%c0_111, %c0_112, %c0_113] : memref<8x8x32xf32, #tpu.memory_space<vmem>>, vector<1x8x32xf32>
    %293 = vector.shape_cast %292 : vector<1x8x32xf32> to vector<8x32xf32>
    %294 = vector.shape_cast %291 : vector<8x32xf32> to vector<1x8x32xf32>
    tpu.vector_store %arg21[%c0_111, %c0_112, %c0_113], %294 {strides = array<i32>} : memref<8x8x32xf32, #tpu.memory_space<vmem>>, vector<1x8x32xf32>,
    %c0_114 = arith.constant 0 : index
    %c0_115 = arith.constant 0 : index
    %c0_116 = arith.constant 0 : index
    %295 = vector.load %arg20[%c0_114, %c0_115, %c0_116] : memref<8x8x32xf32, #tpu.memory_space<vmem>>, vector<8x8x32xf32>
    %296 = vector.shape_cast %295 : vector<8x8x32xf32> to vector<64x32xf32>
    %c0_117 = arith.constant 0 : index
    %c0_118 = arith.constant 0 : index
    %c0_119 = arith.constant 0 : index
    %297 = vector.load %arg21[%c0_117, %c0_118, %c0_119] : memref<8x8x32xf32, #tpu.memory_space<vmem>>, vector<8x8x32xf32>
    %298 = vector.shape_cast %297 : vector<8x8x32xf32> to vector<64x32xf32>
    %c0_120 = arith.constant 0 : index
    %c0_121 = arith.constant 0 : index
    %299 = vector.load %arg4[%c0_120, %c0_121] : memref<32x256xf32, #tpu.memory_space<vmem>>, vector<32x256xf32>
    %300 = arith.truncf %296 : vector<64x32xf32> to vector<64x32xbf16>
    %301 = arith.truncf %299 : vector<32x256xf32> to vector<32x256xbf16>
    %cst_122 = arith.constant dense<0.000000e+00> : vector<64x256xf32>
    %302 = tpu.matmul %300, %301, %cst_122 {dimension_numbers = #tpu.dot_dimension_numbers<[1], [0], [0], [1], [0, 0, 1, 1], [], []>} : vector<64x32xbf16>, vector<32x256xbf16>, vector<64x256xf32> -> vector<64x256xf32>
    %c0_123 = arith.constant 0 : index
    %c0_124 = arith.constant 0 : index
    %303 = vector.load %arg5[%c0_123, %c0_124] : memref<32x256xf32, #tpu.memory_space<vmem>>, vector<32x256xf32>
    %304 = arith.truncf %298 : vector<64x32xf32> to vector<64x32xbf16>
    %305 = arith.truncf %303 : vector<32x256xf32> to vector<32x256xbf16>
    %cst_125 = arith.constant dense<0.000000e+00> : vector<64x256xf32>
    %306 = tpu.matmul %304, %305, %cst_125 {dimension_numbers = #tpu.dot_dimension_numbers<[1], [0], [0], [1], [0, 0, 1, 1], [], []>} : vector<64x32xbf16>, vector<32x256xbf16>, vector<64x256xf32> -> vector<64x256xf32>
    %307 = arith.addf %302, %306 : vector<64x256xf32>
    %c0_126 = arith.constant 0 : index
    %c0_127 = arith.constant 0 : index
    %308 = vector.load %arg6[%c0_126, %c0_127] : memref<1x256xf32, #tpu.memory_space<vmem>>, vector<1x256xf32>
    %309 = vector.broadcast %308 : vector<1x256xf32> to vector<64x256xf32>
    %310 = arith.addf %307, %309 : vector<64x256xf32>
    %311 = vector.extract_strided_slice %310 {offsets = [0, 0], sizes = [64, 128], strides = [1, 1]} : vector<64x256xf32> to vector<64x128xf32>
    %312 = vector.shape_cast %311 : vector<64x128xf32> to vector<8x8x128xf32>
    %313 = vector.extract_strided_slice %310 {offsets = [0, 128], sizes = [64, 128], strides = [1, 1]} : vector<64x256xf32> to vector<64x128xf32>
    %314 = vector.shape_cast %313 : vector<64x128xf32> to vector<8x8x128xf32>
    %c0_128 = arith.constant 0 : index
    %c0_129 = arith.constant 0 : index
    %c0_130 = arith.constant 0 : index
    %315 = vector.load %arg19[%c0_128, %c0_129, %c0_130] : memref<8x16x128xf32, #tpu.memory_space<vmem>>, vector<8x8x128xf32>
    tpu.vector_store %arg19[%c0_128, %c0_129, %c0_130], %312 {strides = array<i32>} : memref<8x16x128xf32, #tpu.memory_space<vmem>>, vector<8x8x128xf32>,
    %316 = vector.extract_strided_slice %314 {offsets = [7, 0, 0], sizes = [1, 8, 128], strides = [1, 1, 1]} : vector<8x8x128xf32> to vector<1x8x128xf32>
    %317 = vector.shape_cast %316 : vector<1x8x128xf32> to vector<8x128xf32>
    %c0_131 = arith.constant 0 : index
    %c8_132 = arith.constant 8 : index
    %c0_133 = arith.constant 0 : index
    %318 = vector.load %arg19[%c0_131, %c8_132, %c0_133] : memref<8x16x128xf32, #tpu.memory_space<vmem>>, vector<1x8x128xf32>
    %319 = vector.shape_cast %318 : vector<1x8x128xf32> to vector<8x128xf32>
    %320 = vector.shape_cast %317 : vector<8x128xf32> to vector<1x8x128xf32>
    tpu.vector_store %arg19[%c0_131, %c8_132, %c0_133], %320 {strides = array<i32>} : memref<8x16x128xf32, #tpu.memory_space<vmem>>, vector<1x8x128xf32>,
    %321 = vector.extract_strided_slice %314 {offsets = [6, 0, 0], sizes = [1, 8, 128], strides = [1, 1, 1]} : vector<8x8x128xf32> to vector<1x8x128xf32>
    %322 = vector.shape_cast %321 : vector<1x8x128xf32> to vector<8x128xf32>
    %c1_134 = arith.constant 1 : index
    %c8_135 = arith.constant 8 : index
    %c0_136 = arith.constant 0 : index
    %323 = vector.load %arg19[%c1_134, %c8_135, %c0_136] : memref<8x16x128xf32, #tpu.memory_space<vmem>>, vector<1x8x128xf32>
    %324 = vector.shape_cast %323 : vector<1x8x128xf32> to vector<8x128xf32>
    %325 = vector.shape_cast %322 : vector<8x128xf32> to vector<1x8x128xf32>
    tpu.vector_store %arg19[%c1_134, %c8_135, %c0_136], %325 {strides = array<i32>} : memref<8x16x128xf32, #tpu.memory_space<vmem>>, vector<1x8x128xf32>,
    %326 = vector.extract_strided_slice %314 {offsets = [5, 0, 0], sizes = [1, 8, 128], strides = [1, 1, 1]} : vector<8x8x128xf32> to vector<1x8x128xf32>
    %327 = vector.shape_cast %326 : vector<1x8x128xf32> to vector<8x128xf32>
    %c2_137 = arith.constant 2 : index
    %c8_138 = arith.constant 8 : index
    %c0_139 = arith.constant 0 : index
    %328 = vector.load %arg19[%c2_137, %c8_138, %c0_139] : memref<8x16x128xf32, #tpu.memory_space<vmem>>, vector<1x8x128xf32>
    %329 = vector.shape_cast %328 : vector<1x8x128xf32> to vector<8x128xf32>
    %330 = vector.shape_cast %327 : vector<8x128xf32> to vector<1x8x128xf32>
    tpu.vector_store %arg19[%c2_137, %c8_138, %c0_139], %330 {strides = array<i32>} : memref<8x16x128xf32, #tpu.memory_space<vmem>>, vector<1x8x128xf32>,
    %331 = vector.extract_strided_slice %314 {offsets = [4, 0, 0], sizes = [1, 8, 128], strides = [1, 1, 1]} : vector<8x8x128xf32> to vector<1x8x128xf32>
    %332 = vector.shape_cast %331 : vector<1x8x128xf32> to vector<8x128xf32>
    %c3_140 = arith.constant 3 : index
    %c8_141 = arith.constant 8 : index
    %c0_142 = arith.constant 0 : index
    %333 = vector.load %arg19[%c3_140, %c8_141, %c0_142] : memref<8x16x128xf32, #tpu.memory_space<vmem>>, vector<1x8x128xf32>
    %334 = vector.shape_cast %333 : vector<1x8x128xf32> to vector<8x128xf32>
    %335 = vector.shape_cast %332 : vector<8x128xf32> to vector<1x8x128xf32>
    tpu.vector_store %arg19[%c3_140, %c8_141, %c0_142], %335 {strides = array<i32>} : memref<8x16x128xf32, #tpu.memory_space<vmem>>, vector<1x8x128xf32>,
    %336 = vector.extract_strided_slice %314 {offsets = [3, 0, 0], sizes = [1, 8, 128], strides = [1, 1, 1]} : vector<8x8x128xf32> to vector<1x8x128xf32>
    %337 = vector.shape_cast %336 : vector<1x8x128xf32> to vector<8x128xf32>
    %c4_143 = arith.constant 4 : index
    %c8_144 = arith.constant 8 : index
    %c0_145 = arith.constant 0 : index
    %338 = vector.load %arg19[%c4_143, %c8_144, %c0_145] : memref<8x16x128xf32, #tpu.memory_space<vmem>>, vector<1x8x128xf32>
    %339 = vector.shape_cast %338 : vector<1x8x128xf32> to vector<8x128xf32>
    %340 = vector.shape_cast %337 : vector<8x128xf32> to vector<1x8x128xf32>
    tpu.vector_store %arg19[%c4_143, %c8_144, %c0_145], %340 {strides = array<i32>} : memref<8x16x128xf32, #tpu.memory_space<vmem>>, vector<1x8x128xf32>,
    %341 = vector.extract_strided_slice %314 {offsets = [2, 0, 0], sizes = [1, 8, 128], strides = [1, 1, 1]} : vector<8x8x128xf32> to vector<1x8x128xf32>
    %342 = vector.shape_cast %341 : vector<1x8x128xf32> to vector<8x128xf32>
    %c5_146 = arith.constant 5 : index
    %c8_147 = arith.constant 8 : index
    %c0_148 = arith.constant 0 : index
    %343 = vector.load %arg19[%c5_146, %c8_147, %c0_148] : memref<8x16x128xf32, #tpu.memory_space<vmem>>, vector<1x8x128xf32>
    %344 = vector.shape_cast %343 : vector<1x8x128xf32> to vector<8x128xf32>
    %345 = vector.shape_cast %342 : vector<8x128xf32> to vector<1x8x128xf32>
    tpu.vector_store %arg19[%c5_146, %c8_147, %c0_148], %345 {strides = array<i32>} : memref<8x16x128xf32, #tpu.memory_space<vmem>>, vector<1x8x128xf32>,
    %346 = vector.extract_strided_slice %314 {offsets = [1, 0, 0], sizes = [1, 8, 128], strides = [1, 1, 1]} : vector<8x8x128xf32> to vector<1x8x128xf32>
    %347 = vector.shape_cast %346 : vector<1x8x128xf32> to vector<8x128xf32>
    %c6_149 = arith.constant 6 : index
    %c8_150 = arith.constant 8 : index
    %c0_151 = arith.constant 0 : index
    %348 = vector.load %arg19[%c6_149, %c8_150, %c0_151] : memref<8x16x128xf32, #tpu.memory_space<vmem>>, vector<1x8x128xf32>
    %349 = vector.shape_cast %348 : vector<1x8x128xf32> to vector<8x128xf32>
    %350 = vector.shape_cast %347 : vector<8x128xf32> to vector<1x8x128xf32>
    tpu.vector_store %arg19[%c6_149, %c8_150, %c0_151], %350 {strides = array<i32>} : memref<8x16x128xf32, #tpu.memory_space<vmem>>, vector<1x8x128xf32>,
    %351 = vector.extract_strided_slice %314 {offsets = [0, 0, 0], sizes = [1, 8, 128], strides = [1, 1, 1]} : vector<8x8x128xf32> to vector<1x8x128xf32>
    %352 = vector.shape_cast %351 : vector<1x8x128xf32> to vector<8x128xf32>
    %c7_152 = arith.constant 7 : index
    %c8_153 = arith.constant 8 : index
    %c0_154 = arith.constant 0 : index
    %353 = vector.load %arg19[%c7_152, %c8_153, %c0_154] : memref<8x16x128xf32, #tpu.memory_space<vmem>>, vector<1x8x128xf32>
    %354 = vector.shape_cast %353 : vector<1x8x128xf32> to vector<8x128xf32>
    %355 = vector.shape_cast %352 : vector<8x128xf32> to vector<1x8x128xf32>
    tpu.vector_store %arg19[%c7_152, %c8_153, %c0_154], %355 {strides = array<i32>} : memref<8x16x128xf32, #tpu.memory_space<vmem>>, vector<1x8x128xf32>,
    %c0_155 = arith.constant 0 : index
    %c0_156 = arith.constant 0 : index
    %356 = vector.load %arg7[%c0_155, %c0_156] : memref<32x256xf32, #tpu.memory_space<vmem>>, vector<32x256xf32>
    %357 = arith.truncf %356 : vector<32x256xf32> to vector<32x256xbf16>
    %c0_157 = arith.constant 0 : index
    %c0_158 = arith.constant 0 : index
    %c0_159 = arith.constant 0 : index
    %358 = vector.load %arg19[%c0_157, %c0_158, %c0_159] : memref<8x16x128xf32, #tpu.memory_space<vmem>>, vector<1x16x128xf32>
    %359 = vector.shape_cast %358 : vector<1x16x128xf32> to vector<16x128xf32>
    %360 = arith.negf %359 : vector<16x128xf32>
    %361 = math.exp %360 : vector<16x128xf32>
    %cst_160 = arith.constant 1.000000e+00 : f32
    %362 = vector.broadcast %cst_160 : f32 to vector<16x128xf32>
    %363 = arith.addf %362, %361 : vector<16x128xf32>
    %364 = arith.divf %362, %363 : vector<16x128xf32>
    %365 = math.tanh %359 : vector<16x128xf32>
    %366 = vector.extract_strided_slice %364 {offsets = [0, 0], sizes = [16, 32], strides = [1, 1]} : vector<16x128xf32> to vector<16x32xf32>
    %367 = vector.extract_strided_slice %365 {offsets = [0, 64], sizes = [16, 32], strides = [1, 1]} : vector<16x128xf32> to vector<16x32xf32>
    %368 = arith.mulf %366, %367 : vector<16x32xf32>
    %369 = vector.extract_strided_slice %364 {offsets = [0, 96], sizes = [16, 32], strides = [1, 1]} : vector<16x128xf32> to vector<16x32xf32>
    %370 = math.tanh %368 : vector<16x32xf32>
    %371 = arith.mulf %369, %370 : vector<16x32xf32>
    %372 = vector.extract_strided_slice %371 {offsets = [0, 0], sizes = [8, 32], strides = [1, 1]} : vector<16x32xf32> to vector<8x32xf32>
    %c0_161 = arith.constant 0 : index
    %c0_162 = arith.constant 0 : index
    %c0_163 = arith.constant 0 : index
    %373 = vector.load %arg22[%c0_161, %c0_162, %c0_163] : memref<8x8x32xf32, #tpu.memory_space<vmem>>, vector<1x8x32xf32>
    %374 = vector.shape_cast %373 : vector<1x8x32xf32> to vector<8x32xf32>
    %375 = vector.shape_cast %372 : vector<8x32xf32> to vector<1x8x32xf32>
    tpu.vector_store %arg22[%c0_161, %c0_162, %c0_163], %375 {strides = array<i32>} : memref<8x8x32xf32, #tpu.memory_space<vmem>>, vector<1x8x32xf32>,
    %376 = vector.extract_strided_slice %371 {offsets = [8, 0], sizes = [8, 32], strides = [1, 1]} : vector<16x32xf32> to vector<8x32xf32>
    %c7_164 = arith.constant 7 : index
    %c0_165 = arith.constant 0 : index
    %c0_166 = arith.constant 0 : index
    %377 = vector.load %arg23[%c7_164, %c0_165, %c0_166] : memref<8x8x32xf32, #tpu.memory_space<vmem>>, vector<1x8x32xf32>
    %378 = vector.shape_cast %377 : vector<1x8x32xf32> to vector<8x32xf32>
    %379 = vector.shape_cast %376 : vector<8x32xf32> to vector<1x8x32xf32>
    tpu.vector_store %arg23[%c7_164, %c0_165, %c0_166], %379 {strides = array<i32>} : memref<8x8x32xf32, #tpu.memory_space<vmem>>, vector<1x8x32xf32>,
    %380 = arith.truncf %371 : vector<16x32xf32> to vector<16x32xbf16>
    %cst_167 = arith.constant dense<0.000000e+00> : vector<16x256xf32>
    %381 = tpu.matmul %380, %357, %cst_167 {dimension_numbers = #tpu.dot_dimension_numbers<[1], [0], [0], [1], [0, 0, 1, 1], [], []>} : vector<16x32xbf16>, vector<32x256xbf16>, vector<16x256xf32> -> vector<16x256xf32>
    %382 = vector.extract_strided_slice %381 {offsets = [0, 0], sizes = [8, 128], strides = [1, 1]} : vector<16x256xf32> to vector<8x128xf32>
    %383 = vector.extract_strided_slice %381 {offsets = [8, 128], sizes = [8, 128], strides = [1, 1]} : vector<16x256xf32> to vector<8x128xf32>
    %384 = tpu.concatenate %382, %383 in 0 : vector<8x128xf32>, vector<8x128xf32> -> vector<16x128xf32>
    %c1_168 = arith.constant 1 : index
    %c0_169 = arith.constant 0 : index
    %c0_170 = arith.constant 0 : index
    %385 = vector.load %arg19[%c1_168, %c0_169, %c0_170] : memref<8x16x128xf32, #tpu.memory_space<vmem>>, vector<1x16x128xf32>
    %386 = vector.shape_cast %385 : vector<1x16x128xf32> to vector<16x128xf32>
    %387 = arith.addf %386, %384 : vector<16x128xf32>
    %388 = arith.negf %387 : vector<16x128xf32>
    %389 = math.exp %388 : vector<16x128xf32>
    %cst_171 = arith.constant 1.000000e+00 : f32
    %390 = vector.broadcast %cst_171 : f32 to vector<16x128xf32>
    %391 = arith.addf %390, %389 : vector<16x128xf32>
    %392 = arith.divf %390, %391 : vector<16x128xf32>
    %393 = math.tanh %387 : vector<16x128xf32>
    %394 = vector.extract_strided_slice %392 {offsets = [0, 0], sizes = [16, 32], strides = [1, 1]} : vector<16x128xf32> to vector<16x32xf32>
    %395 = vector.extract_strided_slice %393 {offsets = [0, 64], sizes = [16, 32], strides = [1, 1]} : vector<16x128xf32> to vector<16x32xf32>
    %396 = arith.mulf %394, %395 : vector<16x32xf32>
    %397 = vector.extract_strided_slice %392 {offsets = [0, 32], sizes = [16, 32], strides = [1, 1]} : vector<16x128xf32> to vector<16x32xf32>
    %398 = arith.mulf %397, %368 : vector<16x32xf32>
    %399 = arith.addf %398, %396 : vector<16x32xf32>
    %400 = vector.extract_strided_slice %392 {offsets = [0, 96], sizes = [16, 32], strides = [1, 1]} : vector<16x128xf32> to vector<16x32xf32>
    %401 = math.tanh %399 : vector<16x32xf32>
    %402 = arith.mulf %400, %401 : vector<16x32xf32>
    %403 = vector.extract_strided_slice %402 {offsets = [0, 0], sizes = [8, 32], strides = [1, 1]} : vector<16x32xf32> to vector<8x32xf32>
    %c1_172 = arith.constant 1 : index
    %c0_173 = arith.constant 0 : index
    %c0_174 = arith.constant 0 : index
    %404 = vector.load %arg22[%c1_172, %c0_173, %c0_174] : memref<8x8x32xf32, #tpu.memory_space<vmem>>, vector<1x8x32xf32>
    %405 = vector.shape_cast %404 : vector<1x8x32xf32> to vector<8x32xf32>
    %406 = vector.shape_cast %403 : vector<8x32xf32> to vector<1x8x32xf32>
    tpu.vector_store %arg22[%c1_172, %c0_173, %c0_174], %406 {strides = array<i32>} : memref<8x8x32xf32, #tpu.memory_space<vmem>>, vector<1x8x32xf32>,
    %407 = vector.extract_strided_slice %402 {offsets = [8, 0], sizes = [8, 32], strides = [1, 1]} : vector<16x32xf32> to vector<8x32xf32>
    %c6_175 = arith.constant 6 : index
    %c0_176 = arith.constant 0 : index
    %c0_177 = arith.constant 0 : index
    %408 = vector.load %arg23[%c6_175, %c0_176, %c0_177] : memref<8x8x32xf32, #tpu.memory_space<vmem>>, vector<1x8x32xf32>
    %409 = vector.shape_cast %408 : vector<1x8x32xf32> to vector<8x32xf32>
    %410 = vector.shape_cast %407 : vector<8x32xf32> to vector<1x8x32xf32>
    tpu.vector_store %arg23[%c6_175, %c0_176, %c0_177], %410 {strides = array<i32>} : memref<8x8x32xf32, #tpu.memory_space<vmem>>, vector<1x8x32xf32>,
    %411 = arith.truncf %402 : vector<16x32xf32> to vector<16x32xbf16>
    %cst_178 = arith.constant dense<0.000000e+00> : vector<16x256xf32>
    %412 = tpu.matmul %411, %357, %cst_178 {dimension_numbers = #tpu.dot_dimension_numbers<[1], [0], [0], [1], [0, 0, 1, 1], [], []>} : vector<16x32xbf16>, vector<32x256xbf16>, vector<16x256xf32> -> vector<16x256xf32>
    %413 = vector.extract_strided_slice %412 {offsets = [0, 0], sizes = [8, 128], strides = [1, 1]} : vector<16x256xf32> to vector<8x128xf32>
    %414 = vector.extract_strided_slice %412 {offsets = [8, 128], sizes = [8, 128], strides = [1, 1]} : vector<16x256xf32> to vector<8x128xf32>
    %415 = tpu.concatenate %413, %414 in 0 : vector<8x128xf32>, vector<8x128xf32> -> vector<16x128xf32>
    %c2_179 = arith.constant 2 : index
    %c0_180 = arith.constant 0 : index
    %c0_181 = arith.constant 0 : index
    %416 = vector.load %arg19[%c2_179, %c0_180, %c0_181] : memref<8x16x128xf32, #tpu.memory_space<vmem>>, vector<1x16x128xf32>
    %417 = vector.shape_cast %416 : vector<1x16x128xf32> to vector<16x128xf32>
    %418 = arith.addf %417, %415 : vector<16x128xf32>
    %419 = arith.negf %418 : vector<16x128xf32>
    %420 = math.exp %419 : vector<16x128xf32>
    %cst_182 = arith.constant 1.000000e+00 : f32
    %421 = vector.broadcast %cst_182 : f32 to vector<16x128xf32>
    %422 = arith.addf %421, %420 : vector<16x128xf32>
    %423 = arith.divf %421, %422 : vector<16x128xf32>
    %424 = math.tanh %418 : vector<16x128xf32>
    %425 = vector.extract_strided_slice %423 {offsets = [0, 0], sizes = [16, 32], strides = [1, 1]} : vector<16x128xf32> to vector<16x32xf32>
    %426 = vector.extract_strided_slice %424 {offsets = [0, 64], sizes = [16, 32], strides = [1, 1]} : vector<16x128xf32> to vector<16x32xf32>
    %427 = arith.mulf %425, %426 : vector<16x32xf32>
    %428 = vector.extract_strided_slice %423 {offsets = [0, 32], sizes = [16, 32], strides = [1, 1]} : vector<16x128xf32> to vector<16x32xf32>
    %429 = arith.mulf %428, %399 : vector<16x32xf32>
    %430 = arith.addf %429, %427 : vector<16x32xf32>
    %431 = vector.extract_strided_slice %423 {offsets = [0, 96], sizes = [16, 32], strides = [1, 1]} : vector<16x128xf32> to vector<16x32xf32>
    %432 = math.tanh %430 : vector<16x32xf32>
    %433 = arith.mulf %431, %432 : vector<16x32xf32>
    %434 = vector.extract_strided_slice %433 {offsets = [0, 0], sizes = [8, 32], strides = [1, 1]} : vector<16x32xf32> to vector<8x32xf32>
    %c2_183 = arith.constant 2 : index
    %c0_184 = arith.constant 0 : index
    %c0_185 = arith.constant 0 : index
    %435 = vector.load %arg22[%c2_183, %c0_184, %c0_185] : memref<8x8x32xf32, #tpu.memory_space<vmem>>, vector<1x8x32xf32>
    %436 = vector.shape_cast %435 : vector<1x8x32xf32> to vector<8x32xf32>
    %437 = vector.shape_cast %434 : vector<8x32xf32> to vector<1x8x32xf32>
    tpu.vector_store %arg22[%c2_183, %c0_184, %c0_185], %437 {strides = array<i32>} : memref<8x8x32xf32, #tpu.memory_space<vmem>>, vector<1x8x32xf32>,
    %438 = vector.extract_strided_slice %433 {offsets = [8, 0], sizes = [8, 32], strides = [1, 1]} : vector<16x32xf32> to vector<8x32xf32>
    %c5_186 = arith.constant 5 : index
    %c0_187 = arith.constant 0 : index
    %c0_188 = arith.constant 0 : index
    %439 = vector.load %arg23[%c5_186, %c0_187, %c0_188] : memref<8x8x32xf32, #tpu.memory_space<vmem>>, vector<1x8x32xf32>
    %440 = vector.shape_cast %439 : vector<1x8x32xf32> to vector<8x32xf32>
    %441 = vector.shape_cast %438 : vector<8x32xf32> to vector<1x8x32xf32>
    tpu.vector_store %arg23[%c5_186, %c0_187, %c0_188], %441 {strides = array<i32>} : memref<8x8x32xf32, #tpu.memory_space<vmem>>, vector<1x8x32xf32>,
    %442 = arith.truncf %433 : vector<16x32xf32> to vector<16x32xbf16>
    %cst_189 = arith.constant dense<0.000000e+00> : vector<16x256xf32>
    %443 = tpu.matmul %442, %357, %cst_189 {dimension_numbers = #tpu.dot_dimension_numbers<[1], [0], [0], [1], [0, 0, 1, 1], [], []>} : vector<16x32xbf16>, vector<32x256xbf16>, vector<16x256xf32> -> vector<16x256xf32>
    %444 = vector.extract_strided_slice %443 {offsets = [0, 0], sizes = [8, 128], strides = [1, 1]} : vector<16x256xf32> to vector<8x128xf32>
    %445 = vector.extract_strided_slice %443 {offsets = [8, 128], sizes = [8, 128], strides = [1, 1]} : vector<16x256xf32> to vector<8x128xf32>
    %446 = tpu.concatenate %444, %445 in 0 : vector<8x128xf32>, vector<8x128xf32> -> vector<16x128xf32>
    %c3_190 = arith.constant 3 : index
    %c0_191 = arith.constant 0 : index
    %c0_192 = arith.constant 0 : index
    %447 = vector.load %arg19[%c3_190, %c0_191, %c0_192] : memref<8x16x128xf32, #tpu.memory_space<vmem>>, vector<1x16x128xf32>
    %448 = vector.shape_cast %447 : vector<1x16x128xf32> to vector<16x128xf32>
    %449 = arith.addf %448, %446 : vector<16x128xf32>
    %450 = arith.negf %449 : vector<16x128xf32>
    %451 = math.exp %450 : vector<16x128xf32>
    %cst_193 = arith.constant 1.000000e+00 : f32
    %452 = vector.broadcast %cst_193 : f32 to vector<16x128xf32>
    %453 = arith.addf %452, %451 : vector<16x128xf32>
    %454 = arith.divf %452, %453 : vector<16x128xf32>
    %455 = math.tanh %449 : vector<16x128xf32>
    %456 = vector.extract_strided_slice %454 {offsets = [0, 0], sizes = [16, 32], strides = [1, 1]} : vector<16x128xf32> to vector<16x32xf32>
    %457 = vector.extract_strided_slice %455 {offsets = [0, 64], sizes = [16, 32], strides = [1, 1]} : vector<16x128xf32> to vector<16x32xf32>
    %458 = arith.mulf %456, %457 : vector<16x32xf32>
    %459 = vector.extract_strided_slice %454 {offsets = [0, 32], sizes = [16, 32], strides = [1, 1]} : vector<16x128xf32> to vector<16x32xf32>
    %460 = arith.mulf %459, %430 : vector<16x32xf32>
    %461 = arith.addf %460, %458 : vector<16x32xf32>
    %462 = vector.extract_strided_slice %454 {offsets = [0, 96], sizes = [16, 32], strides = [1, 1]} : vector<16x128xf32> to vector<16x32xf32>
    %463 = math.tanh %461 : vector<16x32xf32>
    %464 = arith.mulf %462, %463 : vector<16x32xf32>
    %465 = vector.extract_strided_slice %464 {offsets = [0, 0], sizes = [8, 32], strides = [1, 1]} : vector<16x32xf32> to vector<8x32xf32>
    %c3_194 = arith.constant 3 : index
    %c0_195 = arith.constant 0 : index
    %c0_196 = arith.constant 0 : index
    %466 = vector.load %arg22[%c3_194, %c0_195, %c0_196] : memref<8x8x32xf32, #tpu.memory_space<vmem>>, vector<1x8x32xf32>
    %467 = vector.shape_cast %466 : vector<1x8x32xf32> to vector<8x32xf32>
    %468 = vector.shape_cast %465 : vector<8x32xf32> to vector<1x8x32xf32>
    tpu.vector_store %arg22[%c3_194, %c0_195, %c0_196], %468 {strides = array<i32>} : memref<8x8x32xf32, #tpu.memory_space<vmem>>, vector<1x8x32xf32>,
    %469 = vector.extract_strided_slice %464 {offsets = [8, 0], sizes = [8, 32], strides = [1, 1]} : vector<16x32xf32> to vector<8x32xf32>
    %c4_197 = arith.constant 4 : index
    %c0_198 = arith.constant 0 : index
    %c0_199 = arith.constant 0 : index
    %470 = vector.load %arg23[%c4_197, %c0_198, %c0_199] : memref<8x8x32xf32, #tpu.memory_space<vmem>>, vector<1x8x32xf32>
    %471 = vector.shape_cast %470 : vector<1x8x32xf32> to vector<8x32xf32>
    %472 = vector.shape_cast %469 : vector<8x32xf32> to vector<1x8x32xf32>
    tpu.vector_store %arg23[%c4_197, %c0_198, %c0_199], %472 {strides = array<i32>} : memref<8x8x32xf32, #tpu.memory_space<vmem>>, vector<1x8x32xf32>,
    %473 = arith.truncf %464 : vector<16x32xf32> to vector<16x32xbf16>
    %cst_200 = arith.constant dense<0.000000e+00> : vector<16x256xf32>
    %474 = tpu.matmul %473, %357, %cst_200 {dimension_numbers = #tpu.dot_dimension_numbers<[1], [0], [0], [1], [0, 0, 1, 1], [], []>} : vector<16x32xbf16>, vector<32x256xbf16>, vector<16x256xf32> -> vector<16x256xf32>
    %475 = vector.extract_strided_slice %474 {offsets = [0, 0], sizes = [8, 128], strides = [1, 1]} : vector<16x256xf32> to vector<8x128xf32>
    %476 = vector.extract_strided_slice %474 {offsets = [8, 128], sizes = [8, 128], strides = [1, 1]} : vector<16x256xf32> to vector<8x128xf32>
    %477 = tpu.concatenate %475, %476 in 0 : vector<8x128xf32>, vector<8x128xf32> -> vector<16x128xf32>
    %c4_201 = arith.constant 4 : index
    %c0_202 = arith.constant 0 : index
    %c0_203 = arith.constant 0 : index
    %478 = vector.load %arg19[%c4_201, %c0_202, %c0_203] : memref<8x16x128xf32, #tpu.memory_space<vmem>>, vector<1x16x128xf32>
    %479 = vector.shape_cast %478 : vector<1x16x128xf32> to vector<16x128xf32>
    %480 = arith.addf %479, %477 : vector<16x128xf32>
    %481 = arith.negf %480 : vector<16x128xf32>
    %482 = math.exp %481 : vector<16x128xf32>
    %cst_204 = arith.constant 1.000000e+00 : f32
    %483 = vector.broadcast %cst_204 : f32 to vector<16x128xf32>
    %484 = arith.addf %483, %482 : vector<16x128xf32>
    %485 = arith.divf %483, %484 : vector<16x128xf32>
    %486 = math.tanh %480 : vector<16x128xf32>
    %487 = vector.extract_strided_slice %485 {offsets = [0, 0], sizes = [16, 32], strides = [1, 1]} : vector<16x128xf32> to vector<16x32xf32>
    %488 = vector.extract_strided_slice %486 {offsets = [0, 64], sizes = [16, 32], strides = [1, 1]} : vector<16x128xf32> to vector<16x32xf32>
    %489 = arith.mulf %487, %488 : vector<16x32xf32>
    %490 = vector.extract_strided_slice %485 {offsets = [0, 32], sizes = [16, 32], strides = [1, 1]} : vector<16x128xf32> to vector<16x32xf32>
    %491 = arith.mulf %490, %461 : vector<16x32xf32>
    %492 = arith.addf %491, %489 : vector<16x32xf32>
    %493 = vector.extract_strided_slice %485 {offsets = [0, 96], sizes = [16, 32], strides = [1, 1]} : vector<16x128xf32> to vector<16x32xf32>
    %494 = math.tanh %492 : vector<16x32xf32>
    %495 = arith.mulf %493, %494 : vector<16x32xf32>
    %496 = vector.extract_strided_slice %495 {offsets = [0, 0], sizes = [8, 32], strides = [1, 1]} : vector<16x32xf32> to vector<8x32xf32>
    %c4_205 = arith.constant 4 : index
    %c0_206 = arith.constant 0 : index
    %c0_207 = arith.constant 0 : index
    %497 = vector.load %arg22[%c4_205, %c0_206, %c0_207] : memref<8x8x32xf32, #tpu.memory_space<vmem>>, vector<1x8x32xf32>
    %498 = vector.shape_cast %497 : vector<1x8x32xf32> to vector<8x32xf32>
    %499 = vector.shape_cast %496 : vector<8x32xf32> to vector<1x8x32xf32>
    tpu.vector_store %arg22[%c4_205, %c0_206, %c0_207], %499 {strides = array<i32>} : memref<8x8x32xf32, #tpu.memory_space<vmem>>, vector<1x8x32xf32>,
    %500 = vector.extract_strided_slice %495 {offsets = [8, 0], sizes = [8, 32], strides = [1, 1]} : vector<16x32xf32> to vector<8x32xf32>
    %c3_208 = arith.constant 3 : index
    %c0_209 = arith.constant 0 : index
    %c0_210 = arith.constant 0 : index
    %501 = vector.load %arg23[%c3_208, %c0_209, %c0_210] : memref<8x8x32xf32, #tpu.memory_space<vmem>>, vector<1x8x32xf32>
    %502 = vector.shape_cast %501 : vector<1x8x32xf32> to vector<8x32xf32>
    %503 = vector.shape_cast %500 : vector<8x32xf32> to vector<1x8x32xf32>
    tpu.vector_store %arg23[%c3_208, %c0_209, %c0_210], %503 {strides = array<i32>} : memref<8x8x32xf32, #tpu.memory_space<vmem>>, vector<1x8x32xf32>,
    %504 = arith.truncf %495 : vector<16x32xf32> to vector<16x32xbf16>
    %cst_211 = arith.constant dense<0.000000e+00> : vector<16x256xf32>
    %505 = tpu.matmul %504, %357, %cst_211 {dimension_numbers = #tpu.dot_dimension_numbers<[1], [0], [0], [1], [0, 0, 1, 1], [], []>} : vector<16x32xbf16>, vector<32x256xbf16>, vector<16x256xf32> -> vector<16x256xf32>
    %506 = vector.extract_strided_slice %505 {offsets = [0, 0], sizes = [8, 128], strides = [1, 1]} : vector<16x256xf32> to vector<8x128xf32>
    %507 = vector.extract_strided_slice %505 {offsets = [8, 128], sizes = [8, 128], strides = [1, 1]} : vector<16x256xf32> to vector<8x128xf32>
    %508 = tpu.concatenate %506, %507 in 0 : vector<8x128xf32>, vector<8x128xf32> -> vector<16x128xf32>
    %c5_212 = arith.constant 5 : index
    %c0_213 = arith.constant 0 : index
    %c0_214 = arith.constant 0 : index
    %509 = vector.load %arg19[%c5_212, %c0_213, %c0_214] : memref<8x16x128xf32, #tpu.memory_space<vmem>>, vector<1x16x128xf32>
    %510 = vector.shape_cast %509 : vector<1x16x128xf32> to vector<16x128xf32>
    %511 = arith.addf %510, %508 : vector<16x128xf32>
    %512 = arith.negf %511 : vector<16x128xf32>
    %513 = math.exp %512 : vector<16x128xf32>
    %cst_215 = arith.constant 1.000000e+00 : f32
    %514 = vector.broadcast %cst_215 : f32 to vector<16x128xf32>
    %515 = arith.addf %514, %513 : vector<16x128xf32>
    %516 = arith.divf %514, %515 : vector<16x128xf32>
    %517 = math.tanh %511 : vector<16x128xf32>
    %518 = vector.extract_strided_slice %516 {offsets = [0, 0], sizes = [16, 32], strides = [1, 1]} : vector<16x128xf32> to vector<16x32xf32>
    %519 = vector.extract_strided_slice %517 {offsets = [0, 64], sizes = [16, 32], strides = [1, 1]} : vector<16x128xf32> to vector<16x32xf32>
    %520 = arith.mulf %518, %519 : vector<16x32xf32>
    %521 = vector.extract_strided_slice %516 {offsets = [0, 32], sizes = [16, 32], strides = [1, 1]} : vector<16x128xf32> to vector<16x32xf32>
    %522 = arith.mulf %521, %492 : vector<16x32xf32>
    %523 = arith.addf %522, %520 : vector<16x32xf32>
    %524 = vector.extract_strided_slice %516 {offsets = [0, 96], sizes = [16, 32], strides = [1, 1]} : vector<16x128xf32> to vector<16x32xf32>
    %525 = math.tanh %523 : vector<16x32xf32>
    %526 = arith.mulf %524, %525 : vector<16x32xf32>
    %527 = vector.extract_strided_slice %526 {offsets = [0, 0], sizes = [8, 32], strides = [1, 1]} : vector<16x32xf32> to vector<8x32xf32>
    %c5_216 = arith.constant 5 : index
    %c0_217 = arith.constant 0 : index
    %c0_218 = arith.constant 0 : index
    %528 = vector.load %arg22[%c5_216, %c0_217, %c0_218] : memref<8x8x32xf32, #tpu.memory_space<vmem>>, vector<1x8x32xf32>
    %529 = vector.shape_cast %528 : vector<1x8x32xf32> to vector<8x32xf32>
    %530 = vector.shape_cast %527 : vector<8x32xf32> to vector<1x8x32xf32>
    tpu.vector_store %arg22[%c5_216, %c0_217, %c0_218], %530 {strides = array<i32>} : memref<8x8x32xf32, #tpu.memory_space<vmem>>, vector<1x8x32xf32>,
    %531 = vector.extract_strided_slice %526 {offsets = [8, 0], sizes = [8, 32], strides = [1, 1]} : vector<16x32xf32> to vector<8x32xf32>
    %c2_219 = arith.constant 2 : index
    %c0_220 = arith.constant 0 : index
    %c0_221 = arith.constant 0 : index
    %532 = vector.load %arg23[%c2_219, %c0_220, %c0_221] : memref<8x8x32xf32, #tpu.memory_space<vmem>>, vector<1x8x32xf32>
    %533 = vector.shape_cast %532 : vector<1x8x32xf32> to vector<8x32xf32>
    %534 = vector.shape_cast %531 : vector<8x32xf32> to vector<1x8x32xf32>
    tpu.vector_store %arg23[%c2_219, %c0_220, %c0_221], %534 {strides = array<i32>} : memref<8x8x32xf32, #tpu.memory_space<vmem>>, vector<1x8x32xf32>,
    %535 = arith.truncf %526 : vector<16x32xf32> to vector<16x32xbf16>
    %cst_222 = arith.constant dense<0.000000e+00> : vector<16x256xf32>
    %536 = tpu.matmul %535, %357, %cst_222 {dimension_numbers = #tpu.dot_dimension_numbers<[1], [0], [0], [1], [0, 0, 1, 1], [], []>} : vector<16x32xbf16>, vector<32x256xbf16>, vector<16x256xf32> -> vector<16x256xf32>
    %537 = vector.extract_strided_slice %536 {offsets = [0, 0], sizes = [8, 128], strides = [1, 1]} : vector<16x256xf32> to vector<8x128xf32>
    %538 = vector.extract_strided_slice %536 {offsets = [8, 128], sizes = [8, 128], strides = [1, 1]} : vector<16x256xf32> to vector<8x128xf32>
    %539 = tpu.concatenate %537, %538 in 0 : vector<8x128xf32>, vector<8x128xf32> -> vector<16x128xf32>
    %c6_223 = arith.constant 6 : index
    %c0_224 = arith.constant 0 : index
    %c0_225 = arith.constant 0 : index
    %540 = vector.load %arg19[%c6_223, %c0_224, %c0_225] : memref<8x16x128xf32, #tpu.memory_space<vmem>>, vector<1x16x128xf32>
    %541 = vector.shape_cast %540 : vector<1x16x128xf32> to vector<16x128xf32>
    %542 = arith.addf %541, %539 : vector<16x128xf32>
    %543 = arith.negf %542 : vector<16x128xf32>
    %544 = math.exp %543 : vector<16x128xf32>
    %cst_226 = arith.constant 1.000000e+00 : f32
    %545 = vector.broadcast %cst_226 : f32 to vector<16x128xf32>
    %546 = arith.addf %545, %544 : vector<16x128xf32>
    %547 = arith.divf %545, %546 : vector<16x128xf32>
    %548 = math.tanh %542 : vector<16x128xf32>
    %549 = vector.extract_strided_slice %547 {offsets = [0, 0], sizes = [16, 32], strides = [1, 1]} : vector<16x128xf32> to vector<16x32xf32>
    %550 = vector.extract_strided_slice %548 {offsets = [0, 64], sizes = [16, 32], strides = [1, 1]} : vector<16x128xf32> to vector<16x32xf32>
    %551 = arith.mulf %549, %550 : vector<16x32xf32>
    %552 = vector.extract_strided_slice %547 {offsets = [0, 32], sizes = [16, 32], strides = [1, 1]} : vector<16x128xf32> to vector<16x32xf32>
    %553 = arith.mulf %552, %523 : vector<16x32xf32>
    %554 = arith.addf %553, %551 : vector<16x32xf32>
    %555 = vector.extract_strided_slice %547 {offsets = [0, 96], sizes = [16, 32], strides = [1, 1]} : vector<16x128xf32> to vector<16x32xf32>
    %556 = math.tanh %554 : vector<16x32xf32>
    %557 = arith.mulf %555, %556 : vector<16x32xf32>
    %558 = vector.extract_strided_slice %557 {offsets = [0, 0], sizes = [8, 32], strides = [1, 1]} : vector<16x32xf32> to vector<8x32xf32>
    %c6_227 = arith.constant 6 : index
    %c0_228 = arith.constant 0 : index
    %c0_229 = arith.constant 0 : index
    %559 = vector.load %arg22[%c6_227, %c0_228, %c0_229] : memref<8x8x32xf32, #tpu.memory_space<vmem>>, vector<1x8x32xf32>
    %560 = vector.shape_cast %559 : vector<1x8x32xf32> to vector<8x32xf32>
    %561 = vector.shape_cast %558 : vector<8x32xf32> to vector<1x8x32xf32>
    tpu.vector_store %arg22[%c6_227, %c0_228, %c0_229], %561 {strides = array<i32>} : memref<8x8x32xf32, #tpu.memory_space<vmem>>, vector<1x8x32xf32>,
    %562 = vector.extract_strided_slice %557 {offsets = [8, 0], sizes = [8, 32], strides = [1, 1]} : vector<16x32xf32> to vector<8x32xf32>
    %c1_230 = arith.constant 1 : index
    %c0_231 = arith.constant 0 : index
    %c0_232 = arith.constant 0 : index
    %563 = vector.load %arg23[%c1_230, %c0_231, %c0_232] : memref<8x8x32xf32, #tpu.memory_space<vmem>>, vector<1x8x32xf32>
    %564 = vector.shape_cast %563 : vector<1x8x32xf32> to vector<8x32xf32>
    %565 = vector.shape_cast %562 : vector<8x32xf32> to vector<1x8x32xf32>
    tpu.vector_store %arg23[%c1_230, %c0_231, %c0_232], %565 {strides = array<i32>} : memref<8x8x32xf32, #tpu.memory_space<vmem>>, vector<1x8x32xf32>,
    %566 = arith.truncf %557 : vector<16x32xf32> to vector<16x32xbf16>
    %cst_233 = arith.constant dense<0.000000e+00> : vector<16x256xf32>
    %567 = tpu.matmul %566, %357, %cst_233 {dimension_numbers = #tpu.dot_dimension_numbers<[1], [0], [0], [1], [0, 0, 1, 1], [], []>} : vector<16x32xbf16>, vector<32x256xbf16>, vector<16x256xf32> -> vector<16x256xf32>
    %568 = vector.extract_strided_slice %567 {offsets = [0, 0], sizes = [8, 128], strides = [1, 1]} : vector<16x256xf32> to vector<8x128xf32>
    %569 = vector.extract_strided_slice %567 {offsets = [8, 128], sizes = [8, 128], strides = [1, 1]} : vector<16x256xf32> to vector<8x128xf32>
    %570 = tpu.concatenate %568, %569 in 0 : vector<8x128xf32>, vector<8x128xf32> -> vector<16x128xf32>
    %c7_234 = arith.constant 7 : index
    %c0_235 = arith.constant 0 : index
    %c0_236 = arith.constant 0 : index
    %571 = vector.load %arg19[%c7_234, %c0_235, %c0_236] : memref<8x16x128xf32, #tpu.memory_space<vmem>>, vector<1x16x128xf32>
    %572 = vector.shape_cast %571 : vector<1x16x128xf32> to vector<16x128xf32>
    %573 = arith.addf %572, %570 : vector<16x128xf32>
    %574 = arith.negf %573 : vector<16x128xf32>
    %575 = math.exp %574 : vector<16x128xf32>
    %cst_237 = arith.constant 1.000000e+00 : f32
    %576 = vector.broadcast %cst_237 : f32 to vector<16x128xf32>
    %577 = arith.addf %576, %575 : vector<16x128xf32>
    %578 = arith.divf %576, %577 : vector<16x128xf32>
    %579 = math.tanh %573 : vector<16x128xf32>
    %580 = vector.extract_strided_slice %578 {offsets = [0, 0], sizes = [16, 32], strides = [1, 1]} : vector<16x128xf32> to vector<16x32xf32>
    %581 = vector.extract_strided_slice %579 {offsets = [0, 64], sizes = [16, 32], strides = [1, 1]} : vector<16x128xf32> to vector<16x32xf32>
    %582 = arith.mulf %580, %581 : vector<16x32xf32>
    %583 = vector.extract_strided_slice %578 {offsets = [0, 32], sizes = [16, 32], strides = [1, 1]} : vector<16x128xf32> to vector<16x32xf32>
    %584 = arith.mulf %583, %554 : vector<16x32xf32>
    %585 = arith.addf %584, %582 : vector<16x32xf32>
    %586 = vector.extract_strided_slice %578 {offsets = [0, 96], sizes = [16, 32], strides = [1, 1]} : vector<16x128xf32> to vector<16x32xf32>
    %587 = math.tanh %585 : vector<16x32xf32>
    %588 = arith.mulf %586, %587 : vector<16x32xf32>
    %589 = vector.extract_strided_slice %588 {offsets = [0, 0], sizes = [8, 32], strides = [1, 1]} : vector<16x32xf32> to vector<8x32xf32>
    %c7_238 = arith.constant 7 : index
    %c0_239 = arith.constant 0 : index
    %c0_240 = arith.constant 0 : index
    %590 = vector.load %arg22[%c7_238, %c0_239, %c0_240] : memref<8x8x32xf32, #tpu.memory_space<vmem>>, vector<1x8x32xf32>
    %591 = vector.shape_cast %590 : vector<1x8x32xf32> to vector<8x32xf32>
    %592 = vector.shape_cast %589 : vector<8x32xf32> to vector<1x8x32xf32>
    tpu.vector_store %arg22[%c7_238, %c0_239, %c0_240], %592 {strides = array<i32>} : memref<8x8x32xf32, #tpu.memory_space<vmem>>, vector<1x8x32xf32>,
    %593 = vector.extract_strided_slice %588 {offsets = [8, 0], sizes = [8, 32], strides = [1, 1]} : vector<16x32xf32> to vector<8x32xf32>
    %c0_241 = arith.constant 0 : index
    %c0_242 = arith.constant 0 : index
    %c0_243 = arith.constant 0 : index
    %594 = vector.load %arg23[%c0_241, %c0_242, %c0_243] : memref<8x8x32xf32, #tpu.memory_space<vmem>>, vector<1x8x32xf32>
    %595 = vector.shape_cast %594 : vector<1x8x32xf32> to vector<8x32xf32>
    %596 = vector.shape_cast %593 : vector<8x32xf32> to vector<1x8x32xf32>
    tpu.vector_store %arg23[%c0_241, %c0_242, %c0_243], %596 {strides = array<i32>} : memref<8x8x32xf32, #tpu.memory_space<vmem>>, vector<1x8x32xf32>,
    %c0_244 = arith.constant 0 : index
    %c0_245 = arith.constant 0 : index
    %c0_246 = arith.constant 0 : index
    %597 = vector.load %arg22[%c0_244, %c0_245, %c0_246] : memref<8x8x32xf32, #tpu.memory_space<vmem>>, vector<8x8x32xf32>
    %598 = vector.shape_cast %597 : vector<8x8x32xf32> to vector<64x32xf32>
    %c0_247 = arith.constant 0 : index
    %c0_248 = arith.constant 0 : index
    %c0_249 = arith.constant 0 : index
    %599 = vector.load %arg23[%c0_247, %c0_248, %c0_249] : memref<8x8x32xf32, #tpu.memory_space<vmem>>, vector<8x8x32xf32>
    %600 = vector.shape_cast %599 : vector<8x8x32xf32> to vector<64x32xf32>
    %c0_250 = arith.constant 0 : index
    %c0_251 = arith.constant 0 : index
    %601 = vector.load %arg8[%c0_250, %c0_251] : memref<32x32xf32, #tpu.memory_space<vmem>>, vector<32x32xf32>
    %602 = arith.truncf %598 : vector<64x32xf32> to vector<64x32xbf16>
    %603 = arith.truncf %601 : vector<32x32xf32> to vector<32x32xbf16>
    %cst_252 = arith.constant dense<0.000000e+00> : vector<64x32xf32>
    %604 = tpu.matmul %602, %603, %cst_252 {dimension_numbers = #tpu.dot_dimension_numbers<[1], [0], [0], [1], [0, 0, 1, 1], [], []>} : vector<64x32xbf16>, vector<32x32xbf16>, vector<64x32xf32> -> vector<64x32xf32>
    %c0_253 = arith.constant 0 : index
    %c0_254 = arith.constant 0 : index
    %605 = vector.load %arg9[%c0_253, %c0_254] : memref<32x32xf32, #tpu.memory_space<vmem>>, vector<32x32xf32>
    %606 = arith.truncf %600 : vector<64x32xf32> to vector<64x32xbf16>
    %607 = arith.truncf %605 : vector<32x32xf32> to vector<32x32xbf16>
    %cst_255 = arith.constant dense<0.000000e+00> : vector<64x32xf32>
    %608 = tpu.matmul %606, %607, %cst_255 {dimension_numbers = #tpu.dot_dimension_numbers<[1], [0], [0], [1], [0, 0, 1, 1], [], []>} : vector<64x32xbf16>, vector<32x32xbf16>, vector<64x32xf32> -> vector<64x32xf32>
    %609 = arith.addf %604, %608 : vector<64x32xf32>
    %c0_256 = arith.constant 0 : index
    %c0_257 = arith.constant 0 : index
    %610 = vector.load %arg10[%c0_256, %c0_257] : memref<1x32xf32, #tpu.memory_space<vmem>>, vector<1x32xf32>
    %611 = vector.broadcast %610 : vector<1x32xf32> to vector<64x32xf32>
    %612 = arith.addf %609, %611 : vector<64x32xf32>
    %613 = math.tanh %612 : vector<64x32xf32>
    %c0_258 = arith.constant 0 : index
    %c0_259 = arith.constant 0 : index
    %614 = vector.load %arg11[%c0_258, %c0_259] : memref<1x32xf32, #tpu.memory_space<vmem>>, vector<1x32xf32>
    %615 = vector.extract_strided_slice %613 {offsets = [0, 0], sizes = [8, 32], strides = [1, 1]} : vector<64x32xf32> to vector<8x32xf32>
    %616 = vector.broadcast %614 : vector<1x32xf32> to vector<8x32xf32>
    %617 = arith.mulf %615, %616 : vector<8x32xf32>
    %cst_260 = arith.constant dense<0.000000e+00> : vector<8xf32>
    %618 = vector.multi_reduction <add>, %617, %cst_260 [1] : vector<8x32xf32> to vector<8xf32>
    %619 = vector.shape_cast %618 : vector<8xf32> to vector<8x1xf32>
    %620 = vector.extract_strided_slice %613 {offsets = [8, 0], sizes = [8, 32], strides = [1, 1]} : vector<64x32xf32> to vector<8x32xf32>
    %621 = vector.broadcast %614 : vector<1x32xf32> to vector<8x32xf32>
    %622 = arith.mulf %620, %621 : vector<8x32xf32>
    %cst_261 = arith.constant dense<0.000000e+00> : vector<8xf32>
    %623 = vector.multi_reduction <add>, %622, %cst_261 [1] : vector<8x32xf32> to vector<8xf32>
    %624 = vector.shape_cast %623 : vector<8xf32> to vector<8x1xf32>
    %625 = vector.extract_strided_slice %613 {offsets = [16, 0], sizes = [8, 32], strides = [1, 1]} : vector<64x32xf32> to vector<8x32xf32>
    %626 = vector.broadcast %614 : vector<1x32xf32> to vector<8x32xf32>
    %627 = arith.mulf %625, %626 : vector<8x32xf32>
    %cst_262 = arith.constant dense<0.000000e+00> : vector<8xf32>
    %628 = vector.multi_reduction <add>, %627, %cst_262 [1] : vector<8x32xf32> to vector<8xf32>
    %629 = vector.shape_cast %628 : vector<8xf32> to vector<8x1xf32>
    %630 = vector.extract_strided_slice %613 {offsets = [24, 0], sizes = [8, 32], strides = [1, 1]} : vector<64x32xf32> to vector<8x32xf32>
    %631 = vector.broadcast %614 : vector<1x32xf32> to vector<8x32xf32>
    %632 = arith.mulf %630, %631 : vector<8x32xf32>
    %cst_263 = arith.constant dense<0.000000e+00> : vector<8xf32>
    %633 = vector.multi_reduction <add>, %632, %cst_263 [1] : vector<8x32xf32> to vector<8xf32>
    %634 = vector.shape_cast %633 : vector<8xf32> to vector<8x1xf32>
    %635 = vector.extract_strided_slice %613 {offsets = [32, 0], sizes = [8, 32], strides = [1, 1]} : vector<64x32xf32> to vector<8x32xf32>
    %636 = vector.broadcast %614 : vector<1x32xf32> to vector<8x32xf32>
    %637 = arith.mulf %635, %636 : vector<8x32xf32>
    %cst_264 = arith.constant dense<0.000000e+00> : vector<8xf32>
    %638 = vector.multi_reduction <add>, %637, %cst_264 [1] : vector<8x32xf32> to vector<8xf32>
    %639 = vector.shape_cast %638 : vector<8xf32> to vector<8x1xf32>
    %640 = vector.extract_strided_slice %613 {offsets = [40, 0], sizes = [8, 32], strides = [1, 1]} : vector<64x32xf32> to vector<8x32xf32>
    %641 = vector.broadcast %614 : vector<1x32xf32> to vector<8x32xf32>
    %642 = arith.mulf %640, %641 : vector<8x32xf32>
    %cst_265 = arith.constant dense<0.000000e+00> : vector<8xf32>
    %643 = vector.multi_reduction <add>, %642, %cst_265 [1] : vector<8x32xf32> to vector<8xf32>
    %644 = vector.shape_cast %643 : vector<8xf32> to vector<8x1xf32>
    %645 = vector.extract_strided_slice %613 {offsets = [48, 0], sizes = [8, 32], strides = [1, 1]} : vector<64x32xf32> to vector<8x32xf32>
    %646 = vector.broadcast %614 : vector<1x32xf32> to vector<8x32xf32>
    %647 = arith.mulf %645, %646 : vector<8x32xf32>
    %cst_266 = arith.constant dense<0.000000e+00> : vector<8xf32>
    %648 = vector.multi_reduction <add>, %647, %cst_266 [1] : vector<8x32xf32> to vector<8xf32>
    %649 = vector.shape_cast %648 : vector<8xf32> to vector<8x1xf32>
    %650 = vector.extract_strided_slice %613 {offsets = [56, 0], sizes = [8, 32], strides = [1, 1]} : vector<64x32xf32> to vector<8x32xf32>
    %651 = vector.broadcast %614 : vector<1x32xf32> to vector<8x32xf32>
    %652 = arith.mulf %650, %651 : vector<8x32xf32>
    %cst_267 = arith.constant dense<0.000000e+00> : vector<8xf32>
    %653 = vector.multi_reduction <add>, %652, %cst_267 [1] : vector<8x32xf32> to vector<8xf32>
    %654 = vector.shape_cast %653 : vector<8xf32> to vector<8x1xf32>
    %655 = tpu.concatenate %619, %624, %629, %634, %639, %644, %649, %654 in 1 : vector<8x1xf32>, vector<8x1xf32>, vector<8x1xf32>, vector<8x1xf32>, vector<8x1xf32>, vector<8x1xf32>, vector<8x1xf32>, vector<8x1xf32> -> vector<8x8xf32>
    %c0_268 = arith.constant 0 : index
    %c0_269 = arith.constant 0 : index
    %656 = vector.load %arg12[%c0_268, %c0_269] : memref<1x1xf32, #tpu.memory_space<vmem>>, vector<1x1xf32>
    %657 = vector.broadcast %656 : vector<1x1xf32> to vector<8x8xf32>
    %658 = arith.addf %655, %657 : vector<8x8xf32>
    %cst_270 = arith.constant dense<0xFF800000> : vector<8xf32>
    %659 = vector.multi_reduction <maximumf>, %658, %cst_270 [1] : vector<8x8xf32> to vector<8xf32>
    %660 = vector.shape_cast %659 : vector<8xf32> to vector<8x1xf32>
    %661 = vector.broadcast %660 : vector<8x1xf32> to vector<8x8xf32>
    %662 = arith.subf %658, %661 : vector<8x8xf32>
    %663 = math.exp %662 : vector<8x8xf32>
    %cst_271 = arith.constant dense<0.000000e+00> : vector<8xf32>
    %664 = vector.multi_reduction <add>, %663, %cst_271 [1] : vector<8x8xf32> to vector<8xf32>
    %665 = vector.shape_cast %664 : vector<8xf32> to vector<8x1xf32>
    %666 = tpu.reciprocal %665 : vector<8x1xf32> -> vector<8x1xf32>
    %667 = vector.broadcast %666 : vector<8x1xf32> to vector<8x8xf32>
    %668 = arith.mulf %663, %667 : vector<8x8xf32>
    %cst_272 = arith.constant 0.000000e+00 : f32
    %669 = vector.broadcast %cst_272 : f32 to vector<8x32xf32>
    %cst_273 = arith.constant 0.000000e+00 : f32
    %670 = vector.broadcast %cst_273 : f32 to vector<8x32xf32>
    %671 = vector.extract_strided_slice %668 {offsets = [0, 0], sizes = [8, 1], strides = [1, 1]} : vector<8x8xf32> to vector<8x1xf32>
    %c0_274 = arith.constant 0 : index
    %c0_275 = arith.constant 0 : index
    %c0_276 = arith.constant 0 : index
    %672 = vector.load %arg22[%c0_274, %c0_275, %c0_276] : memref<8x8x32xf32, #tpu.memory_space<vmem>>, vector<1x8x32xf32>
    %673 = vector.shape_cast %672 : vector<1x8x32xf32> to vector<8x32xf32>
    %674 = vector.broadcast %671 : vector<8x1xf32> to vector<8x32xf32>
    %675 = arith.mulf %673, %674 : vector<8x32xf32>
    %676 = arith.addf %669, %675 : vector<8x32xf32>
    %c0_277 = arith.constant 0 : index
    %c0_278 = arith.constant 0 : index
    %c0_279 = arith.constant 0 : index
    %677 = vector.load %arg23[%c0_277, %c0_278, %c0_279] : memref<8x8x32xf32, #tpu.memory_space<vmem>>, vector<1x8x32xf32>
    %678 = vector.shape_cast %677 : vector<1x8x32xf32> to vector<8x32xf32>
    %679 = vector.broadcast %671 : vector<8x1xf32> to vector<8x32xf32>
    %680 = arith.mulf %678, %679 : vector<8x32xf32>
    %681 = arith.addf %670, %680 : vector<8x32xf32>
    %682 = vector.extract_strided_slice %668 {offsets = [0, 1], sizes = [8, 1], strides = [1, 1]} : vector<8x8xf32> to vector<8x1xf32>
    %c1_280 = arith.constant 1 : index
    %c0_281 = arith.constant 0 : index
    %c0_282 = arith.constant 0 : index
    %683 = vector.load %arg22[%c1_280, %c0_281, %c0_282] : memref<8x8x32xf32, #tpu.memory_space<vmem>>, vector<1x8x32xf32>
    %684 = vector.shape_cast %683 : vector<1x8x32xf32> to vector<8x32xf32>
    %685 = vector.broadcast %682 : vector<8x1xf32> to vector<8x32xf32>
    %686 = arith.mulf %684, %685 : vector<8x32xf32>
    %687 = arith.addf %676, %686 : vector<8x32xf32>
    %c1_283 = arith.constant 1 : index
    %c0_284 = arith.constant 0 : index
    %c0_285 = arith.constant 0 : index
    %688 = vector.load %arg23[%c1_283, %c0_284, %c0_285] : memref<8x8x32xf32, #tpu.memory_space<vmem>>, vector<1x8x32xf32>
    %689 = vector.shape_cast %688 : vector<1x8x32xf32> to vector<8x32xf32>
    %690 = vector.broadcast %682 : vector<8x1xf32> to vector<8x32xf32>
    %691 = arith.mulf %689, %690 : vector<8x32xf32>
    %692 = arith.addf %681, %691 : vector<8x32xf32>
    %693 = vector.extract_strided_slice %668 {offsets = [0, 2], sizes = [8, 1], strides = [1, 1]} : vector<8x8xf32> to vector<8x1xf32>
    %c2_286 = arith.constant 2 : index
    %c0_287 = arith.constant 0 : index
    %c0_288 = arith.constant 0 : index
    %694 = vector.load %arg22[%c2_286, %c0_287, %c0_288] : memref<8x8x32xf32, #tpu.memory_space<vmem>>, vector<1x8x32xf32>
    %695 = vector.shape_cast %694 : vector<1x8x32xf32> to vector<8x32xf32>
    %696 = vector.broadcast %693 : vector<8x1xf32> to vector<8x32xf32>
    %697 = arith.mulf %695, %696 : vector<8x32xf32>
    %698 = arith.addf %687, %697 : vector<8x32xf32>
    %c2_289 = arith.constant 2 : index
    %c0_290 = arith.constant 0 : index
    %c0_291 = arith.constant 0 : index
    %699 = vector.load %arg23[%c2_289, %c0_290, %c0_291] : memref<8x8x32xf32, #tpu.memory_space<vmem>>, vector<1x8x32xf32>
    %700 = vector.shape_cast %699 : vector<1x8x32xf32> to vector<8x32xf32>
    %701 = vector.broadcast %693 : vector<8x1xf32> to vector<8x32xf32>
    %702 = arith.mulf %700, %701 : vector<8x32xf32>
    %703 = arith.addf %692, %702 : vector<8x32xf32>
    %704 = vector.extract_strided_slice %668 {offsets = [0, 3], sizes = [8, 1], strides = [1, 1]} : vector<8x8xf32> to vector<8x1xf32>
    %c3_292 = arith.constant 3 : index
    %c0_293 = arith.constant 0 : index
    %c0_294 = arith.constant 0 : index
    %705 = vector.load %arg22[%c3_292, %c0_293, %c0_294] : memref<8x8x32xf32, #tpu.memory_space<vmem>>, vector<1x8x32xf32>
    %706 = vector.shape_cast %705 : vector<1x8x32xf32> to vector<8x32xf32>
    %707 = vector.broadcast %704 : vector<8x1xf32> to vector<8x32xf32>
    %708 = arith.mulf %706, %707 : vector<8x32xf32>
    %709 = arith.addf %698, %708 : vector<8x32xf32>
    %c3_295 = arith.constant 3 : index
    %c0_296 = arith.constant 0 : index
    %c0_297 = arith.constant 0 : index
    %710 = vector.load %arg23[%c3_295, %c0_296, %c0_297] : memref<8x8x32xf32, #tpu.memory_space<vmem>>, vector<1x8x32xf32>
    %711 = vector.shape_cast %710 : vector<1x8x32xf32> to vector<8x32xf32>
    %712 = vector.broadcast %704 : vector<8x1xf32> to vector<8x32xf32>
    %713 = arith.mulf %711, %712 : vector<8x32xf32>
    %714 = arith.addf %703, %713 : vector<8x32xf32>
    %715 = vector.extract_strided_slice %668 {offsets = [0, 4], sizes = [8, 1], strides = [1, 1]} : vector<8x8xf32> to vector<8x1xf32>
    %c4_298 = arith.constant 4 : index
    %c0_299 = arith.constant 0 : index
    %c0_300 = arith.constant 0 : index
    %716 = vector.load %arg22[%c4_298, %c0_299, %c0_300] : memref<8x8x32xf32, #tpu.memory_space<vmem>>, vector<1x8x32xf32>
    %717 = vector.shape_cast %716 : vector<1x8x32xf32> to vector<8x32xf32>
    %718 = vector.broadcast %715 : vector<8x1xf32> to vector<8x32xf32>
    %719 = arith.mulf %717, %718 : vector<8x32xf32>
    %720 = arith.addf %709, %719 : vector<8x32xf32>
    %c4_301 = arith.constant 4 : index
    %c0_302 = arith.constant 0 : index
    %c0_303 = arith.constant 0 : index
    %721 = vector.load %arg23[%c4_301, %c0_302, %c0_303] : memref<8x8x32xf32, #tpu.memory_space<vmem>>, vector<1x8x32xf32>
    %722 = vector.shape_cast %721 : vector<1x8x32xf32> to vector<8x32xf32>
    %723 = vector.broadcast %715 : vector<8x1xf32> to vector<8x32xf32>
    %724 = arith.mulf %722, %723 : vector<8x32xf32>
    %725 = arith.addf %714, %724 : vector<8x32xf32>
    %726 = vector.extract_strided_slice %668 {offsets = [0, 5], sizes = [8, 1], strides = [1, 1]} : vector<8x8xf32> to vector<8x1xf32>
    %c5_304 = arith.constant 5 : index
    %c0_305 = arith.constant 0 : index
    %c0_306 = arith.constant 0 : index
    %727 = vector.load %arg22[%c5_304, %c0_305, %c0_306] : memref<8x8x32xf32, #tpu.memory_space<vmem>>, vector<1x8x32xf32>
    %728 = vector.shape_cast %727 : vector<1x8x32xf32> to vector<8x32xf32>
    %729 = vector.broadcast %726 : vector<8x1xf32> to vector<8x32xf32>
    %730 = arith.mulf %728, %729 : vector<8x32xf32>
    %731 = arith.addf %720, %730 : vector<8x32xf32>
    %c5_307 = arith.constant 5 : index
    %c0_308 = arith.constant 0 : index
    %c0_309 = arith.constant 0 : index
    %732 = vector.load %arg23[%c5_307, %c0_308, %c0_309] : memref<8x8x32xf32, #tpu.memory_space<vmem>>, vector<1x8x32xf32>
    %733 = vector.shape_cast %732 : vector<1x8x32xf32> to vector<8x32xf32>
    %734 = vector.broadcast %726 : vector<8x1xf32> to vector<8x32xf32>
    %735 = arith.mulf %733, %734 : vector<8x32xf32>
    %736 = arith.addf %725, %735 : vector<8x32xf32>
    %737 = vector.extract_strided_slice %668 {offsets = [0, 6], sizes = [8, 1], strides = [1, 1]} : vector<8x8xf32> to vector<8x1xf32>
    %c6_310 = arith.constant 6 : index
    %c0_311 = arith.constant 0 : index
    %c0_312 = arith.constant 0 : index
    %738 = vector.load %arg22[%c6_310, %c0_311, %c0_312] : memref<8x8x32xf32, #tpu.memory_space<vmem>>, vector<1x8x32xf32>
    %739 = vector.shape_cast %738 : vector<1x8x32xf32> to vector<8x32xf32>
    %740 = vector.broadcast %737 : vector<8x1xf32> to vector<8x32xf32>
    %741 = arith.mulf %739, %740 : vector<8x32xf32>
    %742 = arith.addf %731, %741 : vector<8x32xf32>
    %c6_313 = arith.constant 6 : index
    %c0_314 = arith.constant 0 : index
    %c0_315 = arith.constant 0 : index
    %743 = vector.load %arg23[%c6_313, %c0_314, %c0_315] : memref<8x8x32xf32, #tpu.memory_space<vmem>>, vector<1x8x32xf32>
    %744 = vector.shape_cast %743 : vector<1x8x32xf32> to vector<8x32xf32>
    %745 = vector.broadcast %737 : vector<8x1xf32> to vector<8x32xf32>
    %746 = arith.mulf %744, %745 : vector<8x32xf32>
    %747 = arith.addf %736, %746 : vector<8x32xf32>
    %748 = vector.extract_strided_slice %668 {offsets = [0, 7], sizes = [8, 1], strides = [1, 1]} : vector<8x8xf32> to vector<8x1xf32>
    %c7_316 = arith.constant 7 : index
    %c0_317 = arith.constant 0 : index
    %c0_318 = arith.constant 0 : index
    %749 = vector.load %arg22[%c7_316, %c0_317, %c0_318] : memref<8x8x32xf32, #tpu.memory_space<vmem>>, vector<1x8x32xf32>
    %750 = vector.shape_cast %749 : vector<1x8x32xf32> to vector<8x32xf32>
    %751 = vector.broadcast %748 : vector<8x1xf32> to vector<8x32xf32>
    %752 = arith.mulf %750, %751 : vector<8x32xf32>
    %753 = arith.addf %742, %752 : vector<8x32xf32>
    %c7_319 = arith.constant 7 : index
    %c0_320 = arith.constant 0 : index
    %c0_321 = arith.constant 0 : index
    %754 = vector.load %arg23[%c7_319, %c0_320, %c0_321] : memref<8x8x32xf32, #tpu.memory_space<vmem>>, vector<1x8x32xf32>
    %755 = vector.shape_cast %754 : vector<1x8x32xf32> to vector<8x32xf32>
    %756 = vector.broadcast %748 : vector<8x1xf32> to vector<8x32xf32>
    %757 = arith.mulf %755, %756 : vector<8x32xf32>
    %758 = arith.addf %747, %757 : vector<8x32xf32>
    %c0_322 = arith.constant 0 : index
    %c0_323 = arith.constant 0 : index
    %759 = vector.load %arg13[%c0_322, %c0_323] : memref<32x96xf32, #tpu.memory_space<vmem>>, vector<32x96xf32>
    %760 = arith.truncf %753 : vector<8x32xf32> to vector<8x32xbf16>
    %761 = arith.truncf %759 : vector<32x96xf32> to vector<32x96xbf16>
    %cst_324 = arith.constant dense<0.000000e+00> : vector<8x96xf32>
    %762 = tpu.matmul %760, %761, %cst_324 {dimension_numbers = #tpu.dot_dimension_numbers<[1], [0], [0], [1], [0, 0, 1, 1], [], []>} : vector<8x32xbf16>, vector<32x96xbf16>, vector<8x96xf32> -> vector<8x96xf32>
    %c0_325 = arith.constant 0 : index
    %c0_326 = arith.constant 0 : index
    %763 = vector.load %arg14[%c0_325, %c0_326] : memref<32x96xf32, #tpu.memory_space<vmem>>, vector<32x96xf32>
    %764 = arith.truncf %758 : vector<8x32xf32> to vector<8x32xbf16>
    %765 = arith.truncf %763 : vector<32x96xf32> to vector<32x96xbf16>
    %cst_327 = arith.constant dense<0.000000e+00> : vector<8x96xf32>
    %766 = tpu.matmul %764, %765, %cst_327 {dimension_numbers = #tpu.dot_dimension_numbers<[1], [0], [0], [1], [0, 0, 1, 1], [], []>} : vector<8x32xbf16>, vector<32x96xbf16>, vector<8x96xf32> -> vector<8x96xf32>
    %767 = arith.addf %762, %766 : vector<8x96xf32>
    %c0_328 = arith.constant 0 : index
    %c0_329 = arith.constant 0 : index
    %768 = vector.load %arg15[%c0_328, %c0_329] : memref<1x96xf32, #tpu.memory_space<vmem>>, vector<1x96xf32>
    %769 = vector.broadcast %768 : vector<1x96xf32> to vector<8x96xf32>
    %770 = arith.addf %767, %769 : vector<8x96xf32>
    %cst_330 = arith.constant 0.000000e+00 : f32
    %771 = vector.broadcast %cst_330 : f32 to vector<8x96xf32>
    %772 = arith.maximumf %770, %771 : vector<8x96xf32>
    %c0_331 = arith.constant 0 : index
    %c0_332 = arith.constant 0 : index
    %773 = vector.load %arg16[%c0_331, %c0_332] : memref<96x12xf32, #tpu.memory_space<vmem>>, vector<96x12xf32>
    %774 = arith.truncf %772 : vector<8x96xf32> to vector<8x96xbf16>
    %775 = arith.truncf %773 : vector<96x12xf32> to vector<96x12xbf16>
    %cst_333 = arith.constant dense<0.000000e+00> : vector<8x12xf32>
    %776 = tpu.matmul %774, %775, %cst_333 {dimension_numbers = #tpu.dot_dimension_numbers<[1], [0], [0], [1], [0, 0, 1, 1], [], []>} : vector<8x96xbf16>, vector<96x12xbf16>, vector<8x12xf32> -> vector<8x12xf32>
    %c0_334 = arith.constant 0 : index
    %c0_335 = arith.constant 0 : index
    %777 = vector.load %arg17[%c0_334, %c0_335] : memref<1x12xf32, #tpu.memory_space<vmem>>, vector<1x12xf32>
    %778 = vector.broadcast %777 : vector<1x12xf32> to vector<8x12xf32>
    %779 = arith.addf %776, %778 : vector<8x12xf32>
    %780 = tpu.iota {dimensions = array<i32: 1>} : vector<8x12xi32>
    %c0_i32 = arith.constant 0 : i32
    %781 = vector.broadcast %c0_i32 : i32 to vector<8x12xi32>
    %782 = arith.cmpi eq, %780, %781 : vector<8x12xi32>
    %783 = arith.negf %779 : vector<8x12xf32>
    %784 = math.exp %783 : vector<8x12xf32>
    %cst_336 = arith.constant 1.000000e+00 : f32
    %785 = vector.broadcast %cst_336 : f32 to vector<8x12xf32>
    %786 = arith.addf %785, %784 : vector<8x12xf32>
    %787 = arith.divf %785, %786 : vector<8x12xf32>
    %788 = arith.select %782, %787, %779 : vector<8x12xi1>, vector<8x12xf32>
    %cst_337 = arith.constant 0.000000e+00 : f32
    %789 = vector.broadcast %cst_337 : f32 to vector<8x4xf32>
    %cst_338 = arith.constant 0.000000e+00 : f32
    %790 = vector.broadcast %cst_338 : f32 to vector<8x104xf32>
    %791 = tpu.concatenate %788, %789, %668, %790 in 1 : vector<8x12xf32>, vector<8x4xf32>, vector<8x8xf32>, vector<8x104xf32> -> vector<8x128xf32>
    %c0_339 = arith.constant 0 : index
    %c0_340 = arith.constant 0 : index
    %792 = vector.load %arg18[%c0_339, %c0_340] : memref<8x128xf32, #tpu.memory_space<vmem>>, vector<8x128xf32>
    tpu.vector_store %arg18[%c0_339, %c0_340], %791 {strides = array<i32>} : memref<8x128xf32, #tpu.memory_space<vmem>>, vector<8x128xf32>,
    return
  }
}

</mosaic_0001>

<bundles_post_ra>
// kernel: tpu_custom_call.1
= control target key start
LH: loop header
LB: loop body
LE: loop exit
PB: predicated region body
PF: predicated region fallthrough
CT: control target
= control target key end

     0   :  { %s4629_s0 = inlined_call_operand.vmem [shape: f32[8,8,16], index: 0, kind: input, shape index: {}]   ;;  %s4630_s1 = inlined_call_operand.hbm [shape: f32[16,256], index: 1, kind: input, shape index: {}]   ;;  %s4631_s2 = inlined_call_operand.hbm [shape: f32[1,256], index: 2, kind: input, shape index: {}]   ;;  %s4632_s3 = inlined_call_operand.hbm [shape: f32[32,256], index: 3, kind: input, shape index: {}]   ;;  %s4633_s4 = inlined_call_operand.vmem [shape: f32[32,256], index: 4, kind: input, shape index: {}]   ;;  %s4634_s5 = inlined_call_operand.hbm [shape: f32[32,256], index: 5, kind: input, shape index: {}]   ;;  %s4635_s6 = inlined_call_operand.hbm [shape: f32[1,256], index: 6, kind: input, shape index: {}]   ;;  %s4636_s7 = inlined_call_operand.hbm [shape: f32[32,256], index: 7, kind: input, shape index: {}]   ;;  %s4637_s8 = inlined_call_operand.hbm [shape: f32[32,32], index: 8, kind: input, shape index: {}]   ;;  %s4638_s9 = inlined_call_operand.hbm [shape: f32[32,32], index: 9, kind: input, shape index: {}]   ;;  %s4639_s10 = inlined_call_operand.vmem [shape: f32[1,32], index: 10, kind: input, shape index: {}]   ;;  %s4640_s11 = inlined_call_operand.hbm [shape: f32[1,32], index: 11, kind: input, shape index: {}]   ;;  %s4641_s12 = inlined_call_operand.<no memory space> [shape: f32[1,1], index: 12, kind: input, shape index: {}]   ;;  %s4642_s13 = inlined_call_operand.vmem [shape: f32[32,96], index: 13, kind: input, shape index: {}]   ;;  %s4643_s14 = inlined_call_operand.hbm [shape: f32[32,96], index: 14, kind: input, shape index: {}]   ;;  %s4644_s15 = inlined_call_operand.vmem [shape: f32[1,96], index: 15, kind: input, shape index: {}]   ;;  %s4645_s16 = inlined_call_operand.vmem [shape: f32[96,12], index: 16, kind: input, shape index: {}]   ;;  %s4646_s17 = inlined_call_operand.vmem [shape: f32[1,12], index: 17, kind: input, shape index: {}]   ;;  %s4647_s18 = inlined_call_operand.hbm [shape: f32[8,128], index: 18, kind: output, shape index: {}]  }
   0x1   :  { %4651 = sst [smem:[#allocation33_spill]] %s4629_s0  ;;  %v23_v0 = vstv %s4641_s12 }
   0x2   :  { %4652 = sst [smem:[#allocation34_spill]] %s4630_s1  ;;  %24 = vst [vmem:[#allocation7] sm:$0x1] %v23_v0 }
   0x3   :  { %4653 = sst [smem:[#allocation35_spill]] %s4631_s2 }
   0x4   :  { %25 = vsyncpa [#allocation9], 0 }
   0x5   :  { %26 = vsyncpa [#allocation12], 0 }
   0x6   :  { %27 = vsyncpa [#allocation15], 0 }
   0x7   :  { %28 = vsyncpa [#allocation18], 0 }
   0x8   :  { %29 = vsyncpa [#allocation21], 0 }
   0x9   :  { %30 = vsyncpa [#allocation24], 0 }
   0xa   :  { %31 = vsyncpa [#allocation10], 0  ;;  %s3641_s29 = smov [#allocation11]   ;;  %s4654_s1 = sld [smem:[#allocation35_spill]] }
   0xb   :  { %s52_s30 = sshll.u32 %s3641_s29, 4  ;;  %s53_s30 = int_to_ptr.vmem [resolvable:$true] %s52_s30 }
  0x10   :  { %s3385_s20 = scalar_lea.hbm %s4654_s1, 32 }
  0x11   :  { %p3386_p0 = scmp.ne.s32.totalorder %s4654_s1, %s3385_s20  ;;  %p3389_p1 = scmp.lt.u32.totalorder %s3385_s20, %s4654_s1 }
  0x13   :  { %p3391_p2 = pnand %p3389_p1, %p3386_p0 }
  0x15   :  { %3394 = shalt.err (!%p3391_p2)
}
  0x16   :  { %s3395_s23 = scalar_lea.vmem %s53_s30, 32  ;;  %p3400_p4 = scmp.lt.s32.totalorder %s53_s30, %s53_s30 }
  0x17   :  { %p3396_p3 = scmp.ne.s32.totalorder %s53_s30, %s3395_s23  ;;  %p3401_p5 = scmp.lt.s32.totalorder %s3395_s23, %s3395_s23 }
  0x19   :  { %p3402_p6 = por %p3401_p5, %p3400_p4 }
  0x1b   :  { %p3403_p7 = pnand %p3402_p6, %p3396_p3 }
  0x1d   :  { %3406 = shalt.err (!%p3403_p7)
}
  0x1e   :  { %55 = dma.hbm_to_vmem [thread:$0]  %s4654_s1, 32, %s53_s30, [#allocation12]  }
  0x1f   :  { %s3642_s26 = smov [#allocation14]   ;;  %s3643_s28 = smov [#allocation17]  }
  0x20   :  { %s75_s27 = sshll.u32 %s3642_s26, 4  ;;  %s97_s29 = sshll.u32 %s3643_s28, 4  ;;  %s76_s27 = int_to_ptr.vmem [resolvable:$true] %s75_s27  ;;  %s98_s29 = int_to_ptr.vmem [resolvable:$true] %s97_s29 }
  0x21   :  { %s3407_s20 = scalar_lea.hbm %s4634_s5, 1024 }
  0x22   :  { %p3408_p8 = scmp.ne.s32.totalorder %s4634_s5, %s3407_s20  ;;  %p3411_p9 = scmp.lt.u32.totalorder %s3407_s20, %s4634_s5 }
  0x24   :  { %p3413_p10 = pnand %p3411_p9, %p3408_p8 }
  0x26   :  { %3416 = shalt.err (!%p3413_p10)
}
  0x27   :  { %s3417_s30 = scalar_lea.vmem %s76_s27, 1024  ;;  %p3422_p12 = scmp.lt.s32.totalorder %s76_s27, %s76_s27 }
  0x28   :  { %p3418_p11 = scmp.ne.s32.totalorder %s76_s27, %s3417_s30  ;;  %p3423_p13 = scmp.lt.s32.totalorder %s3417_s30, %s3417_s30 }
  0x2a   :  { %p3424_p0 = por %p3423_p13, %p3422_p12 }
  0x2c   :  { %p3425_p1 = pnand %p3424_p0, %p3418_p11 }
  0x2e   :  { %3428 = shalt.err (!%p3425_p1)
}
  0x2f   :  { %s3644_s1 = smov 256   ;;  %s3645_s23 = smov 16  }
  0x30   :  { %81 = dma.hbm_to_vmem [thread:$0]  %s4634_s5, 1024, %s76_s27, [#allocation15], %s3644_s1, %s3644_s1, %s3645_s23  }
  0x31   :  { %s3429_s0 = scalar_lea.hbm %s4636_s7, 1024 }
  0x32   :  { %p3430_p2 = scmp.ne.s32.totalorder %s4636_s7, %s3429_s0  ;;  %p3433_p3 = scmp.lt.u32.totalorder %s3429_s0, %s4636_s7 }
  0x34   :  { %p3435_p4 = pnand %p3433_p3, %p3430_p2 }
  0x36   :  { %3438 = shalt.err (!%p3435_p4)
}
  0x37   :  { %s3439_s12 = scalar_lea.vmem %s98_s29, 1024  ;;  %p3444_p6 = scmp.lt.s32.totalorder %s98_s29, %s98_s29 }
  0x38   :  { %p3440_p5 = scmp.ne.s32.totalorder %s98_s29, %s3439_s12  ;;  %p3445_p7 = scmp.lt.s32.totalorder %s3439_s12, %s3439_s12 }
  0x3a   :  { %p3446_p8 = por %p3445_p7, %p3444_p6 }
  0x3c   :  { %p3447_p9 = pnand %p3446_p8, %p3440_p5 }
  0x3e   :  { %3450 = shalt.err (!%p3447_p9)
}
  0x3f   :  { %103 = dma.hbm_to_vmem [thread:$0]  %s4636_s7, 1024, %s98_s29, [#allocation18], %s3644_s1, %s3644_s1, %s3645_s23  }
  0x40   :  { %s3646_s2 = smov [#allocation20]   ;;  %s3647_s24 = smov [#allocation8]  }
  0x41   :  { %s121_s30 = sshll.u32 %s3646_s2, 4  ;;  %s39_s25 = sshll.u32 %s3647_s24, 4  ;;  %s122_s30 = int_to_ptr.vmem [resolvable:$true] %s121_s30  ;;  %s40_s25 = int_to_ptr.vmem [resolvable:$true] %s39_s25 }
  0x42   :  { %s3451_s0 = scalar_lea.hbm %s4638_s9, 512 }
  0x43   :  { %p3452_p10 = scmp.ne.s32.totalorder %s4638_s9, %s3451_s0  ;;  %p3455_p11 = scmp.lt.u32.totalorder %s3451_s0, %s4638_s9 }
  0x45   :  { %p3457_p12 = pnand %p3455_p11, %p3452_p10 }
  0x47   :  { %3460 = shalt.err (!%p3457_p12)
}
  0x48   :  { %s3461_s7 = scalar_lea.vmem %s122_s30, 512  ;;  %p3466_p0 = scmp.lt.s32.totalorder %s122_s30, %s122_s30 }
  0x49   :  { %p3462_p13 = scmp.ne.s32.totalorder %s122_s30, %s3461_s7  ;;  %p3467_p1 = scmp.lt.s32.totalorder %s3461_s7, %s3461_s7 }
  0x4b   :  { %p3468_p2 = por %p3467_p1, %p3466_p0 }
  0x4d   :  { %p3469_p3 = pnand %p3468_p2, %p3462_p13 }
  0x4f   :  { %3472 = shalt.err (!%p3469_p3)
}
  0x50   :  { %s3648_s29 = smov 128   ;;  %s3649_s12 = smov 8  }
  0x51   :  { %127 = dma.hbm_to_vmem [thread:$0]  %s4638_s9, 512, %s122_s30, [#allocation21], %s3648_s29, %s3648_s29, %s3649_s12  }
  0x52   :  { %s4655_s26 = sld [smem:[#allocation34_spill]] }
  0x58   :  { %s3473_s28 = scalar_lea.hbm %s4655_s26, 512 }
  0x59   :  { %p3474_p4 = scmp.ne.s32.totalorder %s4655_s26, %s3473_s28  ;;  %p3477_p5 = scmp.lt.u32.totalorder %s3473_s28, %s4655_s26 }
  0x5b   :  { %p3479_p6 = pnand %p3477_p5, %p3474_p4 }
  0x5d   :  { %3482 = shalt.err (!%p3479_p6)
}
  0x5e   :  { %s3483_s22 = scalar_lea.vmem %s40_s25, 512  ;;  %p3488_p8 = scmp.lt.s32.totalorder %s40_s25, %s40_s25 }
  0x5f   :  { %p3484_p7 = scmp.ne.s32.totalorder %s40_s25, %s3483_s22  ;;  %p3489_p9 = scmp.lt.s32.totalorder %s3483_s22, %s3483_s22 }
  0x61   :  { %p3490_p10 = por %p3489_p9, %p3488_p8 }
  0x63   :  { %p3491_p11 = pnand %p3490_p10, %p3484_p7 }
  0x65   :  { %3494 = shalt.err (!%p3491_p11)
}
  0x66   :  { %45 = dma.hbm_to_vmem [thread:$0]  %s4655_s26, 512, %s40_s25, [#allocation9], %s3644_s1, %s3644_s1, %s3645_s23  }
  0x67   :  { %s3650_s7 = smov [#allocation13]   ;;  %s3651_s27 = smov [#allocation16]  }
  0x68   :  { %s61_s5 = sshll.u32 %s3650_s7, 4  ;;  %s88_s2 = sshll.u32 %s3651_s27, 4  ;;  %s62_s5 = int_to_ptr.vmem [resolvable:$true] %s61_s5  ;;  %s89_s2 = int_to_ptr.vmem [resolvable:$true] %s88_s2 }
  0x69   :  { %s3495_s0 = scalar_lea.hbm %s4632_s3, 1024 }
  0x6a   :  { %p3496_p12 = scmp.ne.s32.totalorder %s4632_s3, %s3495_s0  ;;  %p3499_p13 = scmp.lt.u32.totalorder %s3495_s0, %s4632_s3 }
  0x6c   :  { %p3501_p0 = pnand %p3499_p13, %p3496_p12 }
  0x6e   :  { %3504 = shalt.err (!%p3501_p0)
}
  0x6f   :  { %s3505_s25 = scalar_lea.vmem %s62_s5, 1024  ;;  %p3510_p2 = scmp.lt.s32.totalorder %s62_s5, %s62_s5 }
  0x70   :  { %p3506_p1 = scmp.ne.s32.totalorder %s62_s5, %s3505_s25  ;;  %p3511_p3 = scmp.lt.s32.totalorder %s3505_s25, %s3505_s25 }
  0x72   :  { %p3512_p4 = por %p3511_p3, %p3510_p2 }
  0x74   :  { %p3513_p5 = pnand %p3512_p4, %p3506_p1 }
  0x76   :  { %3516 = shalt.err (!%p3513_p5)
}
  0x77   :  { %67 = dma.hbm_to_vmem [thread:$0]  %s4632_s3, 1024, %s62_s5, [#allocation12], %s3644_s1, %s3644_s1, %s3645_s23  }
  0x78   :  { %s3517_s27 = scalar_lea.hbm %s4635_s6, 32 }
  0x79   :  { %p3518_p6 = scmp.ne.s32.totalorder %s4635_s6, %s3517_s27  ;;  %p3521_p7 = scmp.lt.u32.totalorder %s3517_s27, %s4635_s6 }
  0x7b   :  { %p3523_p8 = pnand %p3521_p7, %p3518_p6 }
  0x7d   :  { %3526 = shalt.err (!%p3523_p8)
}
  0x7e   :  { %s3527_s20 = scalar_lea.vmem %s89_s2, 32  ;;  %p3532_p10 = scmp.lt.s32.totalorder %s89_s2, %s89_s2 }
  0x7f   :  { %p3528_p9 = scmp.ne.s32.totalorder %s89_s2, %s3527_s20  ;;  %p3533_p11 = scmp.lt.s32.totalorder %s3527_s20, %s3527_s20 }
  0x81   :  { %p3534_p12 = por %p3533_p11, %p3532_p10 }
  0x83   :  { %p3535_p13 = pnand %p3534_p12, %p3528_p9 }
  0x85   :  { %3538 = shalt.err (!%p3535_p13)
}
  0x86   :  { %91 = dma.hbm_to_vmem [thread:$0]  %s4635_s6, 32, %s89_s2, [#allocation15]  }
  0x87   :  { %s3652_s5 = smov [#allocation19]   ;;  %s3653_s22 = smov [#allocation22]  }
  0x88   :  { %s109_s21 = sshll.u32 %s3652_s5, 4  ;;  %s136_s25 = sshll.u32 %s3653_s22, 4  ;;  %s110_s21 = int_to_ptr.vmem [resolvable:$true] %s109_s21  ;;  %s137_s25 = int_to_ptr.vmem [resolvable:$true] %s136_s25 }
  0x89   :  { %s3539_s30 = scalar_lea.hbm %s4637_s8, 512 }
  0x8a   :  { %p3540_p0 = scmp.ne.s32.totalorder %s4637_s8, %s3539_s30  ;;  %p3543_p1 = scmp.lt.u32.totalorder %s3539_s30, %s4637_s8 }
  0x8c   :  { %p3545_p2 = pnand %p3543_p1, %p3540_p0 }
  0x8e   :  { %3548 = shalt.err (!%p3545_p2)
}
  0x8f   :  { %s3549_s6 = scalar_lea.vmem %s110_s21, 512  ;;  %p3554_p4 = scmp.lt.s32.totalorder %s110_s21, %s110_s21 }
  0x90   :  { %p3550_p3 = scmp.ne.s32.totalorder %s110_s21, %s3549_s6  ;;  %p3555_p5 = scmp.lt.s32.totalorder %s3549_s6, %s3549_s6 }
  0x92   :  { %p3556_p6 = por %p3555_p5, %p3554_p4 }
  0x94   :  { %p3557_p7 = pnand %p3556_p6, %p3550_p3 }
  0x96   :  { %3560 = shalt.err (!%p3557_p7)
}
  0x97   :  { %115 = dma.hbm_to_vmem [thread:$0]  %s4637_s8, 512, %s110_s21, [#allocation18], %s3648_s29, %s3648_s29, %s3649_s12  }
  0x98   :  { %s3561_s3 = scalar_lea.hbm %s4640_s11, 16 }
  0x99   :  { %p3562_p8 = scmp.ne.s32.totalorder %s4640_s11, %s3561_s3  ;;  %p3565_p9 = scmp.lt.u32.totalorder %s3561_s3, %s4640_s11 }
  0x9b   :  { %p3567_p10 = pnand %p3565_p9, %p3562_p8 }
  0x9d   :  { %3570 = shalt.err (!%p3567_p10)
}
  0x9e   :  { %s3571_s9 = scalar_lea.vmem %s137_s25, 16  ;;  %s3575_s30 = scalar_lea.vmem %s137_s25, 32 }
  0x9f   :  { %p3572_p11 = scmp.ne.s32.totalorder %s137_s25, %s3571_s9  ;;  %p3576_p12 = scmp.lt.s32.totalorder %s137_s25, %s137_s25 }
  0xa0   :  { %p3577_p13 = scmp.lt.s32.totalorder %s3575_s30, %s3571_s9 }
  0xa2   :  { %p3578_p0 = por %p3577_p13, %p3576_p12 }
  0xa4   :  { %p3579_p1 = pnand %p3578_p0, %p3572_p11 }
  0xa6   :  { %3582 = shalt.err (!%p3579_p1)
}
  0xa7   :  { %139 = dma.hbm_to_vmem [thread:$0]  %s4640_s11, 16, %s137_s25, [#allocation21]  }
  0xa8   :  { %s3654_s7 = smov [#allocation23]   ;;  %s3583_s6 = scalar_lea.hbm %s4643_s14, 512 }
  0xa9   :  { %s149_s27 = sshll.u32 %s3654_s7, 4  ;;  %p3584_p2 = scmp.ne.s32.totalorder %s4643_s14, %s3583_s6  ;;  %s150_s27 = int_to_ptr.vmem [resolvable:$true] %s149_s27 }
  0xaa   :  { %p3587_p3 = scmp.lt.u32.totalorder %s3583_s6, %s4643_s14 }
  0xac   :  { %p3589_p4 = pnand %p3587_p3, %p3584_p2 }
  0xae   :  { %3592 = shalt.err (!%p3589_p4)
}
  0xaf   :  { %s3593_s3 = scalar_lea.vmem %s150_s27, 512  ;;  %p3598_p6 = scmp.lt.s32.totalorder %s150_s27, %s150_s27 }
  0xb0   :  { %p3594_p5 = scmp.ne.s32.totalorder %s150_s27, %s3593_s3  ;;  %p3599_p7 = scmp.lt.s32.totalorder %s3593_s3, %s3593_s3 }
  0xb2   :  { %p3600_p8 = por %p3599_p7, %p3598_p6 }
  0xb4   :  { %p3601_p9 = pnand %p3600_p8, %p3594_p5 }
  0xb6   :  { %3604 = shalt.err (!%p3601_p9)
}
  0xb7   :  { %155 = dma.hbm_to_vmem [thread:$0]  %s4643_s14, 512, %s150_s27, [#allocation24], %s3648_s29, %s3648_s29, %s3649_s12  }
  0xb8   :  { %3627 = dma.done.wait [#allocation9], 512  }
  0xb9   :  { %3628 = vsyncadd [#allocation9], 4294966784 }
  0xba   :  { %3629 = dma.done.wait [#allocation12], 1056  }
  0xbb   :  { %3630 = vsyncadd [#allocation12], 4294966240 }
  0xbc   :  { %3631 = dma.done.wait [#allocation15], 1056  }
  0xbd   :  { %3632 = vsyncadd [#allocation15], 4294966240 }
  0xbe   :  { %3633 = dma.done.wait [#allocation18], 1536  }
  0xbf   :  { %3634 = vsyncadd [#allocation18], 4294965760 }
  0xc0   :  { %3635 = dma.done.wait [#allocation21], 528  }
  0xc1   :  { %3636 = vsyncadd [#allocation21], 4294966768 }
  0xc2   :  { %3637 = dma.done.wait [#allocation24], 512  }
  0xc3   :  { %3638 = vsyncadd [#allocation24], 4294966784  ;;  %v3655_v1 = vmov 0   ;;  %v202_v2 = vld [vmem:[#allocation8 + $0x8] sm:$0xff]  ;;  %v204_v3 = vld [vmem:[#allocation8 + $0x18] sm:$0xff]  ;;  %s4656_s12 = sld [smem:[#allocation33_spill]]  ;;  %v213_v20 = vlaneseq }
  0xc4   :  { %268 = vmatprep.mubr.bf16.mxu0 %v3655_v1  ;;  %553 = vmatprep.mubr.bf16.mxu1 %v3655_v1  ;;  %v201_v4 = vld [vmem:[#allocation8] sm:$0xff]  ;;  %v210_v5 = vpack.c.bf16 %v204_v3, %v202_v2  ;;  %v203_v6 = vld [vmem:[#allocation8 + $0x10] sm:$0xff]  ;;  %vm223_vm0 = vcmask 130048   ;;  %s3656_s0 = smov 64   ;;  %s3657_s19 = smov 96   ;;  %vm386_vm1 = vcmask 261120  }
  0xc5   :  { %3095 = vset.pattern.permute.xlu1 %v3655_v1  ;;  %3096 = vset.pattern.permute.xlu0 %v3655_v1  ;;  %v209_v9 = vpack.c.bf16 %v203_v6, %v201_v4  ;;  %v3945_v21 = vshrl.u32 %v213_v20, 7  ;;  %v211_v23 = vld [vmem:[#allocation11] sm:$0x3]  ;;  %s3658_s20 = smov 32   ;;  %vm2551_vm2 = vcmask 7168   ;;  %vm2553_vm3 = vcmask 15360  }
  0xc6   :  { %236 = vmatprep.subr.bf16.mxu0 %v210_v5  ;;  %vm2555_vm4 = vcmask 23552   ;;  %vm2557_vm5 = vcmask 31744   ;;  %vm2559_vm6 = vcmask 39936   ;;  %vm2561_vm7 = vcmask 48128  }
  0xc7   :  { %237 = vmatpush1.bf16.msra.mxu0 %v209_v9  ;;  %v215_v22 = vsub.s32 0, %v3945_v21  ;;  %v219_v24 = vsub.s32 1, %v3945_v21  ;;  %vm2563_vm8 = vcmask 56320   ;;  %vm2576_vm9 = vcmask 64512  }
  0xc8   :  { %vm3667_vm10 = vmmov 0   ;;  %vm2804_vm11 = vcmask 785408   ;;  %vm2861_vm13 = vcmask 97280   ;;  %vm2864_vm14 = vcmask 195584  }
  0xc9   :  { %v193_v7 = vld [vmem:[%s4656_s12] sm:$0xff]  ;;  %v194_v8 = vld [vmem:[%s4656_s12 + $0x8] sm:$0xff]  ;;  %v195_v11 = vld [vmem:[%s4656_s12 + $0x10] sm:$0xff]  ;;  %v216_v25 = vrot.slane %v211_v23, %v215_v22  ;;  %v220_v26 = vrot.slane %v211_v23, %v219_v24 }
  0xca   :  { %v205_v10 = vpack.c.bf16 %v194_v8, %v193_v7  ;;  %v196_v12 = vld [vmem:[%s4656_s12 + $0x18] sm:$0xff]  ;;  %v197_v14 = vld [vmem:[%s4656_s12 + $0x20] sm:$0xff]  ;;  %v198_v15 = vld [vmem:[%s4656_s12 + $0x28] sm:$0xff] }
  0xcb   :  { %v206_v13 = vpack.c.bf16 %v196_v12, %v195_v11  ;;  %v207_v16 = vpack.c.bf16 %v198_v15, %v197_v14  ;;  %v199_v17 = vld [vmem:[%s4656_s12 + $0x30] sm:$0xff]  ;;  %v200_v18 = vld [vmem:[%s4656_s12 + $0x38] sm:$0xff]  ;;  %v336_v23 = vld [vmem:[#allocation13 + $0x20] sm:$0xff] }
  0xcc   :  { %2887 = vmatmul.mubr.msk.bf16.vlgmr.msra.gmra.mrb[0].mxu0 %vm223_vm0, %v205_v10  ;;  %v208_v19 = vpack.c.bf16 %v200_v18, %v199_v17  ;;  %v333_v11 = vld [vmem:[#allocation13 + $0x8] sm:$0xff]  ;;  %v335_v12 = vld [vmem:[#allocation13 + $0x18] sm:$0xff]  ;;  %v334_v15 = vld [vmem:[#allocation13 + $0x10] sm:$0xff] }
  0xcd   :  { %278 = vmatprep.mubr.bf16.mxu0 %v3655_v1  ;;  %v3984_v14 = vpack.c.bf16 %v335_v12, %v333_v11  ;;  %v339_v17 = vld [vmem:[#allocation13 + $0x38] sm:$0xff] }
  0xcf   :  { %401 = vmatprep.subr.bf16.mxu0 %v3984_v14  ;;  %521 = vmatprep.subr.bf16.mxu1 %v3984_v14 }
  0xd4   :  { %2888 = vmatmul.mubr.msk.bf16.gmra.mrb[4].mxu0 %vm223_vm0, %v206_v13  ;;  %v332_v13 = vld [vmem:[#allocation13] sm:$0xff] }
  0xd5   :  { %288 = vmatprep.mubr.bf16.mxu0 %v3655_v1  ;;  %v3986_v18 = vpack.c.bf16 %v334_v15, %v332_v13 }
  0xd7   :  { %402 = vmatpush1.bf16.msra.mxu0 %v3986_v18  ;;  %522 = vmatpush1.bf16.msra.mxu1 %v3986_v18 }
  0xdc   :  { %2889 = vmatmul.mubr.msk.bf16.gmra.mrb[8].mxu0 %vm223_vm0, %v207_v16  ;;  %v337_v16 = vld [vmem:[#allocation13 + $0x28] sm:$0xff] }
  0xdd   :  { %298 = vmatprep.mubr.bf16.mxu0 %v3655_v1 }
  0xe4   :  { %2890 = vmatmul.mubr.msk.bf16.gmra.mrb[12].mxu0 %vm223_vm0, %v208_v19  ;;  %v3988_v19 = vpack.c.bf16 %v339_v17, %v337_v16 }
  0xe5   :  { %433 = vmatprep.mubr.bf16.mxu0 %v3655_v1 }
  0xe6   :  { %403 = vmatprep.subr.bf16.mxu0 %v3988_v19  ;;  %523 = vmatprep.subr.bf16.mxu1 %v3988_v19 }
 0x19f   :  { %v270_v27 = vpop.f32.mrb[0].mxu0 }
 0x1a0   :  { %v271_v28 = vadd.f32 %v270_v27, %v216_v25  ;;  %v272_v29 = vpop.f32.mrb[1].mxu0 }
 0x1a1   :  { %v3953_v30 = vadd.f32 %v272_v29, %v220_v26  ;;  %v274_v31 = vpop.f32.mrb[2].mxu0 }
 0x1a2   :  { %3105 = vtanh.f32 %v271_v28  ;;  %v3955_v32 = vadd.f32 %v274_v31, %v216_v25  ;;  %v276_v33 = vpop.f32.mrb[3].mxu0  ;;  %v2891_v61 = vmul.f32 -1.442695, %v271_v28 }
 0x1a3   :  { %v3957_v34 = vadd.f32 %v276_v33, %v220_v26 }
 0x1a7   :  { %v280_v35 = vpop.f32.mrb[4].mxu0 }
 0x1a8   :  { %v3959_v36 = vadd.f32 %v280_v35, %v216_v25  ;;  %v282_v37 = vpop.f32.mrb[5].mxu0 }
 0x1a9   :  { %v3961_v38 = vadd.f32 %v282_v37, %v220_v26  ;;  %v284_v39 = vpop.f32.mrb[6].mxu0 }
 0x1aa   :  { %v3963_v40 = vadd.f32 %v284_v39, %v216_v25  ;;  %v286_v41 = vpop.f32.mrb[7].mxu0 }
 0x1ab   :  { %v3965_v42 = vadd.f32 %v286_v41, %v220_v26 }
 0x1ac   :  { %v3106_v43 = vpop.eup %3105 }
 0x1ad   :  { %362 = vrot.lane.b32.xlu0 %v3106_v43, %s3656_s0 }
 0x1af   :  { %v290_v44 = vpop.f32.mrb[8].mxu0 }
 0x1b0   :  { %v3968_v45 = vadd.f32 %v290_v44, %v216_v25  ;;  %v292_v46 = vpop.f32.mrb[9].mxu0 }
 0x1b1   :  { %v3970_v47 = vadd.f32 %v292_v46, %v220_v26  ;;  %v294_v48 = vpop.f32.mrb[10].mxu0 }
 0x1b2   :  { %v3972_v49 = vadd.f32 %v294_v48, %v216_v25  ;;  %v296_v50 = vpop.f32.mrb[11].mxu0 }
 0x1b3   :  { %v3974_v51 = vadd.f32 %v296_v50, %v220_v26 }
 0x1b7   :  { %v300_v52 = vpop.f32.mrb[12].mxu0 }
 0x1b8   :  { %v3976_v53 = vadd.f32 %v300_v52, %v216_v25  ;;  %v302_v54 = vpop.f32.mrb[13].mxu0 }
 0x1b9   :  { %v3978_v55 = vadd.f32 %v302_v54, %v220_v26  ;;  %v304_v56 = vpop.f32.mrb[14].mxu0 }
 0x1ba   :  { %v3980_v57 = vadd.f32 %v304_v56, %v216_v25  ;;  %v306_v58 = vpop.f32.mrb[15].mxu0  ;;  %v338_v25 = vld [vmem:[#allocation13 + $0x30] sm:$0xff] }
 0x1bb   :  { %v307_v59 = vadd.f32 %v306_v58, %v220_v26  ;;  %v3993_v26 = vpack.c.bf16 %v338_v25, %v336_v23 }
 0x1bd   :  { %3107 = vtanh.f32 %v307_v59  ;;  %v2892_v0 = vmul.f32 -1.442695, %v307_v59  ;;  %404 = vmatpush1.bf16.msra.mxu0 %v3993_v26  ;;  %524 = vmatpush1.bf16.msra.mxu1 %v3993_v26 }
 0x1be   :  { %3109 = vpow2.f32 %v2891_v61  ;;  %633 = vmatprep.subr.bf16.mxu1 %v3984_v14  ;;  %857 = vmatprep.subr.bf16.mxu0 %v3984_v14 }
 0x1c7   :  { %v3108_v60 = vpop.eup %3107 }
 0x1c8   :  { %364 = vrot.lane.b32.xlu0 %v3108_v60, %s3656_s0  ;;  %v3110_v62 = vpop.eup %3109 }
 0x1c9   :  { %v352_v63 = vadd.f32 1.0, %v3110_v62 }
 0x1cb   :  { %3111 = vrcp.f32 %v352_v63 }
 0x1cc   :  { %3113 = vpow2.f32 %v2892_v0 }
 0x1d5   :  { %v3112_v2 = vpop.eup %3111 }
 0x1d6   :  { %v3114_v5 = vpop.eup %3113 }
 0x1d7   :  { %v353_v7 = vadd.f32 1.0, %v3114_v5 }
 0x21f   :  { %v363_v3 = vpop.permute.xlu0 %362 }
 0x220   :  { %v368_v4 = vmul.f32 %v3112_v2, %v363_v3 }
 0x222   :  { %3115 = vtanh.f32 %v368_v4 }
 0x223   :  { %3117 = vrcp.f32 %v353_v7 }
 0x22c   :  { %v3116_v6 = vpop.eup %3115 }
 0x22d   :  { %374 = vrot.lane.b32.xlu1 %v3116_v6, %s3657_s19  ;;  %v3118_v8 = vpop.eup %3117 }
 0x23a   :  { %v365_v9 = vpop.permute.xlu0 %364 }
 0x23b   :  { %v369_v10 = vmul.f32 %v3118_v8, %v365_v9 }
 0x23d   :  { %3119 = vtanh.f32 %v369_v10 }
 0x247   :  { %v3120_v27 = vpop.eup %3119 }
 0x248   :  { %376 = vrot.lane.b32.xlu1 %v3120_v27, %s3657_s19 }
 0x29f   :  { %v375_v28 = vpop.permute.xlu1 %374 }
 0x2a0   :  { %v4003_v31 = vmul.f32 %v3112_v2, %v375_v28 }
 0x2ba   :  { %v377_v29 = vpop.permute.xlu1 %376 }
 0x2bb   :  { %v4005_v33 = vmul.f32 %v3118_v8, %v377_v29 }
 0x2bd   :  { %v394_v35 = vpack.c.bf16 %v4005_v33, %v4003_v31 }
 0x2bf   :  { %396 = vrot.lane.b32.xlu0 %v394_v35, %s3658_s20 }
 0x331   :  { %v397_v37 = vpop.permute.xlu0 %396 }
 0x332   :  { %2893 = vmatmul.mubr.msk.bf16.vlgmr.msra.gmra.mrb[16].mxu0 %vm386_vm1, %v397_v37 }
 0x333   :  { %858 = vmatpush1.bf16.msra.mxu0 %v3986_v18  ;;  %889 = vmatprep.mubr.bf16.mxu0 %v3655_v1 }
 0x334   :  { %859 = vmatprep.subr.bf16.mxu0 %v3988_v19 }
 0x337   :  { %860 = vmatpush1.bf16.msra.mxu0 %v3993_v26 }
 0x338   :  { %1081 = vmatprep.subr.bf16.mxu0 %v3984_v14 }
 0x405   :  { %v435_v39 = vpop.f32.mrb[16].mxu0 }
 0x406   :  { %v444_v41 = vadd.f32 %v435_v39, %v3955_v32  ;;  %v437_v43 = vpop.f32.mrb[17].mxu0 }
 0x407   :  { %v438_v44 = vpop.f32.mrb[18].mxu0 }
 0x408   :  { %3121 = vtanh.f32 %v444_v41  ;;  %v439_v46 = vpop.f32.mrb[19].mxu0  ;;  %v2894_v54 = vmul.f32 -1.442695, %v444_v41 }
 0x409   :  { %v445_v48 = vadd.f32 %v439_v46, %v3978_v55 }
 0x40b   :  { %3123 = vtanh.f32 %v445_v48  ;;  %v2895_v56 = vmul.f32 -1.442695, %v445_v48 }
 0x40c   :  { %3125 = vpow2.f32 %v2894_v54 }
 0x40d   :  { %3127 = vpow2.f32 %v2895_v56 }
 0x412   :  { %v3122_v50 = vpop.eup %3121 }
 0x413   :  { %462 = vrot.lane.b32.xlu1 %v3122_v50, %s3656_s0 }
 0x415   :  { %v3124_v52 = vpop.eup %3123 }
 0x416   :  { %464 = vrot.lane.b32.xlu0 %v3124_v52, %s3656_s0  ;;  %v3126_v32 = vpop.eup %3125 }
 0x417   :  { %472 = vrot.lane.b32.xlu1 %v368_v4, %s3658_s20  ;;  %v3128_v58 = vpop.eup %3127  ;;  %v452_v59 = vadd.f32 1.0, %v3126_v32 }
 0x418   :  { %v453_v60 = vadd.f32 1.0, %v3128_v58 }
 0x419   :  { %3129 = vrcp.f32 %v452_v59 }
 0x41a   :  { %474 = vrot.lane.b32.xlu0 %v369_v10, %s3658_s20  ;;  %3131 = vrcp.f32 %v453_v60 }
 0x423   :  { %v3130_v55 = vpop.eup %3129 }
 0x424   :  { %v3132_v63 = vpop.eup %3131 }
 0x485   :  { %v463_v61 = vpop.permute.xlu1 %462 }
 0x486   :  { %v468_v62 = vmul.f32 %v3130_v55, %v463_v61 }
 0x488   :  { %482 = vrot.lane.b32.xlu1 %v468_v62, %s3658_s20  ;;  %v465_v0 = vpop.permute.xlu0 %464 }
 0x489   :  { %v469_v2 = vmul.f32 %v3132_v63, %v465_v0  ;;  %v473_v3 = vpop.permute.xlu1 %472 }
 0x48a   :  { %v478_v4 = vmul.f32 %v3130_v55, %v473_v3 }
 0x48b   :  { %484 = vrot.lane.b32.xlu0 %v469_v2, %s3658_s20 }
 0x48c   :  { %v475_v5 = vpop.permute.xlu0 %474 }
 0x48d   :  { %v479_v8 = vmul.f32 %v3132_v63, %v475_v5 }
 0x4fa   :  { %v483_v6 = vpop.permute.xlu1 %482 }
 0x4fb   :  { %v488_v7 = vadd.f32 %v483_v6, %v478_v4 }
 0x4fd   :  { %3133 = vtanh.f32 %v488_v7  ;;  %v485_v9 = vpop.permute.xlu0 %484 }
 0x4fe   :  { %v489_v10 = vadd.f32 %v485_v9, %v479_v8 }
 0x500   :  { %3135 = vtanh.f32 %v489_v10 }
 0x507   :  { %v3134_v11 = vpop.eup %3133 }
 0x508   :  { %494 = vrot.lane.b32.xlu1 %v3134_v11, %s3656_s0 }
 0x50a   :  { %v3136_v12 = vpop.eup %3135 }
 0x50b   :  { %496 = vrot.lane.b32.xlu0 %v3136_v12, %s3656_s0 }
 0x57a   :  { %v495_v13 = vpop.permute.xlu1 %494 }
 0x57b   :  { %v4026_v16 = vmul.f32 %v3130_v55, %v495_v13 }
 0x57d   :  { %v497_v15 = vpop.permute.xlu0 %496 }
 0x57e   :  { %v4028_v17 = vmul.f32 %v3132_v63, %v497_v15 }
 0x580   :  { %v514_v23 = vpack.c.bf16 %v4028_v17, %v4026_v16 }
 0x582   :  { %516 = vrot.lane.b32.xlu1 %v514_v23, %s3658_s20 }
 0x5f4   :  { %v517_v25 = vpop.permute.xlu1 %516 }
 0x5f5   :  { %2896 = vmatmul.mubr.msk.bf16.vlgmr.msra.gmra.mrb[0].mxu1 %vm386_vm1, %v517_v25 }
 0x5f6   :  { %634 = vmatpush1.bf16.msra.mxu1 %v3986_v18  ;;  %665 = vmatprep.mubr.bf16.mxu1 %v3655_v1 }
 0x5f7   :  { %635 = vmatprep.subr.bf16.mxu1 %v3988_v19 }
 0x5fa   :  { %636 = vmatpush1.bf16.msra.mxu1 %v3993_v26 }
 0x5fb   :  { %745 = vmatprep.subr.bf16.mxu1 %v3984_v14 }
 0x6c8   :  { %v555_v27 = vpop.f32.mrb[0].mxu1 }
 0x6c9   :  { %v564_v28 = vadd.f32 %v555_v27, %v3959_v36  ;;  %v557_v29 = vpop.f32.mrb[1].mxu1 }
 0x6ca   :  { %v558_v35 = vpop.f32.mrb[2].mxu1 }
 0x6cb   :  { %3137 = vtanh.f32 %v564_v28  ;;  %v559_v37 = vpop.f32.mrb[3].mxu1  ;;  %v2897_v44 = vmul.f32 -1.442695, %v564_v28 }
 0x6cc   :  { %v565_v39 = vadd.f32 %v559_v37, %v3974_v51 }
 0x6ce   :  { %3139 = vtanh.f32 %v565_v39  ;;  %v2898_v46 = vmul.f32 -1.442695, %v565_v39 }
 0x6cf   :  { %3141 = vpow2.f32 %v2897_v44 }
 0x6d0   :  { %3143 = vpow2.f32 %v2898_v46 }
 0x6d5   :  { %v3138_v41 = vpop.eup %3137 }
 0x6d6   :  { %582 = vrot.lane.b32.xlu0 %v3138_v41, %s3656_s0 }
 0x6d8   :  { %v3140_v43 = vpop.eup %3139 }
 0x6d9   :  { %584 = vrot.lane.b32.xlu1 %v3140_v43, %s3656_s0  ;;  %v3142_v48 = vpop.eup %3141 }
 0x6da   :  { %v3144_v50 = vpop.eup %3143  ;;  %v572_v36 = vadd.f32 1.0, %v3142_v48 }
 0x6db   :  { %v573_v52 = vadd.f32 1.0, %v3144_v50 }
 0x6dc   :  { %3145 = vrcp.f32 %v572_v36 }
 0x6dd   :  { %3147 = vrcp.f32 %v573_v52 }
 0x6e6   :  { %v3146_v54 = vpop.eup %3145 }
 0x6e7   :  { %v3148_v32 = vpop.eup %3147  ;;  %v590_v60 = vmul.f32 %v3146_v54, %v488_v7 }
 0x6e8   :  { %v591_v62 = vmul.f32 %v3148_v32, %v489_v10 }
 0x748   :  { %v583_v56 = vpop.permute.xlu0 %582 }
 0x749   :  { %v588_v51 = vmul.f32 %v3146_v54, %v583_v56 }
 0x74b   :  { %594 = vrot.lane.b32.xlu0 %v588_v51, %s3658_s20  ;;  %v585_v58 = vpop.permute.xlu1 %584 }
 0x74c   :  { %v589_v59 = vmul.f32 %v3148_v32, %v585_v58 }
 0x74e   :  { %596 = vrot.lane.b32.xlu1 %v589_v59, %s3658_s20 }
 0x7bd   :  { %v595_v55 = vpop.permute.xlu0 %594 }
 0x7be   :  { %v600_v61 = vadd.f32 %v595_v55, %v590_v60 }
 0x7c0   :  { %3149 = vtanh.f32 %v600_v61  ;;  %v597_v63 = vpop.permute.xlu1 %596 }
 0x7c1   :  { %v601_v0 = vadd.f32 %v597_v63, %v591_v62 }
 0x7c3   :  { %3151 = vtanh.f32 %v601_v0 }
 0x7ca   :  { %v3150_v2 = vpop.eup %3149 }
 0x7cb   :  { %606 = vrot.lane.b32.xlu0 %v3150_v2, %s3656_s0 }
 0x7cd   :  { %v3152_v3 = vpop.eup %3151 }
 0x7ce   :  { %608 = vrot.lane.b32.xlu1 %v3152_v3, %s3656_s0 }
 0x83d   :  { %v607_v4 = vpop.permute.xlu0 %606 }
 0x83e   :  { %v4047_v6 = vmul.f32 %v3146_v54, %v607_v4 }
 0x840   :  { %v609_v5 = vpop.permute.xlu1 %608 }
 0x841   :  { %v4049_v8 = vmul.f32 %v3148_v32, %v609_v5 }
 0x843   :  { %v626_v7 = vpack.c.bf16 %v4049_v8, %v4047_v6 }
 0x845   :  { %628 = vrot.lane.b32.xlu0 %v626_v7, %s3658_s20 }
 0x8b7   :  { %v629_v9 = vpop.permute.xlu0 %628 }
 0x8b8   :  { %2899 = vmatmul.mubr.msk.bf16.vlgmr.msra.gmra.mrb[4].mxu1 %vm386_vm1, %v629_v9 }
 0x8b9   :  { %746 = vmatpush1.bf16.msra.mxu1 %v3986_v18  ;;  %777 = vmatprep.mubr.bf16.mxu1 %v3655_v1 }
 0x8ba   :  { %747 = vmatprep.subr.bf16.mxu1 %v3988_v19 }
 0x8bd   :  { %748 = vmatpush1.bf16.msra.mxu1 %v3993_v26 }
 0x8be   :  { %969 = vmatprep.subr.bf16.mxu1 %v3984_v14 }
 0x98b   :  { %v667_v10 = vpop.f32.mrb[4].mxu1 }
 0x98c   :  { %v676_v11 = vadd.f32 %v667_v10, %v3963_v40  ;;  %v669_v12 = vpop.f32.mrb[5].mxu1 }
 0x98d   :  { %v670_v13 = vpop.f32.mrb[6].mxu1 }
 0x98e   :  { %3153 = vtanh.f32 %v676_v11  ;;  %v671_v15 = vpop.f32.mrb[7].mxu1  ;;  %v2900_v28 = vmul.f32 -1.442695, %v676_v11 }
 0x98f   :  { %v677_v23 = vadd.f32 %v671_v15, %v3970_v47 }
 0x991   :  { %3155 = vtanh.f32 %v677_v23  ;;  %v2901_v29 = vmul.f32 -1.442695, %v677_v23 }
 0x992   :  { %3157 = vpow2.f32 %v2900_v28 }
 0x993   :  { %3159 = vpow2.f32 %v2901_v29 }
 0x998   :  { %v3154_v25 = vpop.eup %3153 }
 0x999   :  { %694 = vrot.lane.b32.xlu1 %v3154_v25, %s3656_s0 }
 0x99b   :  { %v3156_v27 = vpop.eup %3155 }
 0x99c   :  { %696 = vrot.lane.b32.xlu0 %v3156_v27, %s3656_s0  ;;  %v3158_v14 = vpop.eup %3157 }
 0x99d   :  { %v3160_v35 = vpop.eup %3159  ;;  %v684_v40 = vadd.f32 1.0, %v3158_v14 }
 0x99e   :  { %v685_v37 = vadd.f32 1.0, %v3160_v35 }
 0x99f   :  { %3161 = vrcp.f32 %v684_v40 }
 0x9a0   :  { %3163 = vrcp.f32 %v685_v37 }
 0x9a9   :  { %v3162_v39 = vpop.eup %3161 }
 0x9aa   :  { %v3164_v43 = vpop.eup %3163  ;;  %v702_v48 = vmul.f32 %v3162_v39, %v600_v61 }
 0x9ab   :  { %v703_v52 = vmul.f32 %v3164_v43, %v601_v0 }
 0xa0b   :  { %v695_v41 = vpop.permute.xlu1 %694 }
 0xa0c   :  { %v700_v47 = vmul.f32 %v3162_v39, %v695_v41 }
 0xa0e   :  { %706 = vrot.lane.b32.xlu1 %v700_v47, %s3658_s20  ;;  %v697_v44 = vpop.permute.xlu0 %696 }
 0xa0f   :  { %v701_v46 = vmul.f32 %v3164_v43, %v697_v44 }
 0xa11   :  { %708 = vrot.lane.b32.xlu0 %v701_v46, %s3658_s20 }
 0xa80   :  { %v707_v50 = vpop.permute.xlu1 %706 }
 0xa81   :  { %v712_v36 = vadd.f32 %v707_v50, %v702_v48 }
 0xa83   :  { %3165 = vtanh.f32 %v712_v36  ;;  %v709_v54 = vpop.permute.xlu0 %708 }
 0xa84   :  { %v713_v56 = vadd.f32 %v709_v54, %v703_v52 }
 0xa86   :  { %3167 = vtanh.f32 %v713_v56 }
 0xa8d   :  { %v3166_v51 = vpop.eup %3165 }
 0xa8e   :  { %718 = vrot.lane.b32.xlu1 %v3166_v51, %s3656_s0 }
 0xa90   :  { %v3168_v32 = vpop.eup %3167 }
 0xa91   :  { %720 = vrot.lane.b32.xlu0 %v3168_v32, %s3656_s0 }
 0xb00   :  { %v719_v58 = vpop.permute.xlu1 %718 }
 0xb01   :  { %v4068_v60 = vmul.f32 %v3162_v39, %v719_v58 }
 0xb03   :  { %v721_v59 = vpop.permute.xlu0 %720 }
 0xb04   :  { %v4070_v55 = vmul.f32 %v3164_v43, %v721_v59 }
 0xb06   :  { %v738_v61 = vpack.c.bf16 %v4070_v55, %v4068_v60 }
 0xb08   :  { %740 = vrot.lane.b32.xlu1 %v738_v61, %s3658_s20 }
 0xb7a   :  { %v741_v62 = vpop.permute.xlu1 %740 }
 0xb7b   :  { %2902 = vmatmul.mubr.msk.bf16.vlgmr.msra.gmra.mrb[8].mxu1 %vm386_vm1, %v741_v62 }
 0xb7c   :  { %970 = vmatpush1.bf16.msra.mxu1 %v3986_v18  ;;  %1001 = vmatprep.mubr.bf16.mxu1 %v3655_v1 }
 0xb7d   :  { %971 = vmatprep.subr.bf16.mxu1 %v3988_v19 }
 0xb80   :  { %972 = vmatpush1.bf16.msra.mxu1 %v3993_v26 }
 0xc4e   :  { %v779_v63 = vpop.f32.mrb[8].mxu1 }
 0xc4f   :  { %v788_v0 = vadd.f32 %v779_v63, %v3968_v45  ;;  %v781_v2 = vpop.f32.mrb[9].mxu1 }
 0xc50   :  { %v782_v3 = vpop.f32.mrb[10].mxu1 }
 0xc51   :  { %3169 = vtanh.f32 %v788_v0  ;;  %v783_v4 = vpop.f32.mrb[11].mxu1  ;;  %v2903_v10 = vmul.f32 -1.442695, %v788_v0 }
 0xc52   :  { %v789_v5 = vadd.f32 %v783_v4, %v3965_v42 }
 0xc54   :  { %3171 = vtanh.f32 %v789_v5  ;;  %v2904_v11 = vmul.f32 -1.442695, %v789_v5 }
 0xc55   :  { %3173 = vpow2.f32 %v2903_v10 }
 0xc56   :  { %3175 = vpow2.f32 %v2904_v11 }
 0xc5b   :  { %v3170_v7 = vpop.eup %3169 }
 0xc5c   :  { %806 = vrot.lane.b32.xlu0 %v3170_v7, %s3656_s0 }
 0xc5e   :  { %v3172_v9 = vpop.eup %3171 }
 0xc5f   :  { %808 = vrot.lane.b32.xlu1 %v3172_v9, %s3656_s0  ;;  %v3174_v12 = vpop.eup %3173 }
 0xc60   :  { %v3176_v13 = vpop.eup %3175  ;;  %v796_v45 = vadd.f32 1.0, %v3174_v12 }
 0xc61   :  { %v797_v15 = vadd.f32 1.0, %v3176_v13 }
 0xc62   :  { %3177 = vrcp.f32 %v796_v45 }
 0xc63   :  { %3179 = vrcp.f32 %v797_v15 }
 0xc6c   :  { %v3178_v23 = vpop.eup %3177 }
 0xc6d   :  { %v3180_v27 = vpop.eup %3179  ;;  %v814_v14 = vmul.f32 %v3178_v23, %v712_v36 }
 0xc6e   :  { %v815_v37 = vmul.f32 %v3180_v27, %v713_v56 }
 0xcce   :  { %v807_v25 = vpop.permute.xlu0 %806 }
 0xccf   :  { %v812_v42 = vmul.f32 %v3178_v23, %v807_v25 }
 0xcd1   :  { %818 = vrot.lane.b32.xlu0 %v812_v42, %s3658_s20  ;;  %v809_v28 = vpop.permute.xlu1 %808 }
 0xcd2   :  { %v813_v29 = vmul.f32 %v3180_v27, %v809_v28 }
 0xcd4   :  { %820 = vrot.lane.b32.xlu1 %v813_v29, %s3658_s20 }
 0xd43   :  { %v819_v35 = vpop.permute.xlu0 %818 }
 0xd44   :  { %v824_v40 = vadd.f32 %v819_v35, %v814_v14 }
 0xd46   :  { %3181 = vtanh.f32 %v824_v40  ;;  %v821_v39 = vpop.permute.xlu1 %820 }
 0xd47   :  { %v825_v41 = vadd.f32 %v821_v39, %v815_v37 }
 0xd49   :  { %3183 = vtanh.f32 %v825_v41 }
 0xd50   :  { %v3182_v47 = vpop.eup %3181 }
 0xd51   :  { %830 = vrot.lane.b32.xlu0 %v3182_v47, %s3656_s0 }
 0xd53   :  { %v3184_v43 = vpop.eup %3183 }
 0xd54   :  { %832 = vrot.lane.b32.xlu1 %v3184_v43, %s3656_s0 }
 0xdc3   :  { %v831_v44 = vpop.permute.xlu0 %830 }
 0xdc4   :  { %v4088_v48 = vmul.f32 %v3178_v23, %v831_v44 }
 0xdc6   :  { %v833_v46 = vpop.permute.xlu1 %832 }
 0xdc7   :  { %v4090_v50 = vmul.f32 %v3180_v27, %v833_v46 }
 0xdc9   :  { %v850_v36 = vpack.c.bf16 %v4090_v50, %v4088_v48 }
 0xdcb   :  { %852 = vrot.lane.b32.xlu0 %v850_v36, %s3658_s20 }
 0xe3d   :  { %v853_v52 = vpop.permute.xlu0 %852 }
 0xe3e   :  { %2905 = vmatmul.mubr.msk.bf16.vlgmr.msra.gmra.mrb[20].mxu0 %vm386_vm1, %v853_v52 }
 0xe3f   :  { %1082 = vmatpush1.bf16.msra.mxu0 %v3986_v18  ;;  %1113 = vmatprep.mubr.bf16.mxu0 %v3655_v1 }
 0xe40   :  { %1083 = vmatprep.subr.bf16.mxu0 %v3988_v19 }
 0xe43   :  { %1084 = vmatpush1.bf16.msra.mxu0 %v3993_v26 }
 0xf11   :  { %v891_v54 = vpop.f32.mrb[20].mxu0 }
 0xf12   :  { %v900_v56 = vadd.f32 %v891_v54, %v3972_v49  ;;  %v893_v51 = vpop.f32.mrb[21].mxu0 }
 0xf13   :  { %v894_v32 = vpop.f32.mrb[22].mxu0 }
 0xf14   :  { %3185 = vtanh.f32 %v900_v56  ;;  %v895_v58 = vpop.f32.mrb[23].mxu0  ;;  %v2906_v62 = vmul.f32 -1.442695, %v900_v56 }
 0xf15   :  { %v901_v59 = vadd.f32 %v895_v58, %v3961_v38 }
 0xf17   :  { %3187 = vtanh.f32 %v901_v59  ;;  %v2907_v19 = vmul.f32 -1.442695, %v901_v59 }
 0xf18   :  { %3189 = vpow2.f32 %v2906_v62 }
 0xf19   :  { %3191 = vpow2.f32 %v2907_v19 }
 0xf1e   :  { %v3186_v61 = vpop.eup %3185 }
 0xf1f   :  { %918 = vrot.lane.b32.xlu1 %v3186_v61, %s3656_s0 }
 0xf21   :  { %v3188_v18 = vpop.eup %3187 }
 0xf22   :  { %920 = vrot.lane.b32.xlu0 %v3188_v18, %s3656_s0  ;;  %v3190_v26 = vpop.eup %3189 }
 0xf23   :  { %v3192_v63 = vpop.eup %3191  ;;  %v908_v49 = vadd.f32 1.0, %v3190_v26 }
 0xf24   :  { %v909_v0 = vadd.f32 1.0, %v3192_v63 }
 0xf25   :  { %3193 = vrcp.f32 %v908_v49 }
 0xf26   :  { %3195 = vrcp.f32 %v909_v0 }
 0xf2f   :  { %v3194_v2 = vpop.eup %3193 }
 0xf30   :  { %v3196_v4 = vpop.eup %3195  ;;  %v926_v9 = vmul.f32 %v3194_v2, %v824_v40 }
 0xf31   :  { %v927_v12 = vmul.f32 %v3196_v4, %v825_v41 }
 0xf91   :  { %v919_v3 = vpop.permute.xlu1 %918 }
 0xf92   :  { %v924_v38 = vmul.f32 %v3194_v2, %v919_v3 }
 0xf94   :  { %930 = vrot.lane.b32.xlu1 %v924_v38, %s3658_s20  ;;  %v921_v5 = vpop.permute.xlu0 %920 }
 0xf95   :  { %v925_v7 = vmul.f32 %v3196_v4, %v921_v5 }
 0xf97   :  { %932 = vrot.lane.b32.xlu0 %v925_v7, %s3658_s20 }
0x1006   :  { %v931_v10 = vpop.permute.xlu1 %930 }
0x1007   :  { %v936_v11 = vadd.f32 %v931_v10, %v926_v9 }
0x1009   :  { %3197 = vtanh.f32 %v936_v11  ;;  %v933_v13 = vpop.permute.xlu0 %932 }
0x100a   :  { %v937_v45 = vadd.f32 %v933_v13, %v927_v12 }
0x100c   :  { %3199 = vtanh.f32 %v937_v45 }
0x1013   :  { %v3198_v15 = vpop.eup %3197 }
0x1014   :  { %942 = vrot.lane.b32.xlu1 %v3198_v15, %s3656_s0 }
0x1016   :  { %v3200_v23 = vpop.eup %3199 }
0x1017   :  { %944 = vrot.lane.b32.xlu0 %v3200_v23, %s3656_s0 }
0x1086   :  { %v943_v25 = vpop.permute.xlu1 %942 }
0x1087   :  { %v4108_v27 = vmul.f32 %v3194_v2, %v943_v25 }
0x1089   :  { %v945_v42 = vpop.permute.xlu0 %944 }
0x108a   :  { %v4110_v28 = vmul.f32 %v3196_v4, %v945_v42 }
0x108c   :  { %v962_v29 = vpack.c.bf16 %v4110_v28, %v4108_v27 }
0x108e   :  { %964 = vrot.lane.b32.xlu1 %v962_v29, %s3658_s20 }
0x1100   :  { %v965_v14 = vpop.permute.xlu1 %964 }
0x1101   :  { %2908 = vmatmul.mubr.msk.bf16.vlgmr.msra.gmra.mrb[12].mxu1 %vm386_vm1, %v965_v14 }
0x1102   :  { %1277 = vmatprep.mubr.bf16.mxu1 %v3655_v1 }
0x11d4   :  { %v1003_v35 = vpop.f32.mrb[12].mxu1 }
0x11d5   :  { %v1012_v40 = vadd.f32 %v1003_v35, %v3976_v53  ;;  %v1005_v37 = vpop.f32.mrb[13].mxu1 }
0x11d6   :  { %v1006_v39 = vpop.f32.mrb[14].mxu1 }
0x11d7   :  { %3201 = vtanh.f32 %v1012_v40  ;;  %v1007_v41 = vpop.f32.mrb[15].mxu1  ;;  %v2909_v46 = vmul.f32 -1.442695, %v1012_v40 }
0x11d8   :  { %v1013_v47 = vadd.f32 %v1007_v41, %v3957_v34 }
0x11da   :  { %3203 = vtanh.f32 %v1013_v47  ;;  %v2910_v36 = vmul.f32 -1.442695, %v1013_v47 }
0x11db   :  { %3205 = vpow2.f32 %v2909_v46 }
0x11dc   :  { %3207 = vpow2.f32 %v2910_v36 }
0x11e1   :  { %v3202_v43 = vpop.eup %3201 }
0x11e2   :  { %1030 = vrot.lane.b32.xlu0 %v3202_v43, %s3656_s0 }
0x11e4   :  { %v3204_v44 = vpop.eup %3203 }
0x11e5   :  { %1032 = vrot.lane.b32.xlu1 %v3204_v44, %s3656_s0  ;;  %v3206_v52 = vpop.eup %3205 }
0x11e6   :  { %v3208_v54 = vpop.eup %3207  ;;  %v1020_v53 = vadd.f32 1.0, %v3206_v52 }
0x11e7   :  { %v1021_v56 = vadd.f32 1.0, %v3208_v54 }
0x11e8   :  { %3209 = vrcp.f32 %v1020_v53 }
0x11e9   :  { %3211 = vrcp.f32 %v1021_v56 }
0x11f2   :  { %v3210_v51 = vpop.eup %3209 }
0x11f3   :  { %v3212_v58 = vpop.eup %3211  ;;  %v1038_v18 = vmul.f32 %v3210_v51, %v936_v11 }
0x11f4   :  { %v1039_v26 = vmul.f32 %v3212_v58, %v937_v45 }
0x1254   :  { %v1031_v32 = vpop.permute.xlu0 %1030 }
0x1255   :  { %v1036_v34 = vmul.f32 %v3210_v51, %v1031_v32  ;;  %v1218_v32 = vld [vmem:[#allocation14 + $0x8] sm:$0xff] }
0x1257   :  { %1042 = vrot.lane.b32.xlu0 %v1036_v34, %s3658_s20  ;;  %v1033_v59 = vpop.permute.xlu1 %1032  ;;  %v1220_v34 = vld [vmem:[#allocation14 + $0x18] sm:$0xff] }
0x1258   :  { %v1037_v61 = vmul.f32 %v3212_v58, %v1033_v59  ;;  %v1219_v59 = vld [vmem:[#allocation14 + $0x10] sm:$0xff] }
0x125a   :  { %1044 = vrot.lane.b32.xlu1 %v1037_v61, %s3658_s20  ;;  %v1224_v61 = vld [vmem:[#allocation14 + $0x38] sm:$0xff] }
0x12c9   :  { %v1043_v62 = vpop.permute.xlu0 %1042 }
0x12ca   :  { %v1048_v19 = vadd.f32 %v1043_v62, %v1038_v18  ;;  %v1223_v62 = vld [vmem:[#allocation14 + $0x30] sm:$0xff] }
0x12cc   :  { %3213 = vtanh.f32 %v1048_v19  ;;  %v1045_v63 = vpop.permute.xlu1 %1044 }
0x12cd   :  { %v1049_v49 = vadd.f32 %v1045_v63, %v1039_v26 }
0x12cf   :  { %3215 = vtanh.f32 %v1049_v49 }
0x12d6   :  { %v3214_v0 = vpop.eup %3213 }
0x12d7   :  { %1054 = vrot.lane.b32.xlu0 %v3214_v0, %s3656_s0 }
0x12d9   :  { %v3216_v2 = vpop.eup %3215 }
0x12da   :  { %1056 = vrot.lane.b32.xlu1 %v3216_v2, %s3656_s0 }
0x1349   :  { %v1055_v3 = vpop.permute.xlu0 %1054 }
0x134a   :  { %v1060_v4 = vmul.f32 %v3210_v51, %v1055_v3 }
0x134c   :  { %v1057_v38 = vpop.permute.xlu1 %1056 }
0x134d   :  { %v1061_v5 = vmul.f32 %v3212_v58, %v1057_v38  ;;  %v1217_v58 = vld [vmem:[#allocation14] sm:$0xff] }
0x134f   :  { %v1074_v7 = vpack.c.bf16 %v1061_v5, %v1060_v4 }
0x1351   :  { %1076 = vrot.lane.b32.xlu0 %v1074_v7, %s3658_s20 }
0x13c3   :  { %v1077_v9 = vpop.permute.xlu0 %1076 }
0x13c4   :  { %2911 = vmatmul.mubr.msk.bf16.vlgmr.msra.gmra.mrb[24].mxu0 %vm386_vm1, %v1077_v9  ;;  %v1203_v9 = vld [vmem:[%s4633_s4 + $0x10] sm:$0xff] }
0x13c5   :  { %1547 = vmatprep.mubr.bf16.mxu0 %v3655_v1 }
0x1497   :  { %v1115_v10 = vpop.f32.mrb[24].mxu0 }
0x1498   :  { %v1124_v11 = vadd.f32 %v1115_v10, %v3980_v57  ;;  %v1117_v12 = vpop.f32.mrb[25].mxu0  ;;  %v1206_v10 = vld [vmem:[%s4633_s4 + $0x28] sm:$0xff] }
0x1499   :  { %v1118_v13 = vpop.f32.mrb[26].mxu0 }
0x149a   :  { %3217 = vtanh.f32 %v1124_v11  ;;  %v1119_v45 = vpop.f32.mrb[27].mxu0  ;;  %v2912_v42 = vmul.f32 -1.442695, %v1124_v11  ;;  %v1208_v11 = vld [vmem:[%s4633_s4 + $0x38] sm:$0xff] }
0x149b   :  { %v1125_v15 = vadd.f32 %v1119_v45, %v3953_v30 }
0x149d   :  { %3219 = vtanh.f32 %v1125_v15  ;;  %v2913_v29 = vmul.f32 -1.442695, %v1125_v15 }
0x149e   :  { %3221 = vpow2.f32 %v2912_v42  ;;  %v1205_v42 = vld [vmem:[%s4633_s4 + $0x20] sm:$0xff] }
0x149f   :  { %3223 = vpow2.f32 %v2913_v29  ;;  %v1207_v29 = vld [vmem:[%s4633_s4 + $0x30] sm:$0xff] }
0x14a4   :  { %v3218_v23 = vpop.eup %3217 }
0x14a5   :  { %1142 = vrot.lane.b32.xlu0 %v3218_v23, %s3656_s0 }
0x14a7   :  { %v3220_v25 = vpop.eup %3219 }
0x14a8   :  { %1144 = vrot.lane.b32.xlu1 %v3220_v25, %s3656_s0  ;;  %v3222_v14 = vpop.eup %3221  ;;  %v1216_v25 = vpack.c.bf16 %v1208_v11, %v1206_v10 }
0x14a9   :  { %v3224_v35 = vpop.eup %3223  ;;  %v1132_v57 = vadd.f32 1.0, %v3222_v14 }
0x14aa   :  { %v1133_v40 = vadd.f32 1.0, %v3224_v35  ;;  %v1215_v35 = vpack.c.bf16 %v1207_v29, %v1205_v42 }
0x14ab   :  { %3225 = vrcp.f32 %v1132_v57 }
0x14ac   :  { %3227 = vrcp.f32 %v1133_v40 }
0x14b5   :  { %v4132_v37 = vpop.eup %3225 }
0x14b6   :  { %v3228_v41 = vpop.eup %3227  ;;  %v1150_v44 = vmul.f32 %v4132_v37, %v1048_v19 }
0x14b7   :  { %v1151_v52 = vmul.f32 %v3228_v41, %v1049_v49 }
0x1517   :  { %v1143_v30 = vpop.permute.xlu0 %1142 }
0x1518   :  { %v1148_v39 = vmul.f32 %v4132_v37, %v1143_v30 }
0x151a   :  { %1154 = vrot.lane.b32.xlu0 %v1148_v39, %s3658_s20  ;;  %v1145_v47 = vpop.permute.xlu1 %1144 }
0x151b   :  { %v1149_v43 = vmul.f32 %v3228_v41, %v1145_v47 }
0x151d   :  { %1156 = vrot.lane.b32.xlu1 %v1149_v43, %s3658_s20 }
0x158c   :  { %v1155_v46 = vpop.permute.xlu0 %1154 }
0x158d   :  { %v1160_v36 = vadd.f32 %v1155_v46, %v1150_v44 }
0x158f   :  { %3229 = vtanh.f32 %v1160_v36  ;;  %v1157_v54 = vpop.permute.xlu1 %1156 }
0x1590   :  { %v1161_v53 = vadd.f32 %v1157_v54, %v1151_v52 }
0x1592   :  { %3231 = vtanh.f32 %v1161_v53 }
0x1599   :  { %v3230_v56 = vpop.eup %3229 }
0x159a   :  { %1166 = vrot.lane.b32.xlu0 %v3230_v56, %s3656_s0 }
0x159c   :  { %v3232_v51 = vpop.eup %3231 }
0x159d   :  { %1168 = vrot.lane.b32.xlu1 %v3232_v51, %s3656_s0 }
0x15a1   :  { %1069 = vrot.lane.b32.xlu1 %v1061_v5, %s3658_s20 }
0x15a5   :  { %845 = vrot.lane.b32.xlu1 %v4090_v50, %s3658_s20  ;;  %v1230_v50 = vpack.c.bf16 %v1220_v34, %v1218_v32 }
0x15a7   :  { %1245 = vmatprep.subr.bf16.mxu1 %v1230_v50 }
0x15a9   :  { %621 = vrot.lane.b32.xlu1 %v4049_v8, %s3658_s20  ;;  %v1229_v8 = vpack.c.bf16 %v1219_v59, %v1217_v58 }
0x15ab   :  { %1246 = vmatpush1.bf16.msra.mxu1 %v1229_v8 }
0x15ad   :  { %389 = vrot.lane.b32.xlu1 %v4005_v33, %s3658_s20  ;;  %v1222_v33 = vld [vmem:[#allocation14 + $0x28] sm:$0xff] }
0x15ae   :  { %v1232_v18 = vpack.c.bf16 %v1224_v61, %v1222_v33 }
0x15b0   :  { %1247 = vmatprep.subr.bf16.mxu1 %v1232_v18 }
0x15b1   :  { %383 = vrot.lane.b32.xlu1 %v4003_v31, %s3658_s20  ;;  %v1221_v31 = vld [vmem:[#allocation14 + $0x20] sm:$0xff] }
0x15b2   :  { %v1231_v19 = vpack.c.bf16 %v1223_v62, %v1221_v31  ;;  %v1403_v31 = vld [vmem:[#allocation16] sm:$0x3] }
0x15b3   :  { %v1408_v62 = vrot.slane %v1403_v31, %v215_v22 }
0x15b4   :  { %1248 = vmatpush1.bf16.msra.mxu1 %v1231_v19  ;;  %v1412_v19 = vrot.slane %v1403_v31, %v219_v24 }
0x15b5   :  { %615 = vrot.lane.b32.xlu1 %v4047_v6, %s3658_s20  ;;  %v1202_v6 = vld [vmem:[%s4633_s4 + $0x8] sm:$0xff] }
0x15b9   :  { %839 = vrot.lane.b32.xlu1 %v4088_v48, %s3658_s20  ;;  %v1204_v48 = vld [vmem:[%s4633_s4 + $0x18] sm:$0xff] }
0x15ba   :  { %v1214_v26 = vpack.c.bf16 %v1204_v48, %v1202_v6 }
0x15bc   :  { %1330 = vmatprep.subr.bf16.mxu1 %v1214_v26 }
0x15bd   :  { %1063 = vrot.lane.b32.xlu1 %v1060_v4, %s3658_s20 }
0x160f   :  { %v1169_v63 = vpop.permute.xlu1 %1168 }
0x1610   :  { %v1173_v49 = vmul.f32 %v3228_v41, %v1169_v63 }
0x1612   :  { %1181 = vrot.lane.b32.xlu0 %v1173_v49, %s3658_s20 }
0x1613   :  { %v1070_v0 = vpop.permute.xlu1 %1069 }
0x1614   :  { %1073 = vst.msk [vmem:[#allocation4 + $0x8] sm:$0xff] %vm386_vm1, %v1070_v0 }
0x1616   :  { %957 = vrot.lane.b32.xlu0 %v4110_v28, %s3658_s20 }
0x1617   :  { %v846_v2 = vpop.permute.xlu1 %845 }
0x1618   :  { %849 = vst.msk [vmem:[#allocation4 + $0x18] sm:$0xff] %vm386_vm1, %v846_v2 }
0x161a   :  { %733 = vrot.lane.b32.xlu0 %v4070_v55, %s3658_s20  ;;  %v1167_v55 = vpop.permute.xlu0 %1166 }
0x161b   :  { %v622_v3 = vpop.permute.xlu1 %621  ;;  %v1172_v5 = vmul.f32 %v4132_v37, %v1167_v55  ;;  %v1194_v45 = vld [vmem:[#allocation4 + $0x8] sm:$0xff] }
0x161c   :  { %625 = vst.msk [vmem:[#allocation4 + $0x28] sm:$0xff] %vm386_vm1, %v622_v3 }
0x161e   :  { %509 = vrot.lane.b32.xlu0 %v4028_v17, %s3658_s20 }
0x161f   :  { %v390_v38 = vpop.permute.xlu1 %389  ;;  %v1196_v37 = vld [vmem:[#allocation4 + $0x18] sm:$0xff] }
0x1620   :  { %393 = vst.msk [vmem:[#allocation4 + $0x38] sm:$0xff] %vm386_vm1, %v390_v38 }
0x1622   :  { %503 = vrot.lane.b32.xlu0 %v4026_v16, %s3658_s20 }
0x1623   :  { %v384_v4 = vpop.permute.xlu1 %383  ;;  %v1198_v43 = vld [vmem:[#allocation4 + $0x28] sm:$0xff] }
0x1624   :  { %387 = vst.msk [vmem:[#allocation3] sm:$0xff] %vm386_vm1, %v384_v4 }
0x1626   :  { %727 = vrot.lane.b32.xlu0 %v4068_v60, %s3658_s20 }
0x1627   :  { %v616_v28 = vpop.permute.xlu1 %615  ;;  %v1200_v52 = vld [vmem:[#allocation4 + $0x38] sm:$0xff] }
0x1628   :  { %619 = vst.msk [vmem:[#allocation3 + $0x10] sm:$0xff] %vm386_vm1, %v616_v28 }
0x162a   :  { %951 = vrot.lane.b32.xlu0 %v4108_v27, %s3658_s20  ;;  %v1201_v27 = vld [vmem:[%s4633_s4] sm:$0xff] }
0x162b   :  { %v840_v17 = vpop.permute.xlu1 %839  ;;  %v1213_v15 = vpack.c.bf16 %v1203_v9, %v1201_v27  ;;  %v1185_v56 = vld [vmem:[#allocation3] sm:$0xff] }
0x162c   :  { %843 = vst.msk [vmem:[#allocation3 + $0x20] sm:$0xff] %vm386_vm1, %v840_v17 }
0x162e   :  { %1175 = vrot.lane.b32.xlu0 %v1172_v5, %s3658_s20 }
0x162f   :  { %v1064_v16 = vpop.permute.xlu1 %1063  ;;  %v1187_v34 = vld [vmem:[#allocation3 + $0x10] sm:$0xff] }
0x1630   :  { %1067 = vst.msk [vmem:[#allocation3 + $0x30] sm:$0xff] %vm386_vm1, %v1064_v16 }
0x1633   :  { %v1189_v59 = vld [vmem:[#allocation3 + $0x20] sm:$0xff] }
0x1637   :  { %v1191_v61 = vld [vmem:[#allocation3 + $0x30] sm:$0xff] }
0x1684   :  { %v1182_v7 = vpop.permute.xlu0 %1181 }
0x1685   :  { %1184 = vst.msk [vmem:[#allocation4] sm:$0xff] %vm386_vm1, %v1182_v7 }
0x1688   :  { %v958_v60 = vpop.permute.xlu0 %957 }
0x1689   :  { %961 = vst.msk [vmem:[#allocation4 + $0x10] sm:$0xff] %vm386_vm1, %v958_v60 }
0x168c   :  { %v734_v12 = vpop.permute.xlu0 %733  ;;  %v1193_v13 = vld [vmem:[#allocation4] sm:$0xff] }
0x168d   :  { %737 = vst.msk [vmem:[#allocation4 + $0x20] sm:$0xff] %vm386_vm1, %v734_v12  ;;  %v1225_v23 = vpack.c.bf16 %v1194_v45, %v1193_v13 }
0x168f   :  { %2914 = vmatmul.mubr.msk.bf16.vlgmr.msra.gmra.mrb[16].mxu1 %vm386_vm1, %v1225_v23 }
0x1690   :  { %1331 = vmatpush1.bf16.msra.mxu1 %v1213_v15  ;;  %v510_v14 = vpop.permute.xlu0 %509  ;;  %1287 = vmatprep.mubr.bf16.mxu1 %v3655_v1  ;;  %v1195_v57 = vld [vmem:[#allocation4 + $0x10] sm:$0xff] }
0x1691   :  { %513 = vst.msk [vmem:[#allocation4 + $0x30] sm:$0xff] %vm386_vm1, %v510_v14  ;;  %1332 = vmatprep.subr.bf16.mxu1 %v1216_v25  ;;  %v1226_v30 = vpack.c.bf16 %v1196_v37, %v1195_v57 }
0x1694   :  { %v504_v40 = vpop.permute.xlu0 %503  ;;  %1333 = vmatpush1.bf16.msra.mxu1 %v1215_v35  ;;  %v1197_v41 = vld [vmem:[#allocation4 + $0x20] sm:$0xff] }
0x1695   :  { %507 = vst.msk [vmem:[#allocation3 + $0x8] sm:$0xff] %vm386_vm1, %v504_v40  ;;  %v1227_v44 = vpack.c.bf16 %v1198_v43, %v1197_v41 }
0x1697   :  { %2915 = vmatmul.mubr.msk.bf16.gmra.mrb[20].mxu1 %vm386_vm1, %v1226_v30 }
0x1698   :  { %v728_v39 = vpop.permute.xlu0 %727  ;;  %1297 = vmatprep.mubr.bf16.mxu1 %v3655_v1  ;;  %v1199_v36 = vld [vmem:[#allocation4 + $0x30] sm:$0xff] }
0x1699   :  { %731 = vst.msk [vmem:[#allocation3 + $0x18] sm:$0xff] %vm386_vm1, %v728_v39  ;;  %v1228_v54 = vpack.c.bf16 %v1200_v52, %v1199_v36 }
0x169c   :  { %v952_v47 = vpop.permute.xlu0 %951  ;;  %v1186_v53 = vld [vmem:[#allocation3 + $0x8] sm:$0xff] }
0x169d   :  { %955 = vst.msk [vmem:[#allocation3 + $0x28] sm:$0xff] %vm386_vm1, %v952_v47  ;;  %v1209_v51 = vpack.c.bf16 %v1186_v53, %v1185_v56  ;;  %v1448_v53 = vld [vmem:[#allocation17 + $0x8] sm:$0xff]  ;;  %v1450_v56 = vld [vmem:[#allocation17 + $0x18] sm:$0xff] }
0x169f   :  { %2916 = vmatmul.mubr.msk.bf16.gmra.mrb[24].mxu1 %vm386_vm1, %v1227_v44 }
0x16a0   :  { %v1176_v46 = vpop.permute.xlu0 %1175  ;;  %1307 = vmatprep.mubr.bf16.mxu1 %v3655_v1  ;;  %v1188_v32 = vld [vmem:[#allocation3 + $0x18] sm:$0xff] }
0x16a1   :  { %1179 = vst.msk [vmem:[#allocation3 + $0x38] sm:$0xff] %vm386_vm1, %v1176_v46  ;;  %v1210_v50 = vpack.c.bf16 %v1188_v32, %v1187_v34  ;;  %v4259_v32 = vpack.c.bf16 %v1450_v56, %v1448_v53  ;;  %v1449_v34 = vld [vmem:[#allocation17 + $0x10] sm:$0xff] }
0x16a3   :  { %1515 = vmatprep.subr.bf16.mxu0 %v4259_v32 }
0x16a4   :  { %v1190_v58 = vld [vmem:[#allocation3 + $0x28] sm:$0xff] }
0x16a5   :  { %v1211_v8 = vpack.c.bf16 %v1190_v58, %v1189_v59  ;;  %v1454_v58 = vld [vmem:[#allocation17 + $0x38] sm:$0xff] }
0x16a7   :  { %2917 = vmatmul.mubr.msk.bf16.gmra.mrb[28].mxu1 %vm386_vm1, %v1228_v54 }
0x16a8   :  { %1362 = vmatprep.mubr.bf16.mxu1 %v3655_v1  ;;  %v1192_v33 = vld [vmem:[#allocation3 + $0x38] sm:$0xff] }
0x16a9   :  { %v1212_v18 = vpack.c.bf16 %v1192_v33, %v1191_v61  ;;  %v1451_v33 = vld [vmem:[#allocation17 + $0x20] sm:$0xff]  ;;  %v1453_v61 = vld [vmem:[#allocation17 + $0x30] sm:$0xff] }
0x16af   :  { %2918 = vmatmul.mubr.msk.bf16.vlgmr.msra.gmra.mrb[16].mxu1 %vm386_vm1, %v1209_v51  ;;  %v1447_v51 = vld [vmem:[#allocation17] sm:$0xff] }
0x16b0   :  { %1372 = vmatprep.mubr.bf16.mxu1 %v3655_v1  ;;  %v4261_v59 = vpack.c.bf16 %v1449_v34, %v1447_v51 }
0x16b2   :  { %1516 = vmatpush1.bf16.msra.mxu0 %v4261_v59 }
0x16b7   :  { %2919 = vmatmul.mubr.msk.bf16.gmra.mrb[20].mxu1 %vm386_vm1, %v1210_v50  ;;  %v1452_v50 = vld [vmem:[#allocation17 + $0x28] sm:$0xff] }
0x16b8   :  { %1382 = vmatprep.mubr.bf16.mxu1 %v3655_v1 }
0x16bf   :  { %2920 = vmatmul.mubr.msk.bf16.gmra.mrb[24].mxu1 %vm386_vm1, %v1211_v8  ;;  %v4263_v8 = vpack.c.bf16 %v1454_v58, %v1452_v50 }
0x16c0   :  { %1392 = vmatprep.mubr.bf16.mxu1 %v3655_v1 }
0x16c1   :  { %1517 = vmatprep.subr.bf16.mxu0 %v4263_v8 }
0x16c7   :  { %2921 = vmatmul.mubr.msk.bf16.gmra.mrb[28].mxu1 %vm386_vm1, %v1212_v18  ;;  %v4267_v18 = vpack.c.bf16 %v1453_v61, %v1451_v33 }
0x16c9   :  { %1518 = vmatpush1.bf16.msra.mxu0 %v4267_v18 }
0x16ca   :  { %1635 = vmatprep.subr.bf16.mxu0 %v4259_v32 }
0x1782   :  { %v1364_v6 = vpop.f32.mrb[16].mxu1 }
0x1783   :  { %v1415_v48 = vadd.f32 %v1408_v62, %v1364_v6  ;;  %v1366_v26 = vpop.f32.mrb[17].mxu1 }
0x1784   :  { %v4228_v63 = vadd.f32 %v1412_v19, %v1366_v26  ;;  %v1368_v49 = vpop.f32.mrb[18].mxu1 }
0x1785   :  { %3233 = vtanh.f32 %v1415_v48  ;;  %v4230_v0 = vadd.f32 %v1408_v62, %v1368_v49  ;;  %v1370_v2 = vpop.f32.mrb[19].mxu1  ;;  %v2922_v57 = vmul.f32 -1.442695, %v1415_v48 }
0x1786   :  { %v4232_v3 = vadd.f32 %v1412_v19, %v1370_v2 }
0x178a   :  { %v1374_v38 = vpop.f32.mrb[20].mxu1 }
0x178b   :  { %v4234_v4 = vadd.f32 %v1408_v62, %v1374_v38  ;;  %v1376_v28 = vpop.f32.mrb[21].mxu1 }
0x178c   :  { %v4236_v22 = vadd.f32 %v1412_v19, %v1376_v28  ;;  %v1378_v21 = vpop.f32.mrb[22].mxu1 }
0x178d   :  { %v4238_v24 = vadd.f32 %v1408_v62, %v1378_v21  ;;  %v1380_v55 = vpop.f32.mrb[23].mxu1 }
0x178e   :  { %v4240_v17 = vadd.f32 %v1412_v19, %v1380_v55 }
0x178f   :  { %v3234_v5 = vpop.eup %3233 }
0x1790   :  { %1477 = vrot.lane.b32.xlu1 %v3234_v5, %s3656_s0 }
0x1792   :  { %v1384_v16 = vpop.f32.mrb[24].mxu1 }
0x1793   :  { %v4243_v7 = vadd.f32 %v1408_v62, %v1384_v16  ;;  %v1386_v60 = vpop.f32.mrb[25].mxu1 }
0x1794   :  { %v4245_v27 = vadd.f32 %v1412_v19, %v1386_v60  ;;  %v1388_v9 = vpop.f32.mrb[26].mxu1 }
0x1795   :  { %v4247_v10 = vadd.f32 %v1408_v62, %v1388_v9  ;;  %v1390_v11 = vpop.f32.mrb[27].mxu1 }
0x1796   :  { %v4249_v12 = vadd.f32 %v1412_v19, %v1390_v11 }
0x179a   :  { %v1394_v13 = vpop.f32.mrb[28].mxu1 }
0x179b   :  { %v4251_v45 = vadd.f32 %v1408_v62, %v1394_v13  ;;  %v1396_v15 = vpop.f32.mrb[29].mxu1 }
0x179c   :  { %v4253_v23 = vadd.f32 %v1412_v19, %v1396_v15  ;;  %v1398_v25 = vpop.f32.mrb[30].mxu1 }
0x179d   :  { %v4255_v42 = vadd.f32 %v1408_v62, %v1398_v25  ;;  %v1400_v29 = vpop.f32.mrb[31].mxu1 }
0x179e   :  { %v1430_v14 = vadd.f32 %v1412_v19, %v1400_v29 }
0x17a0   :  { %3235 = vtanh.f32 %v1430_v14  ;;  %v2923_v30 = vmul.f32 -1.442695, %v1430_v14 }
0x17a1   :  { %3237 = vpow2.f32 %v2922_v57 }
0x17aa   :  { %v3236_v35 = vpop.eup %3235 }
0x17ab   :  { %1479 = vrot.lane.b32.xlu0 %v3236_v35, %s3656_s0  ;;  %v3238_v40 = vpop.eup %3237 }
0x17ac   :  { %v1467_v37 = vadd.f32 1.0, %v3238_v40 }
0x17ae   :  { %3239 = vrcp.f32 %v1467_v37 }
0x17af   :  { %3241 = vpow2.f32 %v2923_v30 }
0x17b8   :  { %v3240_v39 = vpop.eup %3239 }
0x17b9   :  { %v3242_v43 = vpop.eup %3241 }
0x17ba   :  { %v1468_v46 = vadd.f32 1.0, %v3242_v43 }
0x1802   :  { %v1478_v41 = vpop.permute.xlu1 %1477 }
0x1803   :  { %v1483_v47 = vmul.f32 %v3240_v39, %v1478_v41 }
0x1805   :  { %3243 = vtanh.f32 %v1483_v47 }
0x1806   :  { %3245 = vrcp.f32 %v1468_v46 }
0x180f   :  { %v3244_v44 = vpop.eup %3243 }
0x1810   :  { %1489 = vrot.lane.b32.xlu1 %v3244_v44, %s3657_s19  ;;  %v3246_v36 = vpop.eup %3245 }
0x181d   :  { %v1480_v52 = vpop.permute.xlu0 %1479 }
0x181e   :  { %v1484_v54 = vmul.f32 %v3246_v36, %v1480_v52 }
0x1820   :  { %3247 = vtanh.f32 %v1484_v54 }
0x182a   :  { %v3248_v31 = vpop.eup %3247 }
0x182b   :  { %1491 = vrot.lane.b32.xlu0 %v3248_v31, %s3657_s19 }
0x1882   :  { %v1490_v62 = vpop.permute.xlu1 %1489 }
0x1883   :  { %v4273_v6 = vmul.f32 %v3240_v39, %v1490_v62 }
0x189d   :  { %v1492_v19 = vpop.permute.xlu0 %1491 }
0x189e   :  { %v4275_v48 = vmul.f32 %v3246_v36, %v1492_v19 }
0x18a0   :  { %v1508_v26 = vpack.c.bf16 %v4275_v48, %v4273_v6 }
0x18a2   :  { %1510 = vrot.lane.b32.xlu1 %v1508_v26, %s3658_s20 }
0x1914   :  { %v1511_v49 = vpop.permute.xlu1 %1510 }
0x1915   :  { %2924 = vmatmul.mubr.msk.bf16.vlgmr.msra.gmra.mrb[28].mxu0 %vm386_vm1, %v1511_v49 }
0x1916   :  { %1636 = vmatpush1.bf16.msra.mxu0 %v4261_v59  ;;  %1667 = vmatprep.mubr.bf16.mxu0 %v3655_v1 }
0x1917   :  { %1637 = vmatprep.subr.bf16.mxu0 %v4263_v8 }
0x191a   :  { %1638 = vmatpush1.bf16.msra.mxu0 %v4267_v18 }
0x191b   :  { %1747 = vmatprep.subr.bf16.mxu0 %v4259_v32 }
0x19e8   :  { %v1549_v2 = vpop.f32.mrb[28].mxu0 }
0x19e9   :  { %v1558_v38 = vadd.f32 %v1549_v2, %v4230_v0  ;;  %v1551_v28 = vpop.f32.mrb[29].mxu0 }
0x19ea   :  { %v1552_v21 = vpop.f32.mrb[30].mxu0 }
0x19eb   :  { %3249 = vtanh.f32 %v1558_v38  ;;  %v1553_v55 = vpop.f32.mrb[31].mxu0  ;;  %v2925_v9 = vmul.f32 -1.442695, %v1558_v38 }
0x19ec   :  { %v1559_v5 = vadd.f32 %v1553_v55, %v4253_v23 }
0x19ee   :  { %3251 = vtanh.f32 %v1559_v5  ;;  %v2926_v11 = vmul.f32 -1.442695, %v1559_v5 }
0x19ef   :  { %3253 = vpow2.f32 %v2925_v9 }
0x19f0   :  { %3255 = vpow2.f32 %v2926_v11 }
0x19f5   :  { %v3250_v16 = vpop.eup %3249 }
0x19f6   :  { %1576 = vrot.lane.b32.xlu0 %v3250_v16, %s3656_s0 }
0x19f8   :  { %v3252_v60 = vpop.eup %3251 }
0x19f9   :  { %1578 = vrot.lane.b32.xlu1 %v3252_v60, %s3656_s0  ;;  %v3254_v0 = vpop.eup %3253 }
0x19fa   :  { %1586 = vrot.lane.b32.xlu0 %v1483_v47, %s3658_s20  ;;  %v3256_v13 = vpop.eup %3255  ;;  %v1566_v15 = vadd.f32 1.0, %v3254_v0 }
0x19fb   :  { %v1567_v25 = vadd.f32 1.0, %v3256_v13 }
0x19fc   :  { %3257 = vrcp.f32 %v1566_v15 }
0x19fd   :  { %1588 = vrot.lane.b32.xlu1 %v1484_v54, %s3658_s20  ;;  %3259 = vrcp.f32 %v1567_v25 }
0x1a06   :  { %v3258_v23 = vpop.eup %3257 }
0x1a07   :  { %v3260_v35 = vpop.eup %3259 }
0x1a68   :  { %v1577_v29 = vpop.permute.xlu0 %1576 }
0x1a69   :  { %v1582_v14 = vmul.f32 %v3258_v23, %v1577_v29 }
0x1a6b   :  { %1596 = vrot.lane.b32.xlu0 %v1582_v14, %s3658_s20  ;;  %v1579_v57 = vpop.permute.xlu1 %1578 }
0x1a6c   :  { %v1583_v40 = vmul.f32 %v3260_v35, %v1579_v57  ;;  %v1587_v37 = vpop.permute.xlu0 %1586 }
0x1a6d   :  { %v1592_v30 = vmul.f32 %v3258_v23, %v1587_v37 }
0x1a6e   :  { %1598 = vrot.lane.b32.xlu1 %v1583_v40, %s3658_s20 }
0x1a6f   :  { %v1589_v39 = vpop.permute.xlu1 %1588 }
0x1a70   :  { %v1593_v43 = vmul.f32 %v3260_v35, %v1589_v39 }
0x1add   :  { %v1597_v41 = vpop.permute.xlu0 %1596 }
0x1ade   :  { %v1602_v47 = vadd.f32 %v1597_v41, %v1592_v30 }
0x1ae0   :  { %3261 = vtanh.f32 %v1602_v47  ;;  %v1599_v44 = vpop.permute.xlu1 %1598 }
0x1ae1   :  { %v1603_v46 = vadd.f32 %v1599_v44, %v1593_v43 }
0x1ae3   :  { %3263 = vtanh.f32 %v1603_v46 }
0x1aea   :  { %v3262_v36 = vpop.eup %3261 }
0x1aeb   :  { %1608 = vrot.lane.b32.xlu0 %v3262_v36, %s3656_s0 }
0x1aed   :  { %v3264_v52 = vpop.eup %3263 }
0x1aee   :  { %1610 = vrot.lane.b32.xlu1 %v3264_v52, %s3656_s0 }
0x1b5d   :  { %v1609_v54 = vpop.permute.xlu0 %1608 }
0x1b5e   :  { %v4296_v56 = vmul.f32 %v3258_v23, %v1609_v54 }
0x1b60   :  { %v1611_v53 = vpop.permute.xlu1 %1610 }
0x1b61   :  { %v4298_v51 = vmul.f32 %v3260_v35, %v1611_v53 }
0x1b63   :  { %v1628_v34 = vpack.c.bf16 %v4298_v51, %v4296_v56 }
0x1b65   :  { %1630 = vrot.lane.b32.xlu0 %v1628_v34, %s3658_s20 }
0x1bd7   :  { %v1631_v50 = vpop.permute.xlu0 %1630 }
0x1bd8   :  { %2927 = vmatmul.mubr.msk.bf16.vlgmr.msra.gmra.mrb[32].mxu0 %vm386_vm1, %v1631_v50 }
0x1bd9   :  { %1748 = vmatpush1.bf16.msra.mxu0 %v4261_v59  ;;  %1779 = vmatprep.mubr.bf16.mxu0 %v3655_v1 }
0x1bda   :  { %1749 = vmatprep.subr.bf16.mxu0 %v4263_v8 }
0x1bdd   :  { %1750 = vmatpush1.bf16.msra.mxu0 %v4267_v18 }
0x1bde   :  { %1859 = vmatprep.subr.bf16.mxu0 %v4259_v32 }
0x1cab   :  { %v1669_v58 = vpop.f32.mrb[32].mxu0 }
0x1cac   :  { %v1678_v33 = vadd.f32 %v1669_v58, %v4234_v4  ;;  %v1671_v61 = vpop.f32.mrb[33].mxu0 }
0x1cad   :  { %v1672_v31 = vpop.f32.mrb[34].mxu0 }
0x1cae   :  { %3265 = vtanh.f32 %v1678_v33  ;;  %v1673_v62 = vpop.f32.mrb[35].mxu0  ;;  %v2928_v2 = vmul.f32 -1.442695, %v1678_v33 }
0x1caf   :  { %v1679_v19 = vadd.f32 %v1673_v62, %v4249_v12 }
0x1cb1   :  { %3267 = vtanh.f32 %v1679_v19  ;;  %v2929_v38 = vmul.f32 -1.442695, %v1679_v19 }
0x1cb2   :  { %3269 = vpow2.f32 %v2928_v2 }
0x1cb3   :  { %3271 = vpow2.f32 %v2929_v38 }
0x1cb8   :  { %v3266_v26 = vpop.eup %3265 }
0x1cb9   :  { %1696 = vrot.lane.b32.xlu1 %v3266_v26, %s3656_s0 }
0x1cbb   :  { %v3268_v49 = vpop.eup %3267 }
0x1cbc   :  { %1698 = vrot.lane.b32.xlu0 %v3268_v49, %s3656_s0  ;;  %v3270_v28 = vpop.eup %3269 }
0x1cbd   :  { %v3272_v21 = vpop.eup %3271  ;;  %v1686_v4 = vadd.f32 1.0, %v3270_v28 }
0x1cbe   :  { %v1687_v55 = vadd.f32 1.0, %v3272_v21 }
0x1cbf   :  { %3273 = vrcp.f32 %v1686_v4 }
0x1cc0   :  { %3275 = vrcp.f32 %v1687_v55 }
0x1cc9   :  { %v3274_v5 = vpop.eup %3273 }
0x1cca   :  { %v3276_v60 = vpop.eup %3275  ;;  %v1704_v0 = vmul.f32 %v3274_v5, %v1602_v47 }
0x1ccb   :  { %v1705_v25 = vmul.f32 %v3276_v60, %v1603_v46 }
0x1d2b   :  { %v1697_v16 = vpop.permute.xlu1 %1696 }
0x1d2c   :  { %v1702_v12 = vmul.f32 %v3274_v5, %v1697_v16 }
0x1d2e   :  { %1708 = vrot.lane.b32.xlu1 %v1702_v12, %s3658_s20  ;;  %v1699_v9 = vpop.permute.xlu0 %1698 }
0x1d2f   :  { %v1703_v11 = vmul.f32 %v3276_v60, %v1699_v9 }
0x1d31   :  { %1710 = vrot.lane.b32.xlu0 %v1703_v11, %s3658_s20 }
0x1da0   :  { %v1709_v13 = vpop.permute.xlu1 %1708 }
0x1da1   :  { %v1714_v15 = vadd.f32 %v1709_v13, %v1704_v0 }
0x1da3   :  { %3277 = vtanh.f32 %v1714_v15  ;;  %v1711_v23 = vpop.permute.xlu0 %1710 }
0x1da4   :  { %v1715_v29 = vadd.f32 %v1711_v23, %v1705_v25 }
0x1da6   :  { %3279 = vtanh.f32 %v1715_v29 }
0x1dad   :  { %v3278_v14 = vpop.eup %3277 }
0x1dae   :  { %1720 = vrot.lane.b32.xlu1 %v3278_v14, %s3656_s0 }
0x1db0   :  { %v3280_v35 = vpop.eup %3279 }
0x1db1   :  { %1722 = vrot.lane.b32.xlu0 %v3280_v35, %s3656_s0 }
0x1e20   :  { %v1721_v57 = vpop.permute.xlu1 %1720 }
0x1e21   :  { %v4317_v37 = vmul.f32 %v3274_v5, %v1721_v57 }
0x1e23   :  { %v1723_v40 = vpop.permute.xlu0 %1722 }
0x1e24   :  { %v4319_v30 = vmul.f32 %v3276_v60, %v1723_v40 }
0x1e26   :  { %v1740_v39 = vpack.c.bf16 %v4319_v30, %v4317_v37 }
0x1e28   :  { %1742 = vrot.lane.b32.xlu1 %v1740_v39, %s3658_s20 }
0x1e9a   :  { %v1743_v41 = vpop.permute.xlu1 %1742 }
0x1e9b   :  { %2930 = vmatmul.mubr.msk.bf16.vlgmr.msra.gmra.mrb[36].mxu0 %vm386_vm1, %v1743_v41 }
0x1e9c   :  { %1860 = vmatpush1.bf16.msra.mxu0 %v4261_v59  ;;  %1891 = vmatprep.mubr.bf16.mxu0 %v3655_v1 }
0x1e9d   :  { %1861 = vmatprep.subr.bf16.mxu0 %v4263_v8 }
0x1ea0   :  { %1862 = vmatpush1.bf16.msra.mxu0 %v4267_v18 }
0x1ea1   :  { %1971 = vmatprep.subr.bf16.mxu0 %v4259_v32 }
0x1f6e   :  { %v1781_v47 = vpop.f32.mrb[36].mxu0 }
0x1f6f   :  { %v1790_v43 = vadd.f32 %v1781_v47, %v4238_v24  ;;  %v1783_v44 = vpop.f32.mrb[37].mxu0 }
0x1f70   :  { %v1784_v46 = vpop.f32.mrb[38].mxu0 }
0x1f71   :  { %3281 = vtanh.f32 %v1790_v43  ;;  %v1785_v36 = vpop.f32.mrb[39].mxu0  ;;  %v2931_v34 = vmul.f32 -1.442695, %v1790_v43 }
0x1f72   :  { %v1791_v52 = vadd.f32 %v1785_v36, %v4245_v27 }
0x1f74   :  { %3283 = vtanh.f32 %v1791_v52  ;;  %v2932_v50 = vmul.f32 -1.442695, %v1791_v52 }
0x1f75   :  { %3285 = vpow2.f32 %v2931_v34 }
0x1f76   :  { %3287 = vpow2.f32 %v2932_v50 }
0x1f7b   :  { %v3282_v54 = vpop.eup %3281 }
0x1f7c   :  { %1808 = vrot.lane.b32.xlu0 %v3282_v54, %s3656_s0 }
0x1f7e   :  { %v3284_v53 = vpop.eup %3283 }
0x1f7f   :  { %1810 = vrot.lane.b32.xlu1 %v3284_v53, %s3656_s0  ;;  %v3286_v58 = vpop.eup %3285 }
0x1f80   :  { %v3288_v33 = vpop.eup %3287  ;;  %v1798_v24 = vadd.f32 1.0, %v3286_v58 }
0x1f81   :  { %v1799_v61 = vadd.f32 1.0, %v3288_v33 }
0x1f82   :  { %3289 = vrcp.f32 %v1798_v24 }
0x1f83   :  { %3291 = vrcp.f32 %v1799_v61 }
0x1f8c   :  { %v3290_v31 = vpop.eup %3289 }
0x1f8d   :  { %v3292_v19 = vpop.eup %3291  ;;  %v1816_v2 = vmul.f32 %v3290_v31, %v1714_v15 }
0x1f8e   :  { %v1817_v21 = vmul.f32 %v3292_v19, %v1715_v29 }
0x1fee   :  { %v1809_v62 = vpop.permute.xlu0 %1808 }
0x1fef   :  { %v1814_v27 = vmul.f32 %v3290_v31, %v1809_v62 }
0x1ff1   :  { %1820 = vrot.lane.b32.xlu0 %v1814_v27, %s3658_s20  ;;  %v1811_v26 = vpop.permute.xlu1 %1810 }
0x1ff2   :  { %v1815_v49 = vmul.f32 %v3292_v19, %v1811_v26 }
0x1ff4   :  { %1822 = vrot.lane.b32.xlu1 %v1815_v49, %s3658_s20 }
0x2063   :  { %v1821_v38 = vpop.permute.xlu0 %1820 }
0x2064   :  { %v1826_v28 = vadd.f32 %v1821_v38, %v1816_v2 }
0x2066   :  { %3293 = vtanh.f32 %v1826_v28  ;;  %v1823_v4 = vpop.permute.xlu1 %1822 }
0x2067   :  { %v1827_v55 = vadd.f32 %v1823_v4, %v1817_v21 }
0x2069   :  { %3295 = vtanh.f32 %v1827_v55 }
0x2070   :  { %v3294_v5 = vpop.eup %3293 }
0x2071   :  { %1832 = vrot.lane.b32.xlu0 %v3294_v5, %s3656_s0 }
0x2073   :  { %v3296_v16 = vpop.eup %3295 }
0x2074   :  { %1834 = vrot.lane.b32.xlu1 %v3296_v16, %s3656_s0 }
0x20e3   :  { %v1833_v12 = vpop.permute.xlu0 %1832 }
0x20e4   :  { %v4338_v9 = vmul.f32 %v3290_v31, %v1833_v12 }
0x20e6   :  { %v1835_v60 = vpop.permute.xlu1 %1834 }
0x20e7   :  { %v4340_v11 = vmul.f32 %v3292_v19, %v1835_v60 }
0x20e9   :  { %v1852_v0 = vpack.c.bf16 %v4340_v11, %v4338_v9 }
0x20eb   :  { %1854 = vrot.lane.b32.xlu0 %v1852_v0, %s3658_s20 }
0x215d   :  { %v1855_v13 = vpop.permute.xlu0 %1854 }
0x215e   :  { %2933 = vmatmul.mubr.msk.bf16.vlgmr.msra.gmra.mrb[40].mxu0 %vm386_vm1, %v1855_v13 }
0x215f   :  { %1972 = vmatpush1.bf16.msra.mxu0 %v4261_v59  ;;  %2003 = vmatprep.mubr.bf16.mxu0 %v3655_v1 }
0x2160   :  { %1973 = vmatprep.subr.bf16.mxu0 %v4263_v8 }
0x2163   :  { %1974 = vmatpush1.bf16.msra.mxu0 %v4267_v18 }
0x2164   :  { %2083 = vmatprep.subr.bf16.mxu0 %v4259_v32 }
0x2231   :  { %v1893_v15 = vpop.f32.mrb[40].mxu0 }
0x2232   :  { %v1902_v25 = vadd.f32 %v1893_v15, %v4243_v7  ;;  %v1895_v23 = vpop.f32.mrb[41].mxu0 }
0x2233   :  { %v1896_v29 = vpop.f32.mrb[42].mxu0 }
0x2234   :  { %3297 = vtanh.f32 %v1902_v25  ;;  %v1897_v14 = vpop.f32.mrb[43].mxu0  ;;  %v2934_v39 = vmul.f32 -1.442695, %v1902_v25 }
0x2235   :  { %v1903_v35 = vadd.f32 %v1897_v14, %v4240_v17 }
0x2237   :  { %3299 = vtanh.f32 %v1903_v35  ;;  %v2935_v41 = vmul.f32 -1.442695, %v1903_v35 }
0x2238   :  { %3301 = vpow2.f32 %v2934_v39 }
0x2239   :  { %3303 = vpow2.f32 %v2935_v41 }
0x223e   :  { %v3298_v57 = vpop.eup %3297 }
0x223f   :  { %1920 = vrot.lane.b32.xlu1 %v3298_v57, %s3656_s0 }
0x2241   :  { %v3300_v40 = vpop.eup %3299 }
0x2242   :  { %1922 = vrot.lane.b32.xlu0 %v3300_v40, %s3656_s0  ;;  %v3302_v47 = vpop.eup %3301 }
0x2243   :  { %v3304_v43 = vpop.eup %3303  ;;  %v1910_v7 = vadd.f32 1.0, %v3302_v47 }
0x2244   :  { %v1911_v44 = vadd.f32 1.0, %v3304_v43 }
0x2245   :  { %3305 = vrcp.f32 %v1910_v7 }
0x2246   :  { %3307 = vrcp.f32 %v1911_v44 }
0x224f   :  { %v3306_v46 = vpop.eup %3305 }
0x2250   :  { %v3308_v52 = vpop.eup %3307  ;;  %v1928_v34 = vmul.f32 %v3306_v46, %v1826_v28 }
0x2251   :  { %v1929_v33 = vmul.f32 %v3308_v52, %v1827_v55 }
0x22b1   :  { %v1921_v36 = vpop.permute.xlu1 %1920 }
0x22b2   :  { %v1926_v17 = vmul.f32 %v3306_v46, %v1921_v36 }
0x22b4   :  { %1932 = vrot.lane.b32.xlu1 %v1926_v17, %s3658_s20  ;;  %v1923_v54 = vpop.permute.xlu0 %1922 }
0x22b5   :  { %v1927_v53 = vmul.f32 %v3308_v52, %v1923_v54 }
0x22b7   :  { %1934 = vrot.lane.b32.xlu0 %v1927_v53, %s3658_s20 }
0x2326   :  { %v1933_v50 = vpop.permute.xlu1 %1932 }
0x2327   :  { %v1938_v58 = vadd.f32 %v1933_v50, %v1928_v34 }
0x2329   :  { %3309 = vtanh.f32 %v1938_v58  ;;  %v1935_v24 = vpop.permute.xlu0 %1934 }
0x232a   :  { %v1939_v61 = vadd.f32 %v1935_v24, %v1929_v33 }
0x232c   :  { %3311 = vtanh.f32 %v1939_v61 }
0x2333   :  { %v3310_v31 = vpop.eup %3309 }
0x2334   :  { %1944 = vrot.lane.b32.xlu1 %v3310_v31, %s3656_s0 }
0x2336   :  { %v3312_v62 = vpop.eup %3311 }
0x2337   :  { %1946 = vrot.lane.b32.xlu0 %v3312_v62, %s3656_s0 }
0x23a6   :  { %v1945_v27 = vpop.permute.xlu1 %1944 }
0x23a7   :  { %v4359_v26 = vmul.f32 %v3306_v46, %v1945_v27 }
0x23a9   :  { %v1947_v19 = vpop.permute.xlu0 %1946 }
0x23aa   :  { %v4361_v49 = vmul.f32 %v3308_v52, %v1947_v19 }
0x23ac   :  { %v1964_v2 = vpack.c.bf16 %v4361_v49, %v4359_v26 }
0x23ae   :  { %1966 = vrot.lane.b32.xlu1 %v1964_v2, %s3658_s20 }
0x2420   :  { %v1967_v38 = vpop.permute.xlu1 %1966 }
0x2421   :  { %2936 = vmatmul.mubr.msk.bf16.vlgmr.msra.gmra.mrb[44].mxu0 %vm386_vm1, %v1967_v38 }
0x2422   :  { %2084 = vmatpush1.bf16.msra.mxu0 %v4261_v59  ;;  %2115 = vmatprep.mubr.bf16.mxu0 %v3655_v1 }
0x2423   :  { %2085 = vmatprep.subr.bf16.mxu0 %v4263_v8 }
0x2426   :  { %2086 = vmatpush1.bf16.msra.mxu0 %v4267_v18 }
0x2427   :  { %2195 = vmatprep.subr.bf16.mxu0 %v4259_v32 }
0x24f4   :  { %v2005_v28 = vpop.f32.mrb[44].mxu0 }
0x24f5   :  { %v2014_v21 = vadd.f32 %v2005_v28, %v4247_v10  ;;  %v2007_v4 = vpop.f32.mrb[45].mxu0 }
0x24f6   :  { %v2008_v55 = vpop.f32.mrb[46].mxu0 }
0x24f7   :  { %3313 = vtanh.f32 %v2014_v21  ;;  %v2009_v5 = vpop.f32.mrb[47].mxu0  ;;  %v2937_v0 = vmul.f32 -1.442695, %v2014_v21 }
0x24f8   :  { %v2015_v16 = vadd.f32 %v2009_v5, %v4236_v22 }
0x24fa   :  { %3315 = vtanh.f32 %v2015_v16  ;;  %v2938_v13 = vmul.f32 -1.442695, %v2015_v16 }
0x24fb   :  { %3317 = vpow2.f32 %v2937_v0 }
0x24fc   :  { %3319 = vpow2.f32 %v2938_v13 }
0x2501   :  { %v3314_v12 = vpop.eup %3313 }
0x2502   :  { %2032 = vrot.lane.b32.xlu0 %v3314_v12, %s3656_s0 }
0x2504   :  { %v3316_v60 = vpop.eup %3315 }
0x2505   :  { %2034 = vrot.lane.b32.xlu1 %v3316_v60, %s3656_s0  ;;  %v3318_v32 = vpop.eup %3317 }
0x2506   :  { %v3320_v15 = vpop.eup %3319  ;;  %v2022_v10 = vadd.f32 1.0, %v3318_v32 }
0x2507   :  { %v2023_v25 = vadd.f32 1.0, %v3320_v15 }
0x2508   :  { %3321 = vrcp.f32 %v2022_v10 }
0x2509   :  { %3323 = vrcp.f32 %v2023_v25 }
0x2512   :  { %v3322_v23 = vpop.eup %3321 }
0x2513   :  { %v3324_v14 = vpop.eup %3323  ;;  %v2040_v40 = vmul.f32 %v3322_v23, %v1938_v58 }
0x2514   :  { %v2041_v47 = vmul.f32 %v3324_v14, %v1939_v61 }
0x2574   :  { %v2033_v29 = vpop.permute.xlu0 %2032 }
0x2575   :  { %v2038_v22 = vmul.f32 %v3322_v23, %v2033_v29 }
0x2577   :  { %2044 = vrot.lane.b32.xlu0 %v2038_v22, %s3658_s20  ;;  %v2035_v35 = vpop.permute.xlu1 %2034 }
0x2578   :  { %v2039_v57 = vmul.f32 %v3324_v14, %v2035_v35 }
0x257a   :  { %2046 = vrot.lane.b32.xlu1 %v2039_v57, %s3658_s20 }
0x25e9   :  { %v2045_v39 = vpop.permute.xlu0 %2044 }
0x25ea   :  { %v2050_v41 = vadd.f32 %v2045_v39, %v2040_v40 }
0x25ec   :  { %3325 = vtanh.f32 %v2050_v41  ;;  %v2047_v43 = vpop.permute.xlu1 %2046 }
0x25ed   :  { %v2051_v7 = vadd.f32 %v2047_v43, %v2041_v47 }
0x25ef   :  { %3327 = vtanh.f32 %v2051_v7 }
0x25f6   :  { %v3326_v44 = vpop.eup %3325 }
0x25f7   :  { %2056 = vrot.lane.b32.xlu0 %v3326_v44, %s3656_s0 }
0x25f9   :  { %v3328_v46 = vpop.eup %3327 }
0x25fa   :  { %2058 = vrot.lane.b32.xlu1 %v3328_v46, %s3656_s0 }
0x2669   :  { %v2057_v36 = vpop.permute.xlu0 %2056 }
0x266a   :  { %v4380_v52 = vmul.f32 %v3322_v23, %v2057_v36 }
0x266c   :  { %v2059_v17 = vpop.permute.xlu1 %2058 }
0x266d   :  { %v4382_v54 = vmul.f32 %v3324_v14, %v2059_v17 }
0x266f   :  { %v2076_v53 = vpack.c.bf16 %v4382_v54, %v4380_v52 }
0x2671   :  { %2078 = vrot.lane.b32.xlu0 %v2076_v53, %s3658_s20 }
0x26e3   :  { %v2079_v34 = vpop.permute.xlu0 %2078 }
0x26e4   :  { %2939 = vmatmul.mubr.msk.bf16.vlgmr.msra.gmra.mrb[48].mxu0 %vm386_vm1, %v2079_v34 }
0x26e5   :  { %2196 = vmatpush1.bf16.msra.mxu0 %v4261_v59  ;;  %2227 = vmatprep.mubr.bf16.mxu0 %v3655_v1 }
0x26e6   :  { %2197 = vmatprep.subr.bf16.mxu0 %v4263_v8 }
0x26e9   :  { %2198 = vmatpush1.bf16.msra.mxu0 %v4267_v18 }
0x27b7   :  { %v2117_v50 = vpop.f32.mrb[48].mxu0 }
0x27b8   :  { %v2126_v58 = vadd.f32 %v2117_v50, %v4251_v45  ;;  %v2119_v33 = vpop.f32.mrb[49].mxu0 }
0x27b9   :  { %v2120_v24 = vpop.f32.mrb[50].mxu0 }
0x27ba   :  { %3329 = vtanh.f32 %v2126_v58  ;;  %v2121_v61 = vpop.f32.mrb[51].mxu0  ;;  %v2940_v1 = vmul.f32 -1.442695, %v2126_v58 }
0x27bb   :  { %v2127_v31 = vadd.f32 %v2121_v61, %v4232_v3 }
0x27bd   :  { %3331 = vtanh.f32 %v2127_v31  ;;  %v2941_v8 = vmul.f32 -1.442695, %v2127_v31 }
0x27be   :  { %3333 = vpow2.f32 %v2940_v1 }
0x27bf   :  { %3335 = vpow2.f32 %v2941_v8 }
0x27c4   :  { %v3330_v62 = vpop.eup %3329 }
0x27c5   :  { %2144 = vrot.lane.b32.xlu1 %v3330_v62, %s3656_s0 }
0x27c7   :  { %v3332_v59 = vpop.eup %3331 }
0x27c8   :  { %2146 = vrot.lane.b32.xlu0 %v3332_v59, %s3656_s0  ;;  %v3334_v18 = vpop.eup %3333 }
0x27c9   :  { %v3336_v27 = vpop.eup %3335  ;;  %v2134_v45 = vadd.f32 1.0, %v3334_v18 }
0x27ca   :  { %v2135_v19 = vadd.f32 1.0, %v3336_v27  ;;  %v2325_v27 = vld [vmem:[#allocation20] sm:$0xff] }
0x27cb   :  { %3337 = vrcp.f32 %v2134_v45  ;;  %v2326_v45 = vld [vmem:[#allocation20 + $0x8] sm:$0xff] }
0x27cc   :  { %3339 = vrcp.f32 %v2135_v19  ;;  %v2328_v19 = vld [vmem:[#allocation20 + $0x18] sm:$0xff] }
0x27d5   :  { %v3338_v2 = vpop.eup %3337 }
0x27d6   :  { %v3340_v28 = vpop.eup %3339  ;;  %v2152_v55 = vmul.f32 %v3338_v2, %v2050_v41 }
0x27d7   :  { %v2153_v12 = vmul.f32 %v3340_v28, %v2051_v7 }
0x2837   :  { %v2145_v38 = vpop.permute.xlu1 %2144 }
0x2838   :  { %v2150_v3 = vmul.f32 %v3338_v2, %v2145_v38 }
0x283a   :  { %2156 = vrot.lane.b32.xlu1 %v2150_v3, %s3658_s20  ;;  %v2147_v21 = vpop.permute.xlu0 %2146  ;;  %v2316_v3 = vld [vmem:[#allocation19 + $0x8] sm:$0xff] }
0x283b   :  { %v2151_v4 = vmul.f32 %v3340_v28, %v2147_v21 }
0x283d   :  { %2158 = vrot.lane.b32.xlu0 %v2151_v4, %s3658_s20 }
0x28ac   :  { %v2157_v5 = vpop.permute.xlu1 %2156 }
0x28ad   :  { %v2162_v16 = vadd.f32 %v2157_v5, %v2152_v55 }
0x28af   :  { %3341 = vtanh.f32 %v2162_v16  ;;  %v2159_v60 = vpop.permute.xlu0 %2158 }
0x28b0   :  { %v2163_v0 = vadd.f32 %v2159_v60, %v2153_v12 }
0x28b2   :  { %3343 = vtanh.f32 %v2163_v0 }
0x28b9   :  { %v3342_v13 = vpop.eup %3341 }
0x28ba   :  { %2168 = vrot.lane.b32.xlu1 %v3342_v13, %s3656_s0  ;;  %v2317_v13 = vld [vmem:[#allocation19 + $0x10] sm:$0xff] }
0x28bc   :  { %v3344_v32 = vpop.eup %3343 }
0x28bd   :  { %2170 = vrot.lane.b32.xlu0 %v3344_v32, %s3656_s0  ;;  %v2318_v32 = vld [vmem:[#allocation19 + $0x18] sm:$0xff] }
0x292c   :  { %v2169_v15 = vpop.permute.xlu1 %2168 }
0x292d   :  { %v2174_v25 = vmul.f32 %v3338_v2, %v2169_v15 }
0x292f   :  { %v2171_v10 = vpop.permute.xlu0 %2170 }
0x2930   :  { %v2175_v23 = vmul.f32 %v3340_v28, %v2171_v10 }
0x2932   :  { %v2188_v29 = vpack.c.bf16 %v2175_v23, %v2174_v25 }
0x2934   :  { %2190 = vrot.lane.b32.xlu1 %v2188_v29, %s3658_s20  ;;  %v2324_v29 = vpack.c.bf16 %v2318_v32, %v2317_v13 }
0x29a6   :  { %v2191_v22 = vpop.permute.xlu1 %2190 }
0x29a7   :  { %2942 = vmatmul.mubr.msk.bf16.vlgmr.msra.gmra.mrb[52].mxu0 %vm386_vm1, %v2191_v22 }
0x2a7a   :  { %v2229_v14 = vpop.f32.mrb[52].mxu0 }
0x2a7b   :  { %v2238_v35 = vadd.f32 %v2229_v14, %v4255_v42  ;;  %v2231_v57 = vpop.f32.mrb[53].mxu0 }
0x2a7c   :  { %v2232_v40 = vpop.f32.mrb[54].mxu0 }
0x2a7d   :  { %3345 = vtanh.f32 %v2238_v35  ;;  %v2233_v39 = vpop.f32.mrb[55].mxu0  ;;  %v2943_v7 = vmul.f32 -1.442695, %v2238_v35 }
0x2a7e   :  { %v2239_v41 = vadd.f32 %v2233_v39, %v4228_v63 }
0x2a80   :  { %3347 = vtanh.f32 %v2239_v41  ;;  %v2944_v44 = vmul.f32 -1.442695, %v2239_v41 }
0x2a81   :  { %3349 = vpow2.f32 %v2943_v7 }
0x2a82   :  { %3351 = vpow2.f32 %v2944_v44 }
0x2a87   :  { %v3346_v47 = vpop.eup %3345 }
0x2a88   :  { %2256 = vrot.lane.b32.xlu1 %v3346_v47, %s3656_s0 }
0x2a8a   :  { %v3348_v43 = vpop.eup %3347 }
0x2a8b   :  { %2258 = vrot.lane.b32.xlu0 %v3348_v43, %s3656_s0  ;;  %v3350_v46 = vpop.eup %3349 }
0x2a8c   :  { %v3352_v36 = vpop.eup %3351  ;;  %v2246_v42 = vadd.f32 1.0, %v3350_v46 }
0x2a8d   :  { %v2247_v17 = vadd.f32 1.0, %v3352_v36 }
0x2a8e   :  { %3353 = vrcp.f32 %v2246_v42 }
0x2a8f   :  { %3355 = vrcp.f32 %v2247_v17 }
0x2a98   :  { %v4406_v53 = vpop.eup %3353 }
0x2a99   :  { %v3356_v50 = vpop.eup %3355  ;;  %v2264_v24 = vmul.f32 %v4406_v53, %v2162_v16 }
0x2a9a   :  { %v2265_v62 = vmul.f32 %v3356_v50, %v2163_v0 }
0x2afa   :  { %v2257_v63 = vpop.permute.xlu1 %2256 }
0x2afb   :  { %v2262_v34 = vmul.f32 %v4406_v53, %v2257_v63 }
0x2afd   :  { %2268 = vrot.lane.b32.xlu1 %v2262_v34, %s3658_s20  ;;  %v2259_v58 = vpop.permute.xlu0 %2258 }
0x2afe   :  { %v2263_v33 = vmul.f32 %v3356_v50, %v2259_v58 }
0x2b00   :  { %2270 = vrot.lane.b32.xlu0 %v2263_v33, %s3658_s20 }
0x2b6f   :  { %v2269_v61 = vpop.permute.xlu1 %2268 }
0x2b70   :  { %v2274_v31 = vadd.f32 %v2269_v61, %v2264_v24  ;;  %v2953_v61 = vld [vmem:[%s4639_s10] ss:$0 sm:$0xff] }
0x2b72   :  { %3357 = vtanh.f32 %v2274_v31  ;;  %v2271_v59 = vpop.permute.xlu0 %2270 }
0x2b73   :  { %v2275_v1 = vadd.f32 %v2271_v59, %v2265_v62 }
0x2b75   :  { %3359 = vtanh.f32 %v2275_v1 }
0x2b7c   :  { %v3358_v8 = vpop.eup %3357 }
0x2b7d   :  { %2280 = vrot.lane.b32.xlu1 %v3358_v8, %s3656_s0 }
0x2b7f   :  { %v3360_v18 = vpop.eup %3359 }
0x2b80   :  { %2282 = vrot.lane.b32.xlu0 %v3360_v18, %s3656_s0 }
0x2b84   :  { %2183 = vrot.lane.b32.xlu0 %v2175_v23, %s3658_s20 }
0x2b88   :  { %1959 = vrot.lane.b32.xlu0 %v4361_v49, %s3658_s20  ;;  %v2333_v49 = vpack.c.bf16 %v2326_v45, %v2325_v27 }
0x2b8a   :  { %2987 = vmatprep.subr.bf16.mxu0 %v2333_v49 }
0x2b8b   :  { %2988 = vmatpush3.bf16.msra.mxu0 %v2333_v49 }
0x2b8c   :  { %1735 = vrot.lane.b32.xlu0 %v4319_v30, %s3658_s20  ;;  %v2327_v30 = vld [vmem:[#allocation20 + $0x10] sm:$0xff] }
0x2b8d   :  { %v2334_v2 = vpack.c.bf16 %v2328_v19, %v2327_v30 }
0x2b8f   :  { %2989 = vmatprep.subr.bf16.mxu0 %v2334_v2 }
0x2b90   :  { %1503 = vrot.lane.b32.xlu0 %v4275_v48, %s3658_s20  ;;  %2990 = vmatpush3.bf16.msra.mxu0 %v2334_v2 }
0x2b94   :  { %1498 = vrot.lane.b32.xlu0 %v4273_v6, %s3658_s20  ;;  %v2315_v6 = vld [vmem:[#allocation19] sm:$0xff] }
0x2b98   :  { %1729 = vrot.lane.b32.xlu0 %v4317_v37, %s3658_s20  ;;  %v2323_v37 = vpack.c.bf16 %v2316_v3, %v2315_v6  ;;  %v2954_v3 = vld [vmem:[#allocation22] ss:$0 sm:$0xff] }
0x2b9a   :  { %2999 = vmatprep.subr.bf16.mxu0 %v2323_v37 }
0x2b9c   :  { %1953 = vrot.lane.b32.xlu0 %v4359_v26, %s3658_s20 }
0x2ba0   :  { %2177 = vrot.lane.b32.xlu0 %v2174_v25, %s3658_s20 }
0x2bf2   :  { %v2283_v48 = vpop.permute.xlu0 %2282 }
0x2bf3   :  { %v2287_v38 = vmul.f32 %v3356_v50, %v2283_v48 }
0x2bf5   :  { %2295 = vrot.lane.b32.xlu1 %v2287_v38, %s3658_s20 }
0x2bf6   :  { %v2184_v26 = vpop.permute.xlu0 %2183 }
0x2bf7   :  { %2187 = vst.msk [vmem:[#allocation6 + $0x8] sm:$0xff] %vm386_vm1, %v2184_v26 }
0x2bf9   :  { %2071 = vrot.lane.b32.xlu1 %v4382_v54, %s3658_s20 }
0x2bfa   :  { %v1960_v28 = vpop.permute.xlu0 %1959 }
0x2bfb   :  { %1963 = vst.msk [vmem:[#allocation6 + $0x18] sm:$0xff] %vm386_vm1, %v1960_v28 }
0x2bfd   :  { %1847 = vrot.lane.b32.xlu1 %v4340_v11, %s3658_s20  ;;  %v2281_v11 = vpop.permute.xlu1 %2280 }
0x2bfe   :  { %v1736_v21 = vpop.permute.xlu0 %1735  ;;  %v2286_v5 = vmul.f32 %v4406_v53, %v2281_v11 }
0x2bff   :  { %1739 = vst.msk [vmem:[#allocation6 + $0x28] sm:$0xff] %vm386_vm1, %v1736_v21 }
0x2c01   :  { %1623 = vrot.lane.b32.xlu1 %v4298_v51, %s3658_s20 }
0x2c02   :  { %v1504_v4 = vpop.permute.xlu0 %1503  ;;  %v4463_v25 = vld [vmem:[#allocation6 + $0x18] sm:$0xff] }
0x2c03   :  { %1507 = vst.msk [vmem:[#allocation6 + $0x38] sm:$0xff] %vm386_vm1, %v1504_v4 }
0x2c05   :  { %1617 = vrot.lane.b32.xlu1 %v4296_v56, %s3658_s20 }
0x2c06   :  { %v1499_v55 = vpop.permute.xlu0 %1498  ;;  %v4471_v35 = vld [vmem:[#allocation6 + $0x28] sm:$0xff] }
0x2c07   :  { %1501 = vst.msk [vmem:[#allocation5] sm:$0xff] %vm386_vm1, %v1499_v55 }
0x2c09   :  { %1841 = vrot.lane.b32.xlu1 %v4338_v9, %s3658_s20 }
0x2c0a   :  { %v1730_v54 = vpop.permute.xlu0 %1729  ;;  %v4479_v41 = vld [vmem:[#allocation6 + $0x38] sm:$0xff] }
0x2c0b   :  { %1733 = vst.msk [vmem:[#allocation5 + $0x10] sm:$0xff] %vm386_vm1, %v1730_v54 }
0x2c0d   :  { %2065 = vrot.lane.b32.xlu1 %v4380_v52, %s3658_s20  ;;  %v4455_v52 = vld [vmem:[#allocation6 + $0x8] sm:$0xff] }
0x2c0e   :  { %v1954_v51 = vpop.permute.xlu0 %1953  ;;  %v4485_v7 = vld [vmem:[#allocation5] sm:$0xff] }
0x2c0f   :  { %1957 = vst.msk [vmem:[#allocation5 + $0x20] sm:$0xff] %vm386_vm1, %v1954_v51 }
0x2c11   :  { %2289 = vrot.lane.b32.xlu1 %v2286_v5, %s3658_s20 }
0x2c12   :  { %v2178_v56 = vpop.permute.xlu0 %2177  ;;  %v4493_v42 = vld [vmem:[#allocation5 + $0x10] sm:$0xff] }
0x2c13   :  { %2181 = vst.msk [vmem:[#allocation5 + $0x30] sm:$0xff] %vm386_vm1, %v2178_v56 }
0x2c16   :  { %v4501_v63 = vld [vmem:[#allocation5 + $0x20] sm:$0xff] }
0x2c1a   :  { %v4508_v58 = vld [vmem:[#allocation5 + $0x30] sm:$0xff] }
0x2c67   :  { %v2296_v16 = vpop.permute.xlu1 %2295 }
0x2c68   :  { %2298 = vst.msk [vmem:[#allocation6] sm:$0xff] %vm386_vm1, %v2296_v16 }
0x2c6b   :  { %v2072_v9 = vpop.permute.xlu1 %2071 }
0x2c6c   :  { %2075 = vst.msk [vmem:[#allocation6 + $0x10] sm:$0xff] %vm386_vm1, %v2072_v9 }
0x2c6f   :  { %v1848_v12 = vpop.permute.xlu1 %1847  ;;  %v4453_v60 = vld [vmem:[#allocation6] sm:$0xff] }
0x2c70   :  { %1851 = vst.msk [vmem:[#allocation6 + $0x20] sm:$0xff] %vm386_vm1, %v1848_v12  ;;  %v2329_v0 = vpack.c.bf16 %v4455_v52, %v4453_v60 }
0x2c72   :  { %2991 = vmatprep.mubr.msk.bf16.mxu0 %vm386_vm1, %v2329_v0 }
0x2c73   :  { %v1624_v15 = vpop.permute.xlu1 %1623  ;;  %v4461_v10 = vld [vmem:[#allocation6 + $0x10] sm:$0xff] }
0x2c74   :  { %1627 = vst.msk [vmem:[#allocation6 + $0x30] sm:$0xff] %vm386_vm1, %v1624_v15  ;;  %v2330_v23 = vpack.c.bf16 %v4463_v25, %v4461_v10 }
0x2c76   :  { %2992 = vmatmul.mubr.msk.bf16.vlgmr.msra.gmra.mrb[56].mxu0 %vm386_vm1, %v2330_v23 }
0x2c77   :  { %3000 = vmatpush3.bf16.msra.mxu0 %v2323_v37  ;;  %v1618_v22 = vpop.permute.xlu1 %1617  ;;  %v4469_v14 = vld [vmem:[#allocation6 + $0x20] sm:$0xff] }
0x2c78   :  { %1621 = vst.msk [vmem:[#allocation5 + $0x8] sm:$0xff] %vm386_vm1, %v1618_v22  ;;  %v2331_v57 = vpack.c.bf16 %v4471_v35, %v4469_v14  ;;  %3001 = vmatprep.subr.bf16.mxu0 %v2324_v29 }
0x2c7a   :  { %2995 = vmatprep.mubr.msk.bf16.mxu0 %vm386_vm1, %v2331_v57 }
0x2c7b   :  { %v1842_v40 = vpop.permute.xlu1 %1841  ;;  %v4477_v39 = vld [vmem:[#allocation6 + $0x30] sm:$0xff]  ;;  %3002 = vmatpush3.bf16.msra.mxu0 %v2324_v29 }
0x2c7c   :  { %1845 = vst.msk [vmem:[#allocation5 + $0x18] sm:$0xff] %vm386_vm1, %v1842_v40  ;;  %v2332_v47 = vpack.c.bf16 %v4479_v41, %v4477_v39 }
0x2c7e   :  { %2996 = vmatmul.mubr.msk.bf16.gmra.mrb[60].mxu0 %vm386_vm1, %v2332_v47 }
0x2c7f   :  { %v2066_v43 = vpop.permute.xlu1 %2065  ;;  %v4487_v44 = vld [vmem:[#allocation5 + $0x8] sm:$0xff] }
0x2c80   :  { %2069 = vst.msk [vmem:[#allocation5 + $0x28] sm:$0xff] %vm386_vm1, %v2066_v43  ;;  %v2319_v46 = vpack.c.bf16 %v4487_v44, %v4485_v7 }
0x2c82   :  { %3003 = vmatprep.mubr.msk.bf16.mxu0 %vm386_vm1, %v2319_v46  ;;  %v2955_v46 = vld [vmem:[#allocation7] ss:$0 sm:$0xff] }
0x2c83   :  { %v2290_v36 = vpop.permute.xlu1 %2289  ;;  %v4495_v17 = vld [vmem:[#allocation5 + $0x18] sm:$0xff] }
0x2c84   :  { %2293 = vst.msk [vmem:[#allocation5 + $0x38] sm:$0xff] %vm386_vm1, %v2290_v36  ;;  %v2320_v53 = vpack.c.bf16 %v4495_v17, %v4493_v42 }
0x2c86   :  { %3004 = vmatmul.mubr.msk.bf16.vlgmr.msra.gmra.mrb[56].mxu0 %vm386_vm1, %v2320_v53 }
0x2c87   :  { %v4503_v34 = vld [vmem:[#allocation5 + $0x28] sm:$0xff] }
0x2c88   :  { %v2321_v50 = vpack.c.bf16 %v4503_v34, %v4501_v63 }
0x2c8a   :  { %3007 = vmatprep.mubr.msk.bf16.mxu0 %vm386_vm1, %v2321_v50 }
0x2c8b   :  { %v4510_v33 = vld [vmem:[#allocation5 + $0x38] sm:$0xff] }
0x2c8c   :  { %v2322_v24 = vpack.c.bf16 %v4510_v33, %v4508_v58 }
0x2c8e   :  { %3008 = vmatmul.mubr.msk.bf16.gmra.mrb[60].mxu0 %vm386_vm1, %v2322_v24 }
0x2d59   :  { %v3005_v31 = vpop.f32.mrb[56].mxu0 }
0x2d5a   :  { %v2498_v62 = vadd.f32 %v3005_v31, %v2953_v61  ;;  %v2458_v59 = vpop.f32.mrb[57].mxu0 }
0x2d5b   :  { %v2496_v1 = vadd.f32 %v2953_v61, %v2458_v59  ;;  %v3006_v8 = vpop.f32.mrb[58].mxu0 }
0x2d5c   :  { %3361 = vtanh.f32 %v2498_v62  ;;  %v2499_v18 = vadd.f32 %v3006_v8, %v2953_v61  ;;  %v2461_v27 = vpop.f32.mrb[59].mxu0 }
0x2d5d   :  { %3363 = vtanh.f32 %v2496_v1  ;;  %v2497_v45 = vadd.f32 %v2953_v61, %v2461_v27 }
0x2d5f   :  { %3365 = vtanh.f32 %v2497_v45 }
0x2d60   :  { %3367 = vtanh.f32 %v2499_v18 }
0x2d61   :  { %v3009_v49 = vpop.f32.mrb[60].mxu0 }
0x2d62   :  { %v2502_v30 = vadd.f32 %v3009_v49, %v2953_v61  ;;  %v2474_v19 = vpop.f32.mrb[61].mxu0 }
0x2d63   :  { %v2500_v2 = vadd.f32 %v2953_v61, %v2474_v19  ;;  %v3010_v48 = vpop.f32.mrb[62].mxu0 }
0x2d64   :  { %3369 = vtanh.f32 %v2502_v30  ;;  %v2503_v38 = vadd.f32 %v3010_v48, %v2953_v61  ;;  %v2477_v6 = vpop.f32.mrb[63].mxu0 }
0x2d65   :  { %3371 = vtanh.f32 %v2500_v2  ;;  %v2501_v37 = vadd.f32 %v2953_v61, %v2477_v6 }
0x2d66   :  { %v3362_v26 = vpop.eup %3361 }
0x2d67   :  { %v3364_v28 = vpop.eup %3363  ;;  %3373 = vtanh.f32 %v2501_v37  ;;  %v2527_v21 = vmul.f32 %v3362_v26, %v2954_v3 }
0x2d68   :  { %3375 = vtanh.f32 %v2503_v38  ;;  %v2519_v54 = vmul.f32 %v3364_v28, %v2954_v3  ;;  %v3659_v28 = vmov 1  }
0x2d69   :  { %v3366_v4 = vpop.eup %3365  ;;  %v2528_v55 = vsel %vm386_vm1, %v2527_v21, 0.0 }
0x2d6a   :  { %v3368_v11 = vpop.eup %3367  ;;  %2529 = vadd.xlane.f32.xlu0 %v2528_v55  ;;  %v2523_v51 = vmul.f32 %v3366_v4, %v2954_v3  ;;  %v2520_v56 = vsel %vm386_vm1, %v2519_v54, 0.0  ;;  %v2676_v54 = vld [vmem:[#allocation23] sm:$0xff] }
0x2d6b   :  { %v2531_v16 = vmul.f32 %v3368_v11, %v2954_v3  ;;  %v2677_v11 = vld [vmem:[#allocation23 + $0x8] sm:$0xff] }
0x2d6c   :  { %v2524_v5 = vsel %vm386_vm1, %v2523_v51, 0.0  ;;  %v3660_v51 = vmov 0.0  }
0x2d6d   :  { %2525 = vadd.xlane.f32.xlu1 %v2524_v5  ;;  %v2532_v32 = vsel %vm386_vm1, %v2531_v16, 0.0  ;;  %3011 = vmatprep.subr.bf16.mxu1 %v3660_v51  ;;  %v2681_v5 = vpack.c.bf16 %v2677_v11, %v2676_v54  ;;  %v3662_v16 = vmov 7   ;;  %v2781_v54 = vld [vmem:[%s4645_s16 + $0x18] sm:$0xff] }
0x2d6e   :  { %v3370_v9 = vpop.eup %3369  ;;  %2521 = vadd.xlane.f32.xlu0 %v2520_v56  ;;  %v3661_v56 = vmov 2   ;;  %3015 = vmatprep.mubr.msk.bf16.mxu1 %vm3667_vm10, %v3660_v51 }
0x2d6f   :  { %v3372_v12 = vpop.eup %3371  ;;  %v2543_v0 = vmul.f32 %v3370_v9, %v2954_v3  ;;  %3012 = vmatpush3.bf16.msra.mxu1 %v2681_v5  ;;  %v3663_v9 = vmov 3   ;;  %v2782_v5 = vld [vmem:[%s4645_s16 + $0x20] sm:$0xff] }
0x2d70   :  { %v2535_v23 = vmul.f32 %v3372_v12, %v2954_v3  ;;  %3013 = vmatprep.subr.bf16.mxu1 %v3660_v51  ;;  %v3664_v12 = vmov 4  }
0x2d71   :  { %v3374_v13 = vpop.eup %3373  ;;  %v2544_v15 = vsel %vm386_vm1, %v2543_v0, 0.0  ;;  %v3665_v0 = vmov 5  }
0x2d72   :  { %v3376_v29 = vpop.eup %3375  ;;  %2533 = vadd.xlane.f32.xlu0 %v2532_v32  ;;  %2545 = vadd.xlane.f32.xlu1 %v2544_v15  ;;  %v2539_v22 = vmul.f32 %v3374_v13, %v2954_v3  ;;  %v2536_v40 = vsel %vm386_vm1, %v2535_v23, 0.0  ;;  %v2678_v13 = vld [vmem:[#allocation23 + $0x10] sm:$0xff]  ;;  %v2679_v32 = vld [vmem:[#allocation23 + $0x18] sm:$0xff]  ;;  %v3666_v23 = vmov 6  }
0x2d73   :  { %v2547_v47 = vmul.f32 %v3376_v29, %v2954_v3  ;;  %v2682_v15 = vpack.c.bf16 %v2679_v32, %v2678_v13  ;;  %v2786_v13 = vld [vmem:[%s4645_s16 + $0x40] sm:$0xff]  ;;  %v2787_v32 = vld [vmem:[%s4645_s16 + $0x48] sm:$0xff] }
0x2d74   :  { %v2540_v57 = vsel %vm386_vm1, %v2539_v22, 0.0 }
0x2d75   :  { %v2548_v43 = vsel %vm386_vm1, %v2547_v47, 0.0  ;;  %3014 = vmatpush3.bf16.msra.mxu1 %v2682_v15  ;;  %v2795_v15 = vpack.c.bf16 %v2787_v32, %v2786_v13 }
0x2d76   :  { %2537 = vadd.xlane.f32.xlu1 %v2536_v40  ;;  %2541 = vadd.xlane.f32.xlu0 %v2540_v57 }
0x2d77   :  { %3019 = vmatprep.subr.bf16.mxu1 %v3660_v51 }
0x2d7a   :  { %2549 = vadd.xlane.f32.xlu0 %v2548_v43 }
0x2d87   :  { %2572 = vperm.xlu1 %3095, %v2955_v46  }
0x2d8b   :  { %3097 = vset.pattern.permute.xlu1 %v3659_v28  ;;  %v2779_v28 = vld [vmem:[%s4645_s16 + $0x8] sm:$0xff] }
0x2df7   :  { %v2530_v36 = vpop.xlane.xlu0 %2529 }
0x2dfa   :  { %v2526_v53 = vpop.xlane.xlu1 %2525 }
0x2dfb   :  { %v2522_v50 = vpop.xlane.xlu0 %2521 }
0x2dfc   :  { %v2552_v24 = vsel %vm2551_vm2, %v2522_v50, %v2526_v53 }
0x2dfd   :  { %v2554_v62 = vsel %vm2553_vm3, %v2552_v24, %v2530_v36 }
0x2dff   :  { %v2546_v61 = vpop.xlane.xlu1 %2545  ;;  %v2534_v31 = vpop.xlane.xlu0 %2533 }
0x2e00   :  { %v2556_v59 = vsel %vm2555_vm4, %v2554_v62, %v2534_v31 }
0x2e03   :  { %v2538_v1 = vpop.xlane.xlu1 %2537  ;;  %v2542_v8 = vpop.xlane.xlu0 %2541 }
0x2e04   :  { %v2558_v18 = vsel %vm2557_vm5, %v2556_v59, %v2538_v1 }
0x2e05   :  { %v2560_v27 = vsel %vm2559_vm6, %v2558_v18, %v2542_v8 }
0x2e06   :  { %v2562_v45 = vsel %vm2561_vm7, %v2560_v27, %v2546_v61 }
0x2e07   :  { %v2550_v49 = vpop.xlane.xlu0 %2549  ;;  %v2573_v30 = vpop.permute.xlu1 %2572 }
0x2e08   :  { %v2564_v19 = vsel %vm2563_vm8, %v2562_v45, %v2550_v49 }
0x2e09   :  { %v2575_v2 = vadd.f32 %v2573_v30, %v2564_v19 }
0x2e0b   :  { %v2577_v48 = vsel %vm2576_vm9, %v2575_v2, -inf }
0x2e0c   :  { %2578 = vmax.xlane.f32.xlu0 %v2577_v48 }
0x2e99   :  { %v2579_v38 = vpop.xlane.xlu0 %2578 }
0x2e9a   :  { %v2580_v6 = vsub.f32 %v2575_v2, %v2579_v38 }
0x2e9c   :  { %v2581_v3 = vmul.f32 1.442695, %v2580_v6 }
0x2e9e   :  { %3377 = vpow2.f32 %v2581_v3  ;;  %v2672_v3 = vld [vmem:[%s4642_s13 + $0x18] sm:$0xff] }
0x2ea8   :  { %v3378_v37 = vpop.eup %3377 }
0x2ea9   :  { %v2583_v26 = vsel %vm2576_vm9, %v3378_v37, 0.0 }
0x2eaa   :  { %2584 = vadd.xlane.f32.xlu0 %v2583_v26 }
0x2f37   :  { %v2585_v21 = vpop.xlane.xlu0 %2584 }
0x2f38   :  { %3379 = vrcp.f32 %v2585_v21 }
0x2f42   :  { %v3380_v4 = vpop.eup %3379 }
0x2f43   :  { %v2587_v55 = vmul.f32 %v3380_v4, %v3378_v37 }
0x2f45   :  { %2601 = vperm.xlu1 %3097, %v2587_v55   ;;  %2591 = vperm.xlu0 %3096, %v2587_v55  }
0x2f49   :  { %3098 = vset.pattern.permute.xlu1 %v3661_v56  ;;  %3104 = vset.pattern.permute.xlu0 %v3662_v16  ;;  %v2783_v56 = vld [vmem:[%s4645_s16 + $0x28] sm:$0xff] }
0x2f4a   :  { %2611 = vperm.xlu1 %3098, %v2587_v55  }
0x2f4e   :  { %3099 = vset.pattern.permute.xlu1 %v3663_v9  ;;  %v2784_v9 = vld [vmem:[%s4645_s16 + $0x30] sm:$0xff] }
0x2f4f   :  { %2621 = vperm.xlu1 %3099, %v2587_v55  }
0x2f53   :  { %3100 = vset.pattern.permute.xlu1 %v3664_v12  ;;  %v2785_v12 = vld [vmem:[%s4645_s16 + $0x38] sm:$0xff] }
0x2f54   :  { %2631 = vperm.xlu1 %3100, %v2587_v55  }
0x2f58   :  { %3101 = vset.pattern.permute.xlu1 %v3665_v0  ;;  %v2794_v0 = vpack.c.bf16 %v2785_v12, %v2784_v9 }
0x2f59   :  { %2641 = vperm.xlu1 %3101, %v2587_v55  }
0x2f5d   :  { %3102 = vset.pattern.permute.xlu1 %v3666_v23  ;;  %v2788_v23 = vld [vmem:[%s4645_s16 + $0x50] sm:$0xff] }
0x2f5e   :  { %2651 = vperm.xlu1 %3102, %v2587_v55  }
0x2f62   :  { %3103 = vset.pattern.permute.xlu1 %v3662_v16  ;;  %v2793_v16 = vpack.c.bf16 %v2783_v56, %v2782_v5 }
0x2f63   :  { %2661 = vperm.xlu1 %3103, %v2587_v55  }
0x2f67   :  { %2858 = vrot.lane.b32.xlu1 %v2587_v55, %s3645_s23  ;;  %v2780_v55 = vld [vmem:[%s4645_s16 + $0x10] sm:$0xff] }
0x2f68   :  { %v2792_v11 = vpack.c.bf16 %v2781_v54, %v2780_v55 }
0x2fc4   :  { %v2602_v29 = vpop.permute.xlu1 %2601  ;;  %v2592_v40 = vpop.permute.xlu0 %2591 }
0x2fc5   :  { %v2607_v43 = vmul.f32 %v2602_v29, %v4455_v52  ;;  %v2597_v46 = vmul.f32 %v2592_v40, %v4453_v60  ;;  %v2604_v61 = vmul.f32 %v2602_v29, %v4487_v44  ;;  %v2594_v31 = vmul.f32 %v2592_v40, %v4485_v7  ;;  %v2789_v29 = vld [vmem:[%s4645_s16 + $0x58] sm:$0xff] }
0x2fc7   :  { %v2608_v50 = vadd.f32 %v2607_v43, %v2597_v46  ;;  %v2605_v60 = vadd.f32 %v2604_v61, %v2594_v31 }
0x2fc9   :  { %v2612_v22 = vpop.permute.xlu1 %2611 }
0x2fca   :  { %v2617_v36 = vmul.f32 %v2612_v22, %v4461_v10  ;;  %v2614_v1 = vmul.f32 %v2612_v22, %v4493_v42  ;;  %v2796_v22 = vpack.c.bf16 %v2789_v29, %v2788_v23 }
0x2fcc   :  { %v2618_v62 = vadd.f32 %v2617_v36, %v2608_v50  ;;  %v2958_v36 = vld [vmem:[%s4644_s15] ss:$0 sm:$0xff]  ;;  %s3668_s15 = smov [#allocation25]  }
0x2fcd   :  { %s2873_s3 = sshll.u32 %s3668_s15, 4  ;;  %s2874_s3 = int_to_ptr.vmem [resolvable:$true] %s2873_s3 }
0x2fce   :  { %v2622_v57 = vpop.permute.xlu1 %2621  ;;  %p3610_p11 = scmp.lt.s32.totalorder %s2874_s3, %s2874_s3 }
0x2fcf   :  { %v2627_v24 = vmul.f32 %v2622_v57, %v4463_v25  ;;  %v2624_v10 = vmul.f32 %v2622_v57, %v4495_v17  ;;  %v2615_v25 = vadd.f32 %v2614_v1, %v2605_v60  ;;  %v2670_v17 = vld [vmem:[%s4642_s13 + $0x8] sm:$0xff] }
0x2fd1   :  { %v2628_v8 = vadd.f32 %v2627_v24, %v2618_v62  ;;  %v2625_v30 = vadd.f32 %v2624_v10, %v2615_v25  ;;  %v2849_v25 = vand.u32 127, %v213_v20 }
0x2fd3   :  { %v2632_v47 = vpop.permute.xlu1 %2631  ;;  %vm2850_vm12 = vcmp.eq.s32.totalorder %v2849_v25, 0 }
0x2fd4   :  { %v2637_v59 = vmul.f32 %v2632_v47, %v4469_v14  ;;  %v2634_v44 = vmul.f32 %v2632_v47, %v4501_v63 }
0x2fd6   :  { %v2638_v27 = vadd.f32 %v2637_v59, %v2628_v8  ;;  %v2959_v59 = vld [vmem:[%s4646_s17] ss:$0 sm:$0xff]  ;;  %s3605_s17 = scalar_lea.vmem %s2874_s3, 128 }
0x2fd7   :  { %p3606_p10 = scmp.ne.s32.totalorder %s2874_s3, %s3605_s17  ;;  %p3611_p12 = scmp.lt.s32.totalorder %s3605_s17, %s3605_s17 }
0x2fd8   :  { %v2642_v53 = vpop.permute.xlu1 %2641 }
0x2fd9   :  { %v2647_v52 = vmul.f32 %v2642_v53, %v4471_v35  ;;  %v2644_v14 = vmul.f32 %v2642_v53, %v4503_v34  ;;  %v2669_v35 = vld [vmem:[%s4642_s13] sm:$0xff]  ;;  %p3612_p13 = por %p3611_p12, %p3610_p11 }
0x2fda   :  { %v2674_v48 = vpack.c.bf16 %v2670_v17, %v2669_v35 }
0x2fdb   :  { %v2648_v49 = vadd.f32 %v2647_v52, %v2638_v27  ;;  %p3613_p0 = pnand %p3612_p13, %p3606_p10 }
0x2fdd   :  { %v2652_v18 = vpop.permute.xlu1 %2651 }
0x2fde   :  { %v2657_v45 = vmul.f32 %v2652_v18, %v4477_v39  ;;  %v2635_v39 = vadd.f32 %v2634_v44, %v2625_v30  ;;  %v2654_v2 = vmul.f32 %v2652_v18, %v4508_v58 }
0x2fe0   :  { %v2658_v19 = vadd.f32 %v2657_v45, %v2648_v49  ;;  %v2645_v38 = vadd.f32 %v2644_v14, %v2635_v39 }
0x2fe2   :  { %v2662_v7 = vpop.permute.xlu1 %2661  ;;  %v2655_v37 = vadd.f32 %v2654_v2, %v2645_v38 }
0x2fe3   :  { %v2667_v42 = vmul.f32 %v2662_v7, %v4479_v41  ;;  %v2664_v6 = vmul.f32 %v2662_v7, %v4510_v33  ;;  %v2671_v41 = vld [vmem:[%s4642_s13 + $0x10] sm:$0xff]  ;;  %v2778_v33 = vld [vmem:[%s4645_s16] sm:$0xff] }
0x2fe4   :  { %v2675_v26 = vpack.c.bf16 %v2672_v3, %v2671_v41  ;;  %v2791_v21 = vpack.c.bf16 %v2779_v28, %v2778_v33 }
0x2fe5   :  { %v2668_v63 = vadd.f32 %v2667_v42, %v2658_v19  ;;  %v2665_v58 = vadd.f32 %v2664_v6, %v2655_v37 }
0x2fe6   :  { %v2859_v7 = vpop.permute.xlu1 %2858 }
0x2fe7   :  { %v2680_v34 = vpack.c.bf16 %v2668_v63, %v2668_v63  ;;  %v2673_v4 = vpack.c.bf16 %v2665_v58, %v2665_v58 }
0x2fe9   :  { %3016 = vmatmul.mubr.msk.bf16.vlgmr.msra.gmra.mrb[32].mxu1 %vm386_vm1, %v2680_v34 }
0x2fea   :  { %3020 = vmatpush3.bf16.msra.mxu1 %v2674_v48  ;;  %3023 = vmatprep.mubr.msk.bf16.mxu1 %vm3667_vm10, %v3660_v51 }
0x2feb   :  { %3021 = vmatprep.subr.bf16.mxu1 %v3660_v51 }
0x2fee   :  { %3022 = vmatpush3.bf16.msra.mxu1 %v2675_v26 }
0x2fef   :  { %3027 = vmatprep.subr.bf16.mxu1 %v3660_v51 }
0x2ff1   :  { %3024 = vmatmul.mubr.msk.bf16.vlgmr.msra.gmra.mrb[36].mxu1 %vm386_vm1, %v2673_v4 }
0x2ff2   :  { %3028 = vmatpush3.bf16.msra.mxu1 %v2791_v21  ;;  %3039 = vmatprep.mubr.msk.bf16.mxu1 %vm3667_vm10, %v3660_v51 }
0x2ff3   :  { %3029 = vmatprep.subr.bf16.mxu1 %v3660_v51 }
0x2ff6   :  { %3030 = vmatpush3.bf16.msra.mxu1 %v2792_v11 }
0x2ff7   :  { %3031 = vmatprep.subr.bf16.mxu1 %v3660_v51 }
0x2ffa   :  { %3032 = vmatpush3.bf16.msra.mxu1 %v2793_v16 }
0x2ffb   :  { %3033 = vmatprep.subr.bf16.mxu1 %v3660_v51 }
0x2ffe   :  { %3034 = vmatpush3.bf16.msra.mxu1 %v2794_v0 }
0x2fff   :  { %3035 = vmatprep.subr.bf16.mxu1 %v3660_v51 }
0x3002   :  { %3036 = vmatpush3.bf16.msra.mxu1 %v2795_v15 }
0x3003   :  { %3037 = vmatprep.subr.bf16.mxu1 %v3660_v51 }
0x3006   :  { %3038 = vmatpush3.bf16.msra.mxu1 %v2796_v22 }
0x30bc   :  { %v2720_v57 = vpop.f32.mrb[32].mxu1 }
0x30bd   :  { %v3017_v40 = vpop.f32.mrb[33].mxu1 }
0x30be   :  { %v2723_v47 = vpop.f32.mrb[34].mxu1 }
0x30bf   :  { %v3018_v43 = vpop.f32.mrb[35].mxu1 }
0x30c4   :  { %v2763_v46 = vpop.f32.mrb[36].mxu1 }
0x30c5   :  { %v2764_v51 = vadd.f32 %v2763_v46, %v2720_v57  ;;  %v3025_v53 = vpop.f32.mrb[37].mxu1 }
0x30c6   :  { %v2766_v50 = vpop.f32.mrb[38].mxu1 }
0x30c7   :  { %v2776_v24 = vadd.f32 %v2958_v36, %v2764_v51  ;;  %v3026_v61 = vpop.f32.mrb[39].mxu1 }
0x30c9   :  { %v2777_v31 = vmax.f32 %v2776_v24, 0.0 }
0x30cb   :  { %v2790_v62 = vpack.c.bf16 %v2777_v31, %v2777_v31 }
0x30cd   :  { %3040 = vmatmul.mubr.msk.bf16.vlgmr.msra.gmra.mrb[40].mxu1 %vm2804_vm11, %v2790_v62 }
0x31a0   :  { %v2842_v1 = vpop.f32.mrb[40].mxu1 }
0x31a1   :  { %v2843_v8 = vadd.f32 %v2959_v59, %v2842_v1  ;;  %v3041_v52 = vpop.f32.mrb[41].mxu1 }
0x31a2   :  { %v2845_v18 = vpop.f32.mrb[42].mxu1 }
0x31a3   :  { %v2961_v60 = vmul.f32 -1.442695, %v2843_v8  ;;  %v3042_v10 = vpop.f32.mrb[43].mxu1 }
0x31a5   :  { %3381 = vpow2.f32 %v2961_v60 }
0x31af   :  { %v3382_v27 = vpop.eup %3381 }
0x31b0   :  { %v2854_v45 = vadd.f32 1.0, %v3382_v27 }
0x31b2   :  { %3383 = vrcp.f32 %v2854_v45 }
0x31bc   :  { %v3384_v44 = vpop.eup %3383 }
0x31bd   :  { %v2857_v49 = vsel %vm2850_vm12, %v3384_v44, %v2843_v8 }
0x31be   :  { %v2862_v30 = vsel %vm2861_vm13, %v2857_v49, 0.0 }
0x31bf   :  { %v2863_v14 = vsel %vm223_vm0, %v2862_v30, %v2859_v7 }
0x31c0   :  { %v2865_v19 = vsel %vm2864_vm14, %v2863_v14, 0.0 }
0x31c1   :  { %2866 = vst [vmem:[#allocation25] sm:$0xff] %v2865_v19 }
0x31c2   :  { %3616 = shalt.err (!%p3613_p0)
}
0x31c3   :  { %s3617_s14 = scalar_lea.hbm %s4647_s18, 128 }
0x31c4   :  { %p3618_p1 = scmp.ne.s32.totalorder %s4647_s18, %s3617_s14  ;;  %p3621_p2 = scmp.lt.u32.totalorder %s3617_s14, %s4647_s18 }
0x31c6   :  { %p3623_p3 = pnand %p3621_p2, %p3618_p1 }
0x31c8   :  { %3626 = shalt.err (!%p3623_p3)
}
0x31c9   :  { %2876 = dma.vmem_to_hbm [thread:$0]  %s2874_s3, 128, %s4647_s18, [#allocation10]  }
0x31ca   :  { %3639 = dma.done.wait [#allocation10], 128  }
0x31cb   :  { %3640 = vsyncadd [#allocation10], 4294967168 }
0x31cc   :  { %2880 = vsyncpa [#allocation9], 1 }
0x31cd   :  { %2881 = vsyncpa [#allocation12], 1 }
0x31ce   :  { %2882 = vsyncpa [#allocation15], 1 }
0x31cf   :  { %2883 = vsyncpa [#allocation18], 1 }
0x31d0   :  { %2884 = vsyncpa [#allocation21], 1 }
0x31d1   :  { %2885 = vsyncpa [#allocation24], 1 }
0x31d2   :  { %2886 = vsyncpa [#allocation10], 1 }

</bundles_post_ra>
